<compile_context>
chip_gen: v6e
topology: v6e:2x2x1
jax: 0.10.0
libtpu: 0.0.40
codegen_flags: <defaults>
</compile_context>

<pallas_src>
import functools

import jax
import jax.numpy as jnp
from jax.experimental import pallas as pl
from jax.experimental.pallas import tpu as pltpu


def _round_up(x, m):
    return (x + m - 1) // m * m


def _time_lstm_kernel(x_ref, tsm1_ref,
                      wd_w_ref, wd_b_ref,
                      wall_w_ref, uall_w_ref, gate_b_ref,
                      out_ref,
                      h_sc, c_sc, gx_sc, *, unroll):
    seq_blk = pl.program_id(1)

    @pl.when(seq_blk == 0)
    def _():
        h_sc[...] = jnp.zeros_like(h_sc)
        c_sc[...] = jnp.zeros_like(c_sc)

    t_blk, b, e = x_ref.shape
    hidden = h_sc.shape[-1]

    # Hoisted input projection for the whole block: one (t_blk*b, E) @ (E, 4H)
    # MXU matmul (bf16 operands, f32 accumulation), combined bias folded in.
    # b is a multiple of 16 so the leading-dim collapse is layout preserving.
    x2d = x_ref[...].reshape(t_blk * b, e)                      # bf16
    gx_sc[...] = (jnp.dot(x2d, uall_w_ref[...],
                          preferred_element_type=jnp.float32)
                  + gate_b_ref[...])

    wd_w = wd_w_ref[...]        # (H, H)   bf16
    wd_b = wd_b_ref[...]        # (1, H)   f32
    wall_w = wall_w_ref[...]    # (H, 4H)  bf16

    def step(t, carry):
        h = h_sc[...]           # (B, H) f32
        c = c_sc[...]           # (B, H) f32

        # c_s1 = tanh(W_d(c)); time-decayed cell adjustment.
        c_s1 = jnp.tanh(
            jnp.dot(c.astype(jnp.bfloat16), wd_w,
                    preferred_element_type=jnp.float32) + wd_b)
        # (c - c_s1) + c_s1*ts  ==  c + c_s1*(ts - 1); (ts - 1) precomputed.
        c_adj = c + c_s1 * tsm1_ref[t]

        # Gates: W_all(h) + [precomputed U_all(x_t) + biases].
        row0 = pl.multiple_of(t * b, b)
        outs = (jnp.dot(h.astype(jnp.bfloat16), wall_w,
                        preferred_element_type=jnp.float32)
                + gx_sc[pl.ds(row0, b), :])

        # One EUP pass over the whole 4H slab, then lane-aligned gate views.
        gates = jax.nn.sigmoid(outs)
        f = gates[:, 0 * hidden:1 * hidden]
        i = gates[:, 1 * hidden:2 * hidden]
        o = gates[:, 2 * hidden:3 * hidden]
        c_tmp = gates[:, 3 * hidden:4 * hidden]  # sigmoid candidate: matches torch code

        c_new = f * c_adj + i * c_tmp
        h_new = o * jnp.tanh(c_new)

        c_sc[...] = c_new
        h_sc[...] = h_new
        out_ref[t] = h_new.astype(out_ref.dtype)
        return carry

    jax.lax.fori_loop(0, t_blk, step, 0, unroll=unroll)


def _pad_gate_cols(w_t, h, hp):
    """(rows, 4h) -> (rows, 4hp): gate k moved to 128-aligned cols [k*hp, k*hp+h)."""
    parts = []
    for k in range(4):
        parts.append(jnp.pad(w_t[:, k * h:(k + 1) * h], ((0, 0), (0, hp - h))))
    return jnp.concatenate(parts, axis=1)


def _pad_gate_bias(bvec, h, hp):
    parts = []
    for k in range(4):
        parts.append(jnp.pad(bvec[k * h:(k + 1) * h], (0, hp - h)))
    return jnp.concatenate(parts, axis=0)


def _resident_spec(shape):
    """Constant-index weight block; single-buffered (it never changes)."""
    idx = lambda *_: (0,) * len(shape)
    try:
        return pl.BlockSpec(shape, idx, pipeline_mode=pl.Buffered(buffer_count=1))
    except Exception:  # older jax without pipeline_mode: fall back to default buffering
        return pl.BlockSpec(shape, idx)


@functools.partial(jax.jit, static_argnames=("reverse",))
def time_lstm_forward(params, inputs, timestamps, lens=None, reverse=False):
    """inputs: (b, seq, input_size); timestamps: (b, seq). Returns (b, seq, hidden) f32."""
    del lens  # the reference PyTorch forward ignores `lens` as well
    # TODO(synk): variable-length masking via `lens` (not done in the original forward either).
    b, seq, embed = inputs.shape
    hidden = params["W_d_w"].shape[0]

    f32, bf16 = jnp.float32, jnp.bfloat16

    # Padded, TPU-friendly sizes (batch to 16 so bf16 packed tiles stay aligned).
    bp = _round_up(b, 16)
    if bp >= 256:                          # tile batch only when there is real parallelism
        b_tile = 128
        bp = _round_up(bp, b_tile)
    else:
        b_tile = bp
    hp = _round_up(hidden, 128)            # lane-aligned hidden
    ep = _round_up(embed, 128)             # lane-aligned input
    t_blk = min(32, _round_up(seq, 8))     # timesteps per grid step (multiple of 8)
    # Keep the per-block input-projection scratch (t_blk*b_tile, 4hp) f32 bounded.
    while t_blk > 8 and t_blk * b_tile * 4 * hp * 4 > (8 << 20):
        t_blk //= 2
    sp = _round_up(seq, t_blk)

    # Inputs: zero-pad in bf16 and go time-major (seq, batch, feature).
    x_p = jnp.zeros((bp, sp, ep), bf16).at[:b, :seq, :embed].set(inputs.astype(bf16))
    x_tm = jnp.transpose(x_p, (1, 0, 2))                         # (sp, bp, ep) bf16
    ts_p = jnp.zeros((bp, sp), f32).at[:b, :seq].set(timestamps.astype(f32))
    tsm1_tm = jnp.transpose(ts_p, (1, 0))[:, :, None] - 1.0      # (sp, bp, 1): ts - 1

    # PyTorch Linear stores (out, in); transpose to (in, out), zero-pad, realign
    # the 4 gate blocks to hp-sized 128-lane-aligned column groups, cast to bf16.
    wd_wt = jnp.pad(params["W_d_w"].T,
                    ((0, hp - hidden), (0, hp - hidden))).astype(bf16)          # (hp, hp)
    wd_b = jnp.pad(params["W_d_b"], (0, hp - hidden)).reshape(1, hp).astype(f32)
    wall_wt = jnp.pad(_pad_gate_cols(params["W_all_w"].T, hidden, hp),
                      ((0, hp - hidden), (0, 0))).astype(bf16)                  # (hp, 4hp)
    uall_wt = jnp.pad(_pad_gate_cols(params["U_all_w"].T, hidden, hp),
                      ((0, ep - embed), (0, 0))).astype(bf16)                   # (ep, 4hp)
    gate_b = _pad_gate_bias(params["W_all_b"] + params["U_all_b"],
                            hidden, hp).reshape(1, 4 * hp).astype(f32)

    # VMEM budget: single-buffered resident weights + double-buffered bf16 x/out
    # and f32 ts blocks + scratch + headroom; clamp to ~80% of physical VMEM
    # (generation-aware: ~51 MiB on v7x, ~102 MiB on v5e/v6e).
    weight_bytes = (hp * hp + hp * 4 * hp + ep * 4 * hp) * 2 + (hp + 4 * hp) * 4
    stream_bytes = 2 * (t_blk * b_tile * (ep + hp) * 2 + t_blk * b_tile * 4)
    scratch_bytes = (2 * b_tile * hp + t_blk * b_tile * 4 * hp) * 4
    need = weight_bytes + stream_bytes + scratch_bytes + (8 << 20)
    try:
        vmem_cap = int(getattr(pltpu.get_tpu_info(), "vmem_capacity_bytes", 64 << 20))
    except Exception:
        vmem_cap = 64 << 20
    vmem_limit = int(min(max(need, 16 << 20), int(vmem_cap * 0.8)))

    # Limit vreg pressure on the serial path for large hidden sizes.
    unroll_steps = min(int(t_blk), 16) if hp <= 256 else min(int(t_blk), 4)
    kernel = functools.partial(_time_lstm_kernel, unroll=unroll_steps)

    out_tm = pl.pallas_call(
        kernel,
        out_shape=jax.ShapeDtypeStruct((sp, bp, hp), bf16),
        grid_spec=pltpu.PrefetchScalarGridSpec(
            num_scalar_prefetch=0,
            grid=(bp // b_tile, sp // t_blk),          # (parallel batch, serial seq)
            in_specs=[
                pl.BlockSpec((t_blk, b_tile, ep), lambda bi, si: (si, bi, 0)),  # x (bf16)
                pl.BlockSpec((t_blk, b_tile, 1), lambda bi, si: (si, bi, 0)),   # ts - 1
                _resident_spec((hp, hp)),               # W_d^T   (bf16)
                _resident_spec((1, hp)),                # W_d bias
                _resident_spec((hp, 4 * hp)),           # W_all^T (bf16)
                _resident_spec((ep, 4 * hp)),           # U_all^T (bf16)
                _resident_spec((1, 4 * hp)),            # combined gate bias
            ],
            out_specs=pl.BlockSpec((t_blk, b_tile, hp), lambda bi, si: (si, bi, 0)),
            scratch_shapes=[
                pltpu.VMEM((b_tile, hp), f32),                   # h carry
                pltpu.VMEM((b_tile, hp), f32),                   # c carry
                pltpu.VMEM((t_blk * b_tile, 4 * hp), f32),       # per-block input gates
            ],
        ),
        compiler_params=pltpu.CompilerParams(
            dimension_semantics=("parallel", "arbitrary"),  # batch parallel, seq recurrent
            vmem_limit_bytes=vmem_limit),
    )(x_tm, tsm1_tm, wd_wt, wd_b, wall_wt, uall_wt, gate_b)

    out = jnp.transpose(out_tm, (1, 0, 2))[:b, :seq, :hidden].astype(f32)
    if reverse:
        out = out[:, ::-1, :]
    return out


def _reference_forward(params, inputs, timestamps, reverse=False):
    """Pure-JAX mirror of the PyTorch forward (same bf16 matmul operands as the kernel)."""
    b, seq, _ = inputs.shape
    hidden = params["W_d_w"].shape[0]
    bf16 = jnp.bfloat16
    wd = params["W_d_w"].T.astype(bf16)
    wall = params["W_all_w"].T.astype(bf16)
    uall = params["U_all_w"].T.astype(bf16)
    gate_b = params["W_all_b"] + params["U_all_b"]
    h = jnp.zeros((b, hidden), jnp.float32)
    c = jnp.zeros((b, hidden), jnp.float32)
    outs_list = []
    for s in range(seq):
        c_s1 = jnp.tanh(jnp.dot(c.astype(bf16), wd, preferred_element_type=jnp.float32)
                        + params["W_d_b"])
        c_adj = (c - c_s1) + c_s1 * timestamps[:, s:s + 1]
        outs = (jnp.dot(h.astype(bf16), wall, preferred_element_type=jnp.float32)
                + jnp.dot(inputs[:, s].astype(bf16), uall, preferred_element_type=jnp.float32)
                + gate_b)
        f, i, o, c_tmp = jnp.split(outs, 4, axis=1)
        f, i, o, c_tmp = map(jax.nn.sigmoid, (f, i, o, c_tmp))
        c = f * c_adj + i * c_tmp
        h = o * jnp.tanh(c)
        outs_list.append(h)
    if reverse:
        outs_list.reverse()
    return jnp.stack(outs_list, axis=1)


if __name__ == "__main__":
    batch, seq, input_size, hidden_size = 2, 8, 4, 32

    key = jax.random.PRNGKey(0)
    ks = jax.random.split(key, 8)
    # Deterministic synthetic parameters (PyTorch Linear layout: (out, in)).
    params = {
        "W_all_w": 0.1 * jax.random.normal(ks[0], (4 * hidden_size, hidden_size), jnp.float32),
        "W_all_b": 0.1 * jax.random.normal(ks[1], (4 * hidden_size,), jnp.float32),
        "U_all_w": 0.1 * jax.random.normal(ks[2], (4 * hidden_size, input_size), jnp.float32),
        "U_all_b": 0.1 * jax.random.normal(ks[3], (4 * hidden_size,), jnp.float32),
        "W_d_w": 0.1 * jax.random.normal(ks[4], (hidden_size, hidden_size), jnp.float32),
        "W_d_b": 0.1 * jax.random.normal(ks[5], (hidden_size,), jnp.float32),
    }

    inputs = jax.random.normal(ks[6], (batch, seq, input_size), jnp.float32)
    timestamps = jax.random.uniform(ks[7], (batch, seq), jnp.float32)
    lens = jnp.full((batch,), seq, jnp.int32)  # unused by forward, kept for API parity

    out = time_lstm_forward(params, inputs, timestamps, lens, reverse=False)
    out = jax.block_until_ready(out)

    ref = _reference_forward(params, inputs, timestamps, reverse=False)
    assert out.shape == (batch, seq, hidden_size)
    # Kernel stores its outputs in bf16 (|h| < 1 -> abs error <~ 2e-3); compare loosely.
    err = float(jnp.max(jnp.abs(out - ref)))
    assert jnp.allclose(out, ref, atol=1e-2, rtol=1e-2), err

    print("KERNEL_OK")
</pallas_src>

<mosaic_0001>
module attributes {stable_mosaic.version = 11 : i64} {
  func.func @_time_lstm_kernel(%arg0: i32, %arg1: i32, %arg2: memref<8x16x128xbf16, #tpu.memory_space<vmem>>, %arg3: memref<8x16x1xf32, #tpu.memory_space<vmem>>, %arg4: memref<128x128xbf16, #tpu.memory_space<vmem>>, %arg5: memref<1x128xf32, #tpu.memory_space<vmem>>, %arg6: memref<128x512xbf16, #tpu.memory_space<vmem>>, %arg7: memref<128x512xbf16, #tpu.memory_space<vmem>>, %arg8: memref<1x512xf32, #tpu.memory_space<vmem>>, %arg9: memref<8x16x128xbf16, #tpu.memory_space<vmem>>, %arg10: memref<16x128xf32, #tpu.memory_space<vmem>>, %arg11: memref<16x128xf32, #tpu.memory_space<vmem>>, %arg12: memref<128x512xf32, #tpu.memory_space<vmem>>) attributes {dimension_semantics = [#tpu.dimension_semantics<parallel>, #tpu.dimension_semantics<arbitrary>], iteration_bounds = array<i64: 1, 1>, scalar_prefetch = 0 : i64, scratch_operands = 3 : i64, tpu.core_type = #tpu.core_type<tc>, window_params = [{transform_indices = @transform_0, window_bounds = array<i64: 8, 16, 128>}, {transform_indices = @transform_1, window_bounds = array<i64: 8, 16, 1>}, {pipeline_mode = #tpu.pipeline_mode<synchronous>, transform_indices = @transform_2, window_bounds = array<i64: 128, 128>}, {pipeline_mode = #tpu.pipeline_mode<synchronous>, transform_indices = @transform_3, window_bounds = array<i64: 1, 128>}, {pipeline_mode = #tpu.pipeline_mode<synchronous>, transform_indices = @transform_4, window_bounds = array<i64: 128, 512>}, {pipeline_mode = #tpu.pipeline_mode<synchronous>, transform_indices = @transform_5, window_bounds = array<i64: 128, 512>}, {pipeline_mode = #tpu.pipeline_mode<synchronous>, transform_indices = @transform_6, window_bounds = array<i64: 1, 512>}, {transform_indices = @transform_7, window_bounds = array<i64: 8, 16, 128>}]} {
    %c0_i32 = arith.constant 0 : i32
    %0 = arith.cmpi eq, %arg1, %c0_i32 : i32
    %1 = arith.extui %0 : i1 to i32
    %c0_i32_0 = arith.constant 0 : i32
    %2 = arith.cmpi ne, %1, %c0_i32_0 : i32
    scf.if %2 {
      %cst_151 = arith.constant 0.000000e+00 : f32
      %342 = vector.broadcast %cst_151 : f32 to vector<16x128xf32>
      %c0_152 = arith.constant 0 : index
      %c0_153 = arith.constant 0 : index
      %343 = vector.load %arg10[%c0_152, %c0_153] : memref<16x128xf32, #tpu.memory_space<vmem>>, vector<16x128xf32>
      tpu.vector_store %arg10[%c0_152, %c0_153], %342 {strides = array<i32>} : memref<16x128xf32, #tpu.memory_space<vmem>>, vector<16x128xf32>,
      %cst_154 = arith.constant 0.000000e+00 : f32
      %344 = vector.broadcast %cst_154 : f32 to vector<16x128xf32>
      %c0_155 = arith.constant 0 : index
      %c0_156 = arith.constant 0 : index
      %345 = vector.load %arg11[%c0_155, %c0_156] : memref<16x128xf32, #tpu.memory_space<vmem>>, vector<16x128xf32>
      tpu.vector_store %arg11[%c0_155, %c0_156], %344 {strides = array<i32>} : memref<16x128xf32, #tpu.memory_space<vmem>>, vector<16x128xf32>,
    } else {
    }
    %c0 = arith.constant 0 : index
    %c0_1 = arith.constant 0 : index
    %c0_2 = arith.constant 0 : index
    %3 = vector.load %arg2[%c0, %c0_1, %c0_2] : memref<8x16x128xbf16, #tpu.memory_space<vmem>>, vector<8x16x128xbf16>
    %4 = vector.shape_cast %3 : vector<8x16x128xbf16> to vector<128x128xbf16>
    %c0_3 = arith.constant 0 : index
    %c0_4 = arith.constant 0 : index
    %5 = vector.load %arg7[%c0_3, %c0_4] : memref<128x512xbf16, #tpu.memory_space<vmem>>, vector<128x512xbf16>
    %cst = arith.constant dense<0.000000e+00> : vector<128x512xf32>
    %6 = tpu.matmul %4, %5, %cst {dimension_numbers = #tpu.dot_dimension_numbers<[1], [0], [0], [1], [0, 0, 1, 1], [], []>} : vector<128x128xbf16>, vector<128x512xbf16>, vector<128x512xf32> -> vector<128x512xf32>
    %c0_5 = arith.constant 0 : index
    %c0_6 = arith.constant 0 : index
    %7 = vector.load %arg8[%c0_5, %c0_6] : memref<1x512xf32, #tpu.memory_space<vmem>>, vector<1x512xf32>
    %8 = vector.broadcast %7 : vector<1x512xf32> to vector<128x512xf32>
    %9 = arith.addf %6, %8 : vector<128x512xf32>
    %c0_7 = arith.constant 0 : index
    %c0_8 = arith.constant 0 : index
    %10 = vector.load %arg12[%c0_7, %c0_8] : memref<128x512xf32, #tpu.memory_space<vmem>>, vector<128x512xf32>
    tpu.vector_store %arg12[%c0_7, %c0_8], %9 {strides = array<i32>} : memref<128x512xf32, #tpu.memory_space<vmem>>, vector<128x512xf32>,
    %c0_9 = arith.constant 0 : index
    %c0_10 = arith.constant 0 : index
    %11 = vector.load %arg4[%c0_9, %c0_10] : memref<128x128xbf16, #tpu.memory_space<vmem>>, vector<128x128xbf16>
    %c0_11 = arith.constant 0 : index
    %c0_12 = arith.constant 0 : index
    %12 = vector.load %arg5[%c0_11, %c0_12] : memref<1x128xf32, #tpu.memory_space<vmem>>, vector<1x128xf32>
    %c0_13 = arith.constant 0 : index
    %c0_14 = arith.constant 0 : index
    %13 = vector.load %arg6[%c0_13, %c0_14] : memref<128x512xbf16, #tpu.memory_space<vmem>>, vector<128x512xbf16>
    %c0_i32_15 = arith.constant 0 : i32
    %c0_16 = arith.constant 0 : index
    %c0_17 = arith.constant 0 : index
    %14 = vector.load %arg10[%c0_16, %c0_17] : memref<16x128xf32, #tpu.memory_space<vmem>>, vector<16x128xf32>
    %c0_18 = arith.constant 0 : index
    %c0_19 = arith.constant 0 : index
    %15 = vector.load %arg11[%c0_18, %c0_19] : memref<16x128xf32, #tpu.memory_space<vmem>>, vector<16x128xf32>
    %16 = arith.truncf %15 : vector<16x128xf32> to vector<16x128xbf16>
    %cst_20 = arith.constant dense<0.000000e+00> : vector<16x128xf32>
    %17 = tpu.matmul %16, %11, %cst_20 {dimension_numbers = #tpu.dot_dimension_numbers<[1], [0], [0], [1], [0, 0, 1, 1], [], []>} : vector<16x128xbf16>, vector<128x128xbf16>, vector<16x128xf32> -> vector<16x128xf32>
    %18 = vector.broadcast %12 : vector<1x128xf32> to vector<16x128xf32>
    %19 = arith.addf %17, %18 : vector<16x128xf32>
    %20 = math.tanh %19 : vector<16x128xf32>
    %21 = arith.index_cast %c0_i32_15 : i32 to index
    %c0_21 = arith.constant 0 : index
    %c0_22 = arith.constant 0 : index
    %22 = vector.load %arg3[%21, %c0_21, %c0_22] : memref<8x16x1xf32, #tpu.memory_space<vmem>>, vector<1x16x1xf32>
    %23 = vector.shape_cast %22 : vector<1x16x1xf32> to vector<16x1xf32>
    %24 = vector.broadcast %23 : vector<16x1xf32> to vector<16x128xf32>
    %25 = arith.mulf %20, %24 : vector<16x128xf32>
    %26 = arith.addf %15, %25 : vector<16x128xf32>
    %c16_i32 = arith.constant 16 : i32
    %27 = arith.muli %c0_i32_15, %c16_i32 : i32
    %28 = tpu.assume_multiple %27, 16 : i32
    %29 = arith.truncf %14 : vector<16x128xf32> to vector<16x128xbf16>
    %cst_23 = arith.constant dense<0.000000e+00> : vector<16x512xf32>
    %30 = tpu.matmul %29, %13, %cst_23 {dimension_numbers = #tpu.dot_dimension_numbers<[1], [0], [0], [1], [0, 0, 1, 1], [], []>} : vector<16x128xbf16>, vector<128x512xbf16>, vector<16x512xf32> -> vector<16x512xf32>
    %31 = arith.index_cast %28 : i32 to index
    %c0_24 = arith.constant 0 : index
    %32 = vector.load %arg12[%31, %c0_24] : memref<128x512xf32, #tpu.memory_space<vmem>>, vector<16x512xf32>
    %33 = arith.addf %30, %32 : vector<16x512xf32>
    %34 = arith.negf %33 : vector<16x512xf32>
    %35 = math.exp %34 : vector<16x512xf32>
    %cst_25 = arith.constant 1.000000e+00 : f32
    %36 = vector.broadcast %cst_25 : f32 to vector<16x512xf32>
    %37 = arith.addf %36, %35 : vector<16x512xf32>
    %38 = arith.divf %36, %37 : vector<16x512xf32>
    %39 = vector.extract_strided_slice %38 {offsets = [0, 0], sizes = [16, 128], strides = [1, 1]} : vector<16x512xf32> to vector<16x128xf32>
    %40 = vector.extract_strided_slice %38 {offsets = [0, 128], sizes = [16, 128], strides = [1, 1]} : vector<16x512xf32> to vector<16x128xf32>
    %41 = vector.extract_strided_slice %38 {offsets = [0, 256], sizes = [16, 128], strides = [1, 1]} : vector<16x512xf32> to vector<16x128xf32>
    %42 = vector.extract_strided_slice %38 {offsets = [0, 384], sizes = [16, 128], strides = [1, 1]} : vector<16x512xf32> to vector<16x128xf32>
    %43 = arith.mulf %39, %26 : vector<16x128xf32>
    %44 = arith.mulf %40, %42 : vector<16x128xf32>
    %45 = arith.addf %43, %44 : vector<16x128xf32>
    %46 = math.tanh %45 : vector<16x128xf32>
    %47 = arith.mulf %41, %46 : vector<16x128xf32>
    %c0_26 = arith.constant 0 : index
    %c0_27 = arith.constant 0 : index
    %48 = vector.load %arg11[%c0_26, %c0_27] : memref<16x128xf32, #tpu.memory_space<vmem>>, vector<16x128xf32>
    tpu.vector_store %arg11[%c0_26, %c0_27], %45 {strides = array<i32>} : memref<16x128xf32, #tpu.memory_space<vmem>>, vector<16x128xf32>,
    %c0_28 = arith.constant 0 : index
    %c0_29 = arith.constant 0 : index
    %49 = vector.load %arg10[%c0_28, %c0_29] : memref<16x128xf32, #tpu.memory_space<vmem>>, vector<16x128xf32>
    tpu.vector_store %arg10[%c0_28, %c0_29], %47 {strides = array<i32>} : memref<16x128xf32, #tpu.memory_space<vmem>>, vector<16x128xf32>,
    %50 = arith.truncf %47 : vector<16x128xf32> to vector<16x128xbf16>
    %51 = arith.index_cast %c0_i32_15 : i32 to index
    %c0_30 = arith.constant 0 : index
    %c0_31 = arith.constant 0 : index
    %52 = vector.load %arg9[%51, %c0_30, %c0_31] : memref<8x16x128xbf16, #tpu.memory_space<vmem>>, vector<1x16x128xbf16>
    %53 = vector.shape_cast %52 : vector<1x16x128xbf16> to vector<16x128xbf16>
    %54 = vector.shape_cast %50 : vector<16x128xbf16> to vector<1x16x128xbf16>
    tpu.vector_store %arg9[%51, %c0_30, %c0_31], %54 {strides = array<i32>} : memref<8x16x128xbf16, #tpu.memory_space<vmem>>, vector<1x16x128xbf16>,
    %c1_i32 = arith.constant 1 : i32
    %c0_32 = arith.constant 0 : index
    %c0_33 = arith.constant 0 : index
    %55 = vector.load %arg10[%c0_32, %c0_33] : memref<16x128xf32, #tpu.memory_space<vmem>>, vector<16x128xf32>
    %c0_34 = arith.constant 0 : index
    %c0_35 = arith.constant 0 : index
    %56 = vector.load %arg11[%c0_34, %c0_35] : memref<16x128xf32, #tpu.memory_space<vmem>>, vector<16x128xf32>
    %57 = arith.truncf %56 : vector<16x128xf32> to vector<16x128xbf16>
    %cst_36 = arith.constant dense<0.000000e+00> : vector<16x128xf32>
    %58 = tpu.matmul %57, %11, %cst_36 {dimension_numbers = #tpu.dot_dimension_numbers<[1], [0], [0], [1], [0, 0, 1, 1], [], []>} : vector<16x128xbf16>, vector<128x128xbf16>, vector<16x128xf32> -> vector<16x128xf32>
    %59 = vector.broadcast %12 : vector<1x128xf32> to vector<16x128xf32>
    %60 = arith.addf %58, %59 : vector<16x128xf32>
    %61 = math.tanh %60 : vector<16x128xf32>
    %62 = arith.index_cast %c1_i32 : i32 to index
    %c0_37 = arith.constant 0 : index
    %c0_38 = arith.constant 0 : index
    %63 = vector.load %arg3[%62, %c0_37, %c0_38] : memref<8x16x1xf32, #tpu.memory_space<vmem>>, vector<1x16x1xf32>
    %64 = vector.shape_cast %63 : vector<1x16x1xf32> to vector<16x1xf32>
    %65 = vector.broadcast %64 : vector<16x1xf32> to vector<16x128xf32>
    %66 = arith.mulf %61, %65 : vector<16x128xf32>
    %67 = arith.addf %56, %66 : vector<16x128xf32>
    %c16_i32_39 = arith.constant 16 : i32
    %68 = arith.muli %c1_i32, %c16_i32_39 : i32
    %69 = tpu.assume_multiple %68, 16 : i32
    %70 = arith.truncf %55 : vector<16x128xf32> to vector<16x128xbf16>
    %cst_40 = arith.constant dense<0.000000e+00> : vector<16x512xf32>
    %71 = tpu.matmul %70, %13, %cst_40 {dimension_numbers = #tpu.dot_dimension_numbers<[1], [0], [0], [1], [0, 0, 1, 1], [], []>} : vector<16x128xbf16>, vector<128x512xbf16>, vector<16x512xf32> -> vector<16x512xf32>
    %72 = arith.index_cast %69 : i32 to index
    %c0_41 = arith.constant 0 : index
    %73 = vector.load %arg12[%72, %c0_41] : memref<128x512xf32, #tpu.memory_space<vmem>>, vector<16x512xf32>
    %74 = arith.addf %71, %73 : vector<16x512xf32>
    %75 = arith.negf %74 : vector<16x512xf32>
    %76 = math.exp %75 : vector<16x512xf32>
    %cst_42 = arith.constant 1.000000e+00 : f32
    %77 = vector.broadcast %cst_42 : f32 to vector<16x512xf32>
    %78 = arith.addf %77, %76 : vector<16x512xf32>
    %79 = arith.divf %77, %78 : vector<16x512xf32>
    %80 = vector.extract_strided_slice %79 {offsets = [0, 0], sizes = [16, 128], strides = [1, 1]} : vector<16x512xf32> to vector<16x128xf32>
    %81 = vector.extract_strided_slice %79 {offsets = [0, 128], sizes = [16, 128], strides = [1, 1]} : vector<16x512xf32> to vector<16x128xf32>
    %82 = vector.extract_strided_slice %79 {offsets = [0, 256], sizes = [16, 128], strides = [1, 1]} : vector<16x512xf32> to vector<16x128xf32>
    %83 = vector.extract_strided_slice %79 {offsets = [0, 384], sizes = [16, 128], strides = [1, 1]} : vector<16x512xf32> to vector<16x128xf32>
    %84 = arith.mulf %80, %67 : vector<16x128xf32>
    %85 = arith.mulf %81, %83 : vector<16x128xf32>
    %86 = arith.addf %84, %85 : vector<16x128xf32>
    %87 = math.tanh %86 : vector<16x128xf32>
    %88 = arith.mulf %82, %87 : vector<16x128xf32>
    %c0_43 = arith.constant 0 : index
    %c0_44 = arith.constant 0 : index
    %89 = vector.load %arg11[%c0_43, %c0_44] : memref<16x128xf32, #tpu.memory_space<vmem>>, vector<16x128xf32>
    tpu.vector_store %arg11[%c0_43, %c0_44], %86 {strides = array<i32>} : memref<16x128xf32, #tpu.memory_space<vmem>>, vector<16x128xf32>,
    %c0_45 = arith.constant 0 : index
    %c0_46 = arith.constant 0 : index
    %90 = vector.load %arg10[%c0_45, %c0_46] : memref<16x128xf32, #tpu.memory_space<vmem>>, vector<16x128xf32>
    tpu.vector_store %arg10[%c0_45, %c0_46], %88 {strides = array<i32>} : memref<16x128xf32, #tpu.memory_space<vmem>>, vector<16x128xf32>,
    %91 = arith.truncf %88 : vector<16x128xf32> to vector<16x128xbf16>
    %92 = arith.index_cast %c1_i32 : i32 to index
    %c0_47 = arith.constant 0 : index
    %c0_48 = arith.constant 0 : index
    %93 = vector.load %arg9[%92, %c0_47, %c0_48] : memref<8x16x128xbf16, #tpu.memory_space<vmem>>, vector<1x16x128xbf16>
    %94 = vector.shape_cast %93 : vector<1x16x128xbf16> to vector<16x128xbf16>
    %95 = vector.shape_cast %91 : vector<16x128xbf16> to vector<1x16x128xbf16>
    tpu.vector_store %arg9[%92, %c0_47, %c0_48], %95 {strides = array<i32>} : memref<8x16x128xbf16, #tpu.memory_space<vmem>>, vector<1x16x128xbf16>,
    %c2_i32 = arith.constant 2 : i32
    %c0_49 = arith.constant 0 : index
    %c0_50 = arith.constant 0 : index
    %96 = vector.load %arg10[%c0_49, %c0_50] : memref<16x128xf32, #tpu.memory_space<vmem>>, vector<16x128xf32>
    %c0_51 = arith.constant 0 : index
    %c0_52 = arith.constant 0 : index
    %97 = vector.load %arg11[%c0_51, %c0_52] : memref<16x128xf32, #tpu.memory_space<vmem>>, vector<16x128xf32>
    %98 = arith.truncf %97 : vector<16x128xf32> to vector<16x128xbf16>
    %cst_53 = arith.constant dense<0.000000e+00> : vector<16x128xf32>
    %99 = tpu.matmul %98, %11, %cst_53 {dimension_numbers = #tpu.dot_dimension_numbers<[1], [0], [0], [1], [0, 0, 1, 1], [], []>} : vector<16x128xbf16>, vector<128x128xbf16>, vector<16x128xf32> -> vector<16x128xf32>
    %100 = vector.broadcast %12 : vector<1x128xf32> to vector<16x128xf32>
    %101 = arith.addf %99, %100 : vector<16x128xf32>
    %102 = math.tanh %101 : vector<16x128xf32>
    %103 = arith.index_cast %c2_i32 : i32 to index
    %c0_54 = arith.constant 0 : index
    %c0_55 = arith.constant 0 : index
    %104 = vector.load %arg3[%103, %c0_54, %c0_55] : memref<8x16x1xf32, #tpu.memory_space<vmem>>, vector<1x16x1xf32>
    %105 = vector.shape_cast %104 : vector<1x16x1xf32> to vector<16x1xf32>
    %106 = vector.broadcast %105 : vector<16x1xf32> to vector<16x128xf32>
    %107 = arith.mulf %102, %106 : vector<16x128xf32>
    %108 = arith.addf %97, %107 : vector<16x128xf32>
    %c16_i32_56 = arith.constant 16 : i32
    %109 = arith.muli %c2_i32, %c16_i32_56 : i32
    %110 = tpu.assume_multiple %109, 16 : i32
    %111 = arith.truncf %96 : vector<16x128xf32> to vector<16x128xbf16>
    %cst_57 = arith.constant dense<0.000000e+00> : vector<16x512xf32>
    %112 = tpu.matmul %111, %13, %cst_57 {dimension_numbers = #tpu.dot_dimension_numbers<[1], [0], [0], [1], [0, 0, 1, 1], [], []>} : vector<16x128xbf16>, vector<128x512xbf16>, vector<16x512xf32> -> vector<16x512xf32>
    %113 = arith.index_cast %110 : i32 to index
    %c0_58 = arith.constant 0 : index
    %114 = vector.load %arg12[%113, %c0_58] : memref<128x512xf32, #tpu.memory_space<vmem>>, vector<16x512xf32>
    %115 = arith.addf %112, %114 : vector<16x512xf32>
    %116 = arith.negf %115 : vector<16x512xf32>
    %117 = math.exp %116 : vector<16x512xf32>
    %cst_59 = arith.constant 1.000000e+00 : f32
    %118 = vector.broadcast %cst_59 : f32 to vector<16x512xf32>
    %119 = arith.addf %118, %117 : vector<16x512xf32>
    %120 = arith.divf %118, %119 : vector<16x512xf32>
    %121 = vector.extract_strided_slice %120 {offsets = [0, 0], sizes = [16, 128], strides = [1, 1]} : vector<16x512xf32> to vector<16x128xf32>
    %122 = vector.extract_strided_slice %120 {offsets = [0, 128], sizes = [16, 128], strides = [1, 1]} : vector<16x512xf32> to vector<16x128xf32>
    %123 = vector.extract_strided_slice %120 {offsets = [0, 256], sizes = [16, 128], strides = [1, 1]} : vector<16x512xf32> to vector<16x128xf32>
    %124 = vector.extract_strided_slice %120 {offsets = [0, 384], sizes = [16, 128], strides = [1, 1]} : vector<16x512xf32> to vector<16x128xf32>
    %125 = arith.mulf %121, %108 : vector<16x128xf32>
    %126 = arith.mulf %122, %124 : vector<16x128xf32>
    %127 = arith.addf %125, %126 : vector<16x128xf32>
    %128 = math.tanh %127 : vector<16x128xf32>
    %129 = arith.mulf %123, %128 : vector<16x128xf32>
    %c0_60 = arith.constant 0 : index
    %c0_61 = arith.constant 0 : index
    %130 = vector.load %arg11[%c0_60, %c0_61] : memref<16x128xf32, #tpu.memory_space<vmem>>, vector<16x128xf32>
    tpu.vector_store %arg11[%c0_60, %c0_61], %127 {strides = array<i32>} : memref<16x128xf32, #tpu.memory_space<vmem>>, vector<16x128xf32>,
    %c0_62 = arith.constant 0 : index
    %c0_63 = arith.constant 0 : index
    %131 = vector.load %arg10[%c0_62, %c0_63] : memref<16x128xf32, #tpu.memory_space<vmem>>, vector<16x128xf32>
    tpu.vector_store %arg10[%c0_62, %c0_63], %129 {strides = array<i32>} : memref<16x128xf32, #tpu.memory_space<vmem>>, vector<16x128xf32>,
    %132 = arith.truncf %129 : vector<16x128xf32> to vector<16x128xbf16>
    %133 = arith.index_cast %c2_i32 : i32 to index
    %c0_64 = arith.constant 0 : index
    %c0_65 = arith.constant 0 : index
    %134 = vector.load %arg9[%133, %c0_64, %c0_65] : memref<8x16x128xbf16, #tpu.memory_space<vmem>>, vector<1x16x128xbf16>
    %135 = vector.shape_cast %134 : vector<1x16x128xbf16> to vector<16x128xbf16>
    %136 = vector.shape_cast %132 : vector<16x128xbf16> to vector<1x16x128xbf16>
    tpu.vector_store %arg9[%133, %c0_64, %c0_65], %136 {strides = array<i32>} : memref<8x16x128xbf16, #tpu.memory_space<vmem>>, vector<1x16x128xbf16>,
    %c3_i32 = arith.constant 3 : i32
    %c0_66 = arith.constant 0 : index
    %c0_67 = arith.constant 0 : index
    %137 = vector.load %arg10[%c0_66, %c0_67] : memref<16x128xf32, #tpu.memory_space<vmem>>, vector<16x128xf32>
    %c0_68 = arith.constant 0 : index
    %c0_69 = arith.constant 0 : index
    %138 = vector.load %arg11[%c0_68, %c0_69] : memref<16x128xf32, #tpu.memory_space<vmem>>, vector<16x128xf32>
    %139 = arith.truncf %138 : vector<16x128xf32> to vector<16x128xbf16>
    %cst_70 = arith.constant dense<0.000000e+00> : vector<16x128xf32>
    %140 = tpu.matmul %139, %11, %cst_70 {dimension_numbers = #tpu.dot_dimension_numbers<[1], [0], [0], [1], [0, 0, 1, 1], [], []>} : vector<16x128xbf16>, vector<128x128xbf16>, vector<16x128xf32> -> vector<16x128xf32>
    %141 = vector.broadcast %12 : vector<1x128xf32> to vector<16x128xf32>
    %142 = arith.addf %140, %141 : vector<16x128xf32>
    %143 = math.tanh %142 : vector<16x128xf32>
    %144 = arith.index_cast %c3_i32 : i32 to index
    %c0_71 = arith.constant 0 : index
    %c0_72 = arith.constant 0 : index
    %145 = vector.load %arg3[%144, %c0_71, %c0_72] : memref<8x16x1xf32, #tpu.memory_space<vmem>>, vector<1x16x1xf32>
    %146 = vector.shape_cast %145 : vector<1x16x1xf32> to vector<16x1xf32>
    %147 = vector.broadcast %146 : vector<16x1xf32> to vector<16x128xf32>
    %148 = arith.mulf %143, %147 : vector<16x128xf32>
    %149 = arith.addf %138, %148 : vector<16x128xf32>
    %c16_i32_73 = arith.constant 16 : i32
    %150 = arith.muli %c3_i32, %c16_i32_73 : i32
    %151 = tpu.assume_multiple %150, 16 : i32
    %152 = arith.truncf %137 : vector<16x128xf32> to vector<16x128xbf16>
    %cst_74 = arith.constant dense<0.000000e+00> : vector<16x512xf32>
    %153 = tpu.matmul %152, %13, %cst_74 {dimension_numbers = #tpu.dot_dimension_numbers<[1], [0], [0], [1], [0, 0, 1, 1], [], []>} : vector<16x128xbf16>, vector<128x512xbf16>, vector<16x512xf32> -> vector<16x512xf32>
    %154 = arith.index_cast %151 : i32 to index
    %c0_75 = arith.constant 0 : index
    %155 = vector.load %arg12[%154, %c0_75] : memref<128x512xf32, #tpu.memory_space<vmem>>, vector<16x512xf32>
    %156 = arith.addf %153, %155 : vector<16x512xf32>
    %157 = arith.negf %156 : vector<16x512xf32>
    %158 = math.exp %157 : vector<16x512xf32>
    %cst_76 = arith.constant 1.000000e+00 : f32
    %159 = vector.broadcast %cst_76 : f32 to vector<16x512xf32>
    %160 = arith.addf %159, %158 : vector<16x512xf32>
    %161 = arith.divf %159, %160 : vector<16x512xf32>
    %162 = vector.extract_strided_slice %161 {offsets = [0, 0], sizes = [16, 128], strides = [1, 1]} : vector<16x512xf32> to vector<16x128xf32>
    %163 = vector.extract_strided_slice %161 {offsets = [0, 128], sizes = [16, 128], strides = [1, 1]} : vector<16x512xf32> to vector<16x128xf32>
    %164 = vector.extract_strided_slice %161 {offsets = [0, 256], sizes = [16, 128], strides = [1, 1]} : vector<16x512xf32> to vector<16x128xf32>
    %165 = vector.extract_strided_slice %161 {offsets = [0, 384], sizes = [16, 128], strides = [1, 1]} : vector<16x512xf32> to vector<16x128xf32>
    %166 = arith.mulf %162, %149 : vector<16x128xf32>
    %167 = arith.mulf %163, %165 : vector<16x128xf32>
    %168 = arith.addf %166, %167 : vector<16x128xf32>
    %169 = math.tanh %168 : vector<16x128xf32>
    %170 = arith.mulf %164, %169 : vector<16x128xf32>
    %c0_77 = arith.constant 0 : index
    %c0_78 = arith.constant 0 : index
    %171 = vector.load %arg11[%c0_77, %c0_78] : memref<16x128xf32, #tpu.memory_space<vmem>>, vector<16x128xf32>
    tpu.vector_store %arg11[%c0_77, %c0_78], %168 {strides = array<i32>} : memref<16x128xf32, #tpu.memory_space<vmem>>, vector<16x128xf32>,
    %c0_79 = arith.constant 0 : index
    %c0_80 = arith.constant 0 : index
    %172 = vector.load %arg10[%c0_79, %c0_80] : memref<16x128xf32, #tpu.memory_space<vmem>>, vector<16x128xf32>
    tpu.vector_store %arg10[%c0_79, %c0_80], %170 {strides = array<i32>} : memref<16x128xf32, #tpu.memory_space<vmem>>, vector<16x128xf32>,
    %173 = arith.truncf %170 : vector<16x128xf32> to vector<16x128xbf16>
    %174 = arith.index_cast %c3_i32 : i32 to index
    %c0_81 = arith.constant 0 : index
    %c0_82 = arith.constant 0 : index
    %175 = vector.load %arg9[%174, %c0_81, %c0_82] : memref<8x16x128xbf16, #tpu.memory_space<vmem>>, vector<1x16x128xbf16>
    %176 = vector.shape_cast %175 : vector<1x16x128xbf16> to vector<16x128xbf16>
    %177 = vector.shape_cast %173 : vector<16x128xbf16> to vector<1x16x128xbf16>
    tpu.vector_store %arg9[%174, %c0_81, %c0_82], %177 {strides = array<i32>} : memref<8x16x128xbf16, #tpu.memory_space<vmem>>, vector<1x16x128xbf16>,
    %c4_i32 = arith.constant 4 : i32
    %c0_83 = arith.constant 0 : index
    %c0_84 = arith.constant 0 : index
    %178 = vector.load %arg10[%c0_83, %c0_84] : memref<16x128xf32, #tpu.memory_space<vmem>>, vector<16x128xf32>
    %c0_85 = arith.constant 0 : index
    %c0_86 = arith.constant 0 : index
    %179 = vector.load %arg11[%c0_85, %c0_86] : memref<16x128xf32, #tpu.memory_space<vmem>>, vector<16x128xf32>
    %180 = arith.truncf %179 : vector<16x128xf32> to vector<16x128xbf16>
    %cst_87 = arith.constant dense<0.000000e+00> : vector<16x128xf32>
    %181 = tpu.matmul %180, %11, %cst_87 {dimension_numbers = #tpu.dot_dimension_numbers<[1], [0], [0], [1], [0, 0, 1, 1], [], []>} : vector<16x128xbf16>, vector<128x128xbf16>, vector<16x128xf32> -> vector<16x128xf32>
    %182 = vector.broadcast %12 : vector<1x128xf32> to vector<16x128xf32>
    %183 = arith.addf %181, %182 : vector<16x128xf32>
    %184 = math.tanh %183 : vector<16x128xf32>
    %185 = arith.index_cast %c4_i32 : i32 to index
    %c0_88 = arith.constant 0 : index
    %c0_89 = arith.constant 0 : index
    %186 = vector.load %arg3[%185, %c0_88, %c0_89] : memref<8x16x1xf32, #tpu.memory_space<vmem>>, vector<1x16x1xf32>
    %187 = vector.shape_cast %186 : vector<1x16x1xf32> to vector<16x1xf32>
    %188 = vector.broadcast %187 : vector<16x1xf32> to vector<16x128xf32>
    %189 = arith.mulf %184, %188 : vector<16x128xf32>
    %190 = arith.addf %179, %189 : vector<16x128xf32>
    %c16_i32_90 = arith.constant 16 : i32
    %191 = arith.muli %c4_i32, %c16_i32_90 : i32
    %192 = tpu.assume_multiple %191, 16 : i32
    %193 = arith.truncf %178 : vector<16x128xf32> to vector<16x128xbf16>
    %cst_91 = arith.constant dense<0.000000e+00> : vector<16x512xf32>
    %194 = tpu.matmul %193, %13, %cst_91 {dimension_numbers = #tpu.dot_dimension_numbers<[1], [0], [0], [1], [0, 0, 1, 1], [], []>} : vector<16x128xbf16>, vector<128x512xbf16>, vector<16x512xf32> -> vector<16x512xf32>
    %195 = arith.index_cast %192 : i32 to index
    %c0_92 = arith.constant 0 : index
    %196 = vector.load %arg12[%195, %c0_92] : memref<128x512xf32, #tpu.memory_space<vmem>>, vector<16x512xf32>
    %197 = arith.addf %194, %196 : vector<16x512xf32>
    %198 = arith.negf %197 : vector<16x512xf32>
    %199 = math.exp %198 : vector<16x512xf32>
    %cst_93 = arith.constant 1.000000e+00 : f32
    %200 = vector.broadcast %cst_93 : f32 to vector<16x512xf32>
    %201 = arith.addf %200, %199 : vector<16x512xf32>
    %202 = arith.divf %200, %201 : vector<16x512xf32>
    %203 = vector.extract_strided_slice %202 {offsets = [0, 0], sizes = [16, 128], strides = [1, 1]} : vector<16x512xf32> to vector<16x128xf32>
    %204 = vector.extract_strided_slice %202 {offsets = [0, 128], sizes = [16, 128], strides = [1, 1]} : vector<16x512xf32> to vector<16x128xf32>
    %205 = vector.extract_strided_slice %202 {offsets = [0, 256], sizes = [16, 128], strides = [1, 1]} : vector<16x512xf32> to vector<16x128xf32>
    %206 = vector.extract_strided_slice %202 {offsets = [0, 384], sizes = [16, 128], strides = [1, 1]} : vector<16x512xf32> to vector<16x128xf32>
    %207 = arith.mulf %203, %190 : vector<16x128xf32>
    %208 = arith.mulf %204, %206 : vector<16x128xf32>
    %209 = arith.addf %207, %208 : vector<16x128xf32>
    %210 = math.tanh %209 : vector<16x128xf32>
    %211 = arith.mulf %205, %210 : vector<16x128xf32>
    %c0_94 = arith.constant 0 : index
    %c0_95 = arith.constant 0 : index
    %212 = vector.load %arg11[%c0_94, %c0_95] : memref<16x128xf32, #tpu.memory_space<vmem>>, vector<16x128xf32>
    tpu.vector_store %arg11[%c0_94, %c0_95], %209 {strides = array<i32>} : memref<16x128xf32, #tpu.memory_space<vmem>>, vector<16x128xf32>,
    %c0_96 = arith.constant 0 : index
    %c0_97 = arith.constant 0 : index
    %213 = vector.load %arg10[%c0_96, %c0_97] : memref<16x128xf32, #tpu.memory_space<vmem>>, vector<16x128xf32>
    tpu.vector_store %arg10[%c0_96, %c0_97], %211 {strides = array<i32>} : memref<16x128xf32, #tpu.memory_space<vmem>>, vector<16x128xf32>,
    %214 = arith.truncf %211 : vector<16x128xf32> to vector<16x128xbf16>
    %215 = arith.index_cast %c4_i32 : i32 to index
    %c0_98 = arith.constant 0 : index
    %c0_99 = arith.constant 0 : index
    %216 = vector.load %arg9[%215, %c0_98, %c0_99] : memref<8x16x128xbf16, #tpu.memory_space<vmem>>, vector<1x16x128xbf16>
    %217 = vector.shape_cast %216 : vector<1x16x128xbf16> to vector<16x128xbf16>
    %218 = vector.shape_cast %214 : vector<16x128xbf16> to vector<1x16x128xbf16>
    tpu.vector_store %arg9[%215, %c0_98, %c0_99], %218 {strides = array<i32>} : memref<8x16x128xbf16, #tpu.memory_space<vmem>>, vector<1x16x128xbf16>,
    %c5_i32 = arith.constant 5 : i32
    %c0_100 = arith.constant 0 : index
    %c0_101 = arith.constant 0 : index
    %219 = vector.load %arg10[%c0_100, %c0_101] : memref<16x128xf32, #tpu.memory_space<vmem>>, vector<16x128xf32>
    %c0_102 = arith.constant 0 : index
    %c0_103 = arith.constant 0 : index
    %220 = vector.load %arg11[%c0_102, %c0_103] : memref<16x128xf32, #tpu.memory_space<vmem>>, vector<16x128xf32>
    %221 = arith.truncf %220 : vector<16x128xf32> to vector<16x128xbf16>
    %cst_104 = arith.constant dense<0.000000e+00> : vector<16x128xf32>
    %222 = tpu.matmul %221, %11, %cst_104 {dimension_numbers = #tpu.dot_dimension_numbers<[1], [0], [0], [1], [0, 0, 1, 1], [], []>} : vector<16x128xbf16>, vector<128x128xbf16>, vector<16x128xf32> -> vector<16x128xf32>
    %223 = vector.broadcast %12 : vector<1x128xf32> to vector<16x128xf32>
    %224 = arith.addf %222, %223 : vector<16x128xf32>
    %225 = math.tanh %224 : vector<16x128xf32>
    %226 = arith.index_cast %c5_i32 : i32 to index
    %c0_105 = arith.constant 0 : index
    %c0_106 = arith.constant 0 : index
    %227 = vector.load %arg3[%226, %c0_105, %c0_106] : memref<8x16x1xf32, #tpu.memory_space<vmem>>, vector<1x16x1xf32>
    %228 = vector.shape_cast %227 : vector<1x16x1xf32> to vector<16x1xf32>
    %229 = vector.broadcast %228 : vector<16x1xf32> to vector<16x128xf32>
    %230 = arith.mulf %225, %229 : vector<16x128xf32>
    %231 = arith.addf %220, %230 : vector<16x128xf32>
    %c16_i32_107 = arith.constant 16 : i32
    %232 = arith.muli %c5_i32, %c16_i32_107 : i32
    %233 = tpu.assume_multiple %232, 16 : i32
    %234 = arith.truncf %219 : vector<16x128xf32> to vector<16x128xbf16>
    %cst_108 = arith.constant dense<0.000000e+00> : vector<16x512xf32>
    %235 = tpu.matmul %234, %13, %cst_108 {dimension_numbers = #tpu.dot_dimension_numbers<[1], [0], [0], [1], [0, 0, 1, 1], [], []>} : vector<16x128xbf16>, vector<128x512xbf16>, vector<16x512xf32> -> vector<16x512xf32>
    %236 = arith.index_cast %233 : i32 to index
    %c0_109 = arith.constant 0 : index
    %237 = vector.load %arg12[%236, %c0_109] : memref<128x512xf32, #tpu.memory_space<vmem>>, vector<16x512xf32>
    %238 = arith.addf %235, %237 : vector<16x512xf32>
    %239 = arith.negf %238 : vector<16x512xf32>
    %240 = math.exp %239 : vector<16x512xf32>
    %cst_110 = arith.constant 1.000000e+00 : f32
    %241 = vector.broadcast %cst_110 : f32 to vector<16x512xf32>
    %242 = arith.addf %241, %240 : vector<16x512xf32>
    %243 = arith.divf %241, %242 : vector<16x512xf32>
    %244 = vector.extract_strided_slice %243 {offsets = [0, 0], sizes = [16, 128], strides = [1, 1]} : vector<16x512xf32> to vector<16x128xf32>
    %245 = vector.extract_strided_slice %243 {offsets = [0, 128], sizes = [16, 128], strides = [1, 1]} : vector<16x512xf32> to vector<16x128xf32>
    %246 = vector.extract_strided_slice %243 {offsets = [0, 256], sizes = [16, 128], strides = [1, 1]} : vector<16x512xf32> to vector<16x128xf32>
    %247 = vector.extract_strided_slice %243 {offsets = [0, 384], sizes = [16, 128], strides = [1, 1]} : vector<16x512xf32> to vector<16x128xf32>
    %248 = arith.mulf %244, %231 : vector<16x128xf32>
    %249 = arith.mulf %245, %247 : vector<16x128xf32>
    %250 = arith.addf %248, %249 : vector<16x128xf32>
    %251 = math.tanh %250 : vector<16x128xf32>
    %252 = arith.mulf %246, %251 : vector<16x128xf32>
    %c0_111 = arith.constant 0 : index
    %c0_112 = arith.constant 0 : index
    %253 = vector.load %arg11[%c0_111, %c0_112] : memref<16x128xf32, #tpu.memory_space<vmem>>, vector<16x128xf32>
    tpu.vector_store %arg11[%c0_111, %c0_112], %250 {strides = array<i32>} : memref<16x128xf32, #tpu.memory_space<vmem>>, vector<16x128xf32>,
    %c0_113 = arith.constant 0 : index
    %c0_114 = arith.constant 0 : index
    %254 = vector.load %arg10[%c0_113, %c0_114] : memref<16x128xf32, #tpu.memory_space<vmem>>, vector<16x128xf32>
    tpu.vector_store %arg10[%c0_113, %c0_114], %252 {strides = array<i32>} : memref<16x128xf32, #tpu.memory_space<vmem>>, vector<16x128xf32>,
    %255 = arith.truncf %252 : vector<16x128xf32> to vector<16x128xbf16>
    %256 = arith.index_cast %c5_i32 : i32 to index
    %c0_115 = arith.constant 0 : index
    %c0_116 = arith.constant 0 : index
    %257 = vector.load %arg9[%256, %c0_115, %c0_116] : memref<8x16x128xbf16, #tpu.memory_space<vmem>>, vector<1x16x128xbf16>
    %258 = vector.shape_cast %257 : vector<1x16x128xbf16> to vector<16x128xbf16>
    %259 = vector.shape_cast %255 : vector<16x128xbf16> to vector<1x16x128xbf16>
    tpu.vector_store %arg9[%256, %c0_115, %c0_116], %259 {strides = array<i32>} : memref<8x16x128xbf16, #tpu.memory_space<vmem>>, vector<1x16x128xbf16>,
    %c6_i32 = arith.constant 6 : i32
    %c0_117 = arith.constant 0 : index
    %c0_118 = arith.constant 0 : index
    %260 = vector.load %arg10[%c0_117, %c0_118] : memref<16x128xf32, #tpu.memory_space<vmem>>, vector<16x128xf32>
    %c0_119 = arith.constant 0 : index
    %c0_120 = arith.constant 0 : index
    %261 = vector.load %arg11[%c0_119, %c0_120] : memref<16x128xf32, #tpu.memory_space<vmem>>, vector<16x128xf32>
    %262 = arith.truncf %261 : vector<16x128xf32> to vector<16x128xbf16>
    %cst_121 = arith.constant dense<0.000000e+00> : vector<16x128xf32>
    %263 = tpu.matmul %262, %11, %cst_121 {dimension_numbers = #tpu.dot_dimension_numbers<[1], [0], [0], [1], [0, 0, 1, 1], [], []>} : vector<16x128xbf16>, vector<128x128xbf16>, vector<16x128xf32> -> vector<16x128xf32>
    %264 = vector.broadcast %12 : vector<1x128xf32> to vector<16x128xf32>
    %265 = arith.addf %263, %264 : vector<16x128xf32>
    %266 = math.tanh %265 : vector<16x128xf32>
    %267 = arith.index_cast %c6_i32 : i32 to index
    %c0_122 = arith.constant 0 : index
    %c0_123 = arith.constant 0 : index
    %268 = vector.load %arg3[%267, %c0_122, %c0_123] : memref<8x16x1xf32, #tpu.memory_space<vmem>>, vector<1x16x1xf32>
    %269 = vector.shape_cast %268 : vector<1x16x1xf32> to vector<16x1xf32>
    %270 = vector.broadcast %269 : vector<16x1xf32> to vector<16x128xf32>
    %271 = arith.mulf %266, %270 : vector<16x128xf32>
    %272 = arith.addf %261, %271 : vector<16x128xf32>
    %c16_i32_124 = arith.constant 16 : i32
    %273 = arith.muli %c6_i32, %c16_i32_124 : i32
    %274 = tpu.assume_multiple %273, 16 : i32
    %275 = arith.truncf %260 : vector<16x128xf32> to vector<16x128xbf16>
    %cst_125 = arith.constant dense<0.000000e+00> : vector<16x512xf32>
    %276 = tpu.matmul %275, %13, %cst_125 {dimension_numbers = #tpu.dot_dimension_numbers<[1], [0], [0], [1], [0, 0, 1, 1], [], []>} : vector<16x128xbf16>, vector<128x512xbf16>, vector<16x512xf32> -> vector<16x512xf32>
    %277 = arith.index_cast %274 : i32 to index
    %c0_126 = arith.constant 0 : index
    %278 = vector.load %arg12[%277, %c0_126] : memref<128x512xf32, #tpu.memory_space<vmem>>, vector<16x512xf32>
    %279 = arith.addf %276, %278 : vector<16x512xf32>
    %280 = arith.negf %279 : vector<16x512xf32>
    %281 = math.exp %280 : vector<16x512xf32>
    %cst_127 = arith.constant 1.000000e+00 : f32
    %282 = vector.broadcast %cst_127 : f32 to vector<16x512xf32>
    %283 = arith.addf %282, %281 : vector<16x512xf32>
    %284 = arith.divf %282, %283 : vector<16x512xf32>
    %285 = vector.extract_strided_slice %284 {offsets = [0, 0], sizes = [16, 128], strides = [1, 1]} : vector<16x512xf32> to vector<16x128xf32>
    %286 = vector.extract_strided_slice %284 {offsets = [0, 128], sizes = [16, 128], strides = [1, 1]} : vector<16x512xf32> to vector<16x128xf32>
    %287 = vector.extract_strided_slice %284 {offsets = [0, 256], sizes = [16, 128], strides = [1, 1]} : vector<16x512xf32> to vector<16x128xf32>
    %288 = vector.extract_strided_slice %284 {offsets = [0, 384], sizes = [16, 128], strides = [1, 1]} : vector<16x512xf32> to vector<16x128xf32>
    %289 = arith.mulf %285, %272 : vector<16x128xf32>
    %290 = arith.mulf %286, %288 : vector<16x128xf32>
    %291 = arith.addf %289, %290 : vector<16x128xf32>
    %292 = math.tanh %291 : vector<16x128xf32>
    %293 = arith.mulf %287, %292 : vector<16x128xf32>
    %c0_128 = arith.constant 0 : index
    %c0_129 = arith.constant 0 : index
    %294 = vector.load %arg11[%c0_128, %c0_129] : memref<16x128xf32, #tpu.memory_space<vmem>>, vector<16x128xf32>
    tpu.vector_store %arg11[%c0_128, %c0_129], %291 {strides = array<i32>} : memref<16x128xf32, #tpu.memory_space<vmem>>, vector<16x128xf32>,
    %c0_130 = arith.constant 0 : index
    %c0_131 = arith.constant 0 : index
    %295 = vector.load %arg10[%c0_130, %c0_131] : memref<16x128xf32, #tpu.memory_space<vmem>>, vector<16x128xf32>
    tpu.vector_store %arg10[%c0_130, %c0_131], %293 {strides = array<i32>} : memref<16x128xf32, #tpu.memory_space<vmem>>, vector<16x128xf32>,
    %296 = arith.truncf %293 : vector<16x128xf32> to vector<16x128xbf16>
    %297 = arith.index_cast %c6_i32 : i32 to index
    %c0_132 = arith.constant 0 : index
    %c0_133 = arith.constant 0 : index
    %298 = vector.load %arg9[%297, %c0_132, %c0_133] : memref<8x16x128xbf16, #tpu.memory_space<vmem>>, vector<1x16x128xbf16>
    %299 = vector.shape_cast %298 : vector<1x16x128xbf16> to vector<16x128xbf16>
    %300 = vector.shape_cast %296 : vector<16x128xbf16> to vector<1x16x128xbf16>
    tpu.vector_store %arg9[%297, %c0_132, %c0_133], %300 {strides = array<i32>} : memref<8x16x128xbf16, #tpu.memory_space<vmem>>, vector<1x16x128xbf16>,
    %c7_i32 = arith.constant 7 : i32
    %c0_134 = arith.constant 0 : index
    %c0_135 = arith.constant 0 : index
    %301 = vector.load %arg10[%c0_134, %c0_135] : memref<16x128xf32, #tpu.memory_space<vmem>>, vector<16x128xf32>
    %c0_136 = arith.constant 0 : index
    %c0_137 = arith.constant 0 : index
    %302 = vector.load %arg11[%c0_136, %c0_137] : memref<16x128xf32, #tpu.memory_space<vmem>>, vector<16x128xf32>
    %303 = arith.truncf %302 : vector<16x128xf32> to vector<16x128xbf16>
    %cst_138 = arith.constant dense<0.000000e+00> : vector<16x128xf32>
    %304 = tpu.matmul %303, %11, %cst_138 {dimension_numbers = #tpu.dot_dimension_numbers<[1], [0], [0], [1], [0, 0, 1, 1], [], []>} : vector<16x128xbf16>, vector<128x128xbf16>, vector<16x128xf32> -> vector<16x128xf32>
    %305 = vector.broadcast %12 : vector<1x128xf32> to vector<16x128xf32>
    %306 = arith.addf %304, %305 : vector<16x128xf32>
    %307 = math.tanh %306 : vector<16x128xf32>
    %308 = arith.index_cast %c7_i32 : i32 to index
    %c0_139 = arith.constant 0 : index
    %c0_140 = arith.constant 0 : index
    %309 = vector.load %arg3[%308, %c0_139, %c0_140] : memref<8x16x1xf32, #tpu.memory_space<vmem>>, vector<1x16x1xf32>
    %310 = vector.shape_cast %309 : vector<1x16x1xf32> to vector<16x1xf32>
    %311 = vector.broadcast %310 : vector<16x1xf32> to vector<16x128xf32>
    %312 = arith.mulf %307, %311 : vector<16x128xf32>
    %313 = arith.addf %302, %312 : vector<16x128xf32>
    %c16_i32_141 = arith.constant 16 : i32
    %314 = arith.muli %c7_i32, %c16_i32_141 : i32
    %315 = tpu.assume_multiple %314, 16 : i32
    %316 = arith.truncf %301 : vector<16x128xf32> to vector<16x128xbf16>
    %cst_142 = arith.constant dense<0.000000e+00> : vector<16x512xf32>
    %317 = tpu.matmul %316, %13, %cst_142 {dimension_numbers = #tpu.dot_dimension_numbers<[1], [0], [0], [1], [0, 0, 1, 1], [], []>} : vector<16x128xbf16>, vector<128x512xbf16>, vector<16x512xf32> -> vector<16x512xf32>
    %318 = arith.index_cast %315 : i32 to index
    %c0_143 = arith.constant 0 : index
    %319 = vector.load %arg12[%318, %c0_143] : memref<128x512xf32, #tpu.memory_space<vmem>>, vector<16x512xf32>
    %320 = arith.addf %317, %319 : vector<16x512xf32>
    %321 = arith.negf %320 : vector<16x512xf32>
    %322 = math.exp %321 : vector<16x512xf32>
    %cst_144 = arith.constant 1.000000e+00 : f32
    %323 = vector.broadcast %cst_144 : f32 to vector<16x512xf32>
    %324 = arith.addf %323, %322 : vector<16x512xf32>
    %325 = arith.divf %323, %324 : vector<16x512xf32>
    %326 = vector.extract_strided_slice %325 {offsets = [0, 0], sizes = [16, 128], strides = [1, 1]} : vector<16x512xf32> to vector<16x128xf32>
    %327 = vector.extract_strided_slice %325 {offsets = [0, 128], sizes = [16, 128], strides = [1, 1]} : vector<16x512xf32> to vector<16x128xf32>
    %328 = vector.extract_strided_slice %325 {offsets = [0, 256], sizes = [16, 128], strides = [1, 1]} : vector<16x512xf32> to vector<16x128xf32>
    %329 = vector.extract_strided_slice %325 {offsets = [0, 384], sizes = [16, 128], strides = [1, 1]} : vector<16x512xf32> to vector<16x128xf32>
    %330 = arith.mulf %326, %313 : vector<16x128xf32>
    %331 = arith.mulf %327, %329 : vector<16x128xf32>
    %332 = arith.addf %330, %331 : vector<16x128xf32>
    %333 = math.tanh %332 : vector<16x128xf32>
    %334 = arith.mulf %328, %333 : vector<16x128xf32>
    %c0_145 = arith.constant 0 : index
    %c0_146 = arith.constant 0 : index
    %335 = vector.load %arg11[%c0_145, %c0_146] : memref<16x128xf32, #tpu.memory_space<vmem>>, vector<16x128xf32>
    tpu.vector_store %arg11[%c0_145, %c0_146], %332 {strides = array<i32>} : memref<16x128xf32, #tpu.memory_space<vmem>>, vector<16x128xf32>,
    %c0_147 = arith.constant 0 : index
    %c0_148 = arith.constant 0 : index
    %336 = vector.load %arg10[%c0_147, %c0_148] : memref<16x128xf32, #tpu.memory_space<vmem>>, vector<16x128xf32>
    tpu.vector_store %arg10[%c0_147, %c0_148], %334 {strides = array<i32>} : memref<16x128xf32, #tpu.memory_space<vmem>>, vector<16x128xf32>,
    %337 = arith.truncf %334 : vector<16x128xf32> to vector<16x128xbf16>
    %338 = arith.index_cast %c7_i32 : i32 to index
    %c0_149 = arith.constant 0 : index
    %c0_150 = arith.constant 0 : index
    %339 = vector.load %arg9[%338, %c0_149, %c0_150] : memref<8x16x128xbf16, #tpu.memory_space<vmem>>, vector<1x16x128xbf16>
    %340 = vector.shape_cast %339 : vector<1x16x128xbf16> to vector<16x128xbf16>
    %341 = vector.shape_cast %337 : vector<16x128xbf16> to vector<1x16x128xbf16>
    tpu.vector_store %arg9[%338, %c0_149, %c0_150], %341 {strides = array<i32>} : memref<8x16x128xbf16, #tpu.memory_space<vmem>>, vector<1x16x128xbf16>,
    %c8_i32 = arith.constant 8 : i32
    return
  }
  func.func @transform_0(%arg0: i32, %arg1: i32) -> (i32, i32, i32) {
    %c0_i32 = arith.constant 0 : i32
    %c0_i32_0 = arith.constant 0 : i32
    return %arg1, %arg0, %c0_i32 : i32, i32, i32
  }
  func.func @transform_1(%arg0: i32, %arg1: i32) -> (i32, i32, i32) {
    %c0_i32 = arith.constant 0 : i32
    %c0_i32_0 = arith.constant 0 : i32
    return %arg1, %arg0, %c0_i32 : i32, i32, i32
  }
  func.func @transform_2(%arg0: i32, %arg1: i32) -> (i32, i32) {
    %c0_i32 = arith.constant 0 : i32
    %c0_i32_0 = arith.constant 0 : i32
    %c0_i32_1 = arith.constant 0 : i32
    return %c0_i32, %c0_i32_0 : i32, i32
  }
  func.func @transform_3(%arg0: i32, %arg1: i32) -> (i32, i32) {
    %c0_i32 = arith.constant 0 : i32
    %c0_i32_0 = arith.constant 0 : i32
    %c0_i32_1 = arith.constant 0 : i32
    return %c0_i32, %c0_i32_0 : i32, i32
  }
  func.func @transform_4(%arg0: i32, %arg1: i32) -> (i32, i32) {
    %c0_i32 = arith.constant 0 : i32
    %c0_i32_0 = arith.constant 0 : i32
    %c0_i32_1 = arith.constant 0 : i32
    return %c0_i32, %c0_i32_0 : i32, i32
  }
  func.func @transform_5(%arg0: i32, %arg1: i32) -> (i32, i32) {
    %c0_i32 = arith.constant 0 : i32
    %c0_i32_0 = arith.constant 0 : i32
    %c0_i32_1 = arith.constant 0 : i32
    return %c0_i32, %c0_i32_0 : i32, i32
  }
  func.func @transform_6(%arg0: i32, %arg1: i32) -> (i32, i32) {
    %c0_i32 = arith.constant 0 : i32
    %c0_i32_0 = arith.constant 0 : i32
    %c0_i32_1 = arith.constant 0 : i32
    return %c0_i32, %c0_i32_0 : i32, i32
  }
  func.func @transform_7(%arg0: i32, %arg1: i32) -> (i32, i32, i32) {
    %c0_i32 = arith.constant 0 : i32
    %c0_i32_0 = arith.constant 0 : i32
    return %arg1, %arg0, %c0_i32 : i32, i32, i32
  }
}

</mosaic_0001>

<bundles_post_ra>
// kernel: time_lstm_forward.1
= control target key start
LH: loop header
LB: loop body
LE: loop exit
PB: predicated region body
PF: predicated region fallthrough
CT: control target
= control target key end

     0   :  { %v5292_v1 = vmov 0   ;;  %v5290_v36 = vmov 0.0   ;;  %vm3768_vm0 = vmmov 0   ;;  %s5282_s5 = inlined_call_operand.vmem [shape: bf16[128,512], index: 5, kind: input, shape index: {}]   ;;  %s5283_s0 = inlined_call_operand.vmem [shape: bf16[8,16,128], index: 0, kind: input, shape index: {}]   ;;  %s5284_s2 = inlined_call_operand.vmem [shape: bf16[128,128], index: 2, kind: input, shape index: {}]   ;;  %s5285_s4 = inlined_call_operand.vmem [shape: bf16[128,512], index: 4, kind: input, shape index: {}]   ;;  %s5286_s1 = inlined_call_operand.vmem [shape: f32[8,16,1], index: 1, kind: input, shape index: {}]   ;;  %s5287_s6 = inlined_call_operand.vmem [shape: f32[1,512], index: 6, kind: input, shape index: {}]   ;;  %s5288_s3 = inlined_call_operand.vmem [shape: f32[1,128], index: 3, kind: input, shape index: {}]   ;;  %s5289_s7 = inlined_call_operand.vmem [shape: bf16[8,16,128], index: 7, kind: output, shape index: {}]  }
   0x1   :  { %v3253_v0 = vld [vmem:[%s5282_s5 + $0xe4] ss:$16 sps:$4 sm:$0xff]   ;;  %345 = vmatprep.mubr.bf16.mxu0 %v5292_v1  ;;  %458 = vmatprep.mubr.bf16.mxu1 %v5292_v1  ;;  %v3255_v2 = vld [vmem:[%s5282_s5 + $0xec] ss:$16 sps:$4 sm:$0xff]   ;;  %v3257_v3 = vld [vmem:[%s5282_s5 + $0xe0] ss:$16 sps:$4 sm:$0xff]  }
   0x2   :  { %3251 = vset.pattern.permute.xlu0 %v5292_v1  ;;  %3252 = vset.pattern.permute.xlu1 %v5292_v1  ;;  %v3258_v4 = vld [vmem:[%s5282_s5 + $0xe8] ss:$16 sps:$4 sm:$0xff]   ;;  %v3259_v5 = vld [vmem:[%s5282_s5 + $0xc4] ss:$16 sps:$4 sm:$0xff]   ;;  %v3261_v6 = vld [vmem:[%s5282_s5 + $0xcc] ss:$16 sps:$4 sm:$0xff]  }
   0x3   :  { %313 = vmatprep.subr.bf16.mxu0 %v3253_v0  ;;  %426 = vmatprep.subr.bf16.mxu1 %v3255_v2  ;;  %v3263_v7 = vld [vmem:[%s5282_s5 + $0xc0] ss:$16 sps:$4 sm:$0xff]   ;;  %v3264_v8 = vld [vmem:[%s5282_s5 + $0xc8] ss:$16 sps:$4 sm:$0xff]   ;;  %v3265_v9 = vld [vmem:[%s5282_s5 + $0xa4] ss:$16 sps:$4 sm:$0xff]  }
   0x4   :  { %314 = vmatpush1.bf16.msra.mxu0 %v3257_v3  ;;  %427 = vmatpush1.bf16.msra.mxu1 %v3258_v4  ;;  %v3267_v10 = vld [vmem:[%s5282_s5 + $0xac] ss:$16 sps:$4 sm:$0xff]   ;;  %v3269_v11 = vld [vmem:[%s5282_s5 + $0xa0] ss:$16 sps:$4 sm:$0xff]   ;;  %v3270_v12 = vld [vmem:[%s5282_s5 + $0xa8] ss:$16 sps:$4 sm:$0xff]  }
   0x5   :  { %315 = vmatprep.subr.bf16.mxu0 %v3259_v5  ;;  %428 = vmatprep.subr.bf16.mxu1 %v3261_v6  ;;  %v3271_v13 = vld [vmem:[%s5282_s5 + $0x84] ss:$16 sps:$4 sm:$0xff]   ;;  %v3273_v14 = vld [vmem:[%s5282_s5 + $0x8c] ss:$16 sps:$4 sm:$0xff]   ;;  %v3275_v15 = vld [vmem:[%s5282_s5 + $0x80] ss:$16 sps:$4 sm:$0xff]  }
   0x6   :  { %v3276_v16 = vld [vmem:[%s5282_s5 + $0x88] ss:$16 sps:$4 sm:$0xff]   ;;  %v3277_v17 = vld [vmem:[%s5282_s5 + $0x64] ss:$16 sps:$4 sm:$0xff]   ;;  %v3279_v18 = vld [vmem:[%s5282_s5 + $0x6c] ss:$16 sps:$4 sm:$0xff]  }
   0x7   :  { %v3281_v19 = vld [vmem:[%s5282_s5 + $0x60] ss:$16 sps:$4 sm:$0xff]   ;;  %v3282_v20 = vld [vmem:[%s5282_s5 + $0x68] ss:$16 sps:$4 sm:$0xff]   ;;  %v3283_v21 = vld [vmem:[%s5282_s5 + $0x44] ss:$16 sps:$4 sm:$0xff]  }
   0x8   :  { %316 = vmatpush1.bf16.msra.mxu0 %v3263_v7  ;;  %429 = vmatpush1.bf16.msra.mxu1 %v3264_v8  ;;  %v3285_v22 = vld [vmem:[%s5282_s5 + $0x4c] ss:$16 sps:$4 sm:$0xff]   ;;  %v3287_v23 = vld [vmem:[%s5282_s5 + $0x40] ss:$16 sps:$4 sm:$0xff]   ;;  %v3288_v24 = vld [vmem:[%s5282_s5 + $0x48] ss:$16 sps:$4 sm:$0xff]  }
   0x9   :  { %317 = vmatprep.subr.bf16.mxu0 %v3265_v9  ;;  %430 = vmatprep.subr.bf16.mxu1 %v3267_v10  ;;  %v3289_v25 = vld [vmem:[%s5282_s5 + $0x24] ss:$16 sps:$4 sm:$0xff]   ;;  %v3291_v26 = vld [vmem:[%s5282_s5 + $0x2c] ss:$16 sps:$4 sm:$0xff]   ;;  %v3293_v27 = vld [vmem:[%s5282_s5 + $0x20] ss:$16 sps:$4 sm:$0xff]  }
   0xa   :  { %v3294_v28 = vld [vmem:[%s5282_s5 + $0x28] ss:$16 sps:$4 sm:$0xff]   ;;  %v3295_v29 = vld [vmem:[%s5282_s5 + $0x4] ss:$16 sps:$4 sm:$0xff]   ;;  %v3297_v30 = vld [vmem:[%s5282_s5 + $0xc] ss:$16 sps:$4 sm:$0xff]  }
   0xb   :  { %v3299_v31 = vld [vmem:[%s5282_s5] ss:$16 sps:$4 sm:$0xff]   ;;  %v3300_v32 = vld [vmem:[%s5282_s5 + $0x8] ss:$16 sps:$4 sm:$0xff]   ;;  %v3913_v33 = vld [vmem:[%s5285_s4 + $0xe4] ss:$16 sps:$4 sm:$0xff]  }
   0xc   :  { %318 = vmatpush1.bf16.msra.mxu0 %v3269_v11  ;;  %431 = vmatpush1.bf16.msra.mxu1 %v3270_v12  ;;  %v3301_v34 = vld [vmem:[%s5283_s0] sm:$0xff]   ;;  %v3921_v35 = vld [vmem:[%s5284_s2 + $0x38] sm:$0xff]   ;;  %v3940_v39 = vld [vmem:[%s5284_s2 + $0x30] sm:$0xff]   ;;  %v3769_v12 = vmov 0.0|0.0  }
   0xd   :  { %319 = vmatprep.subr.bf16.mxu0 %v3271_v13  ;;  %432 = vmatprep.subr.bf16.mxu1 %v3273_v14  ;;  %v3928_v37 = vld [vmem:[%s5285_s4 + $0xe0] ss:$16 sps:$4 sm:$0xff]   ;;  %v3933_v38 = vld [vmem:[%s5285_s4 + $0xc4] ss:$16 sps:$4 sm:$0xff]   ;;  %v3303_v41 = vld [vmem:[%s5283_s0 + $0x8] sm:$0xff]  }
   0xe   :  { %v3948_v40 = vld [vmem:[%s5285_s4 + $0xc0] ss:$16 sps:$4 sm:$0xff]   ;;  %v3959_v42 = vld [vmem:[%s5284_s2 + $0x28] sm:$0xff]   ;;  %v3964_v43 = vld [vmem:[%s5285_s4 + $0xa4] ss:$16 sps:$4 sm:$0xff]  }
   0xf   :  { %v3970_v44 = vld [vmem:[%s5285_s4 + $0xa0] ss:$16 sps:$4 sm:$0xff]   ;;  %v3975_v45 = vld [vmem:[%s5285_s4 + $0x84] ss:$16 sps:$4 sm:$0xff]   ;;  %v4000_v49 = vld [vmem:[%s5284_s2 + $0x18] sm:$0xff]  }
  0x10   :  { %320 = vmatpush1.bf16.msra.mxu0 %v3275_v15  ;;  %433 = vmatpush1.bf16.msra.mxu1 %v3276_v16  ;;  %v3983_v46 = vld [vmem:[%s5284_s2 + $0x20] sm:$0xff]   ;;  %v3305_v48 = vld [vmem:[%s5283_s0 + $0x10] sm:$0xff]   ;;  %v3307_v55 = vld [vmem:[%s5283_s0 + $0x18] sm:$0xff]  }
  0x11   :  { %321 = vmatprep.subr.bf16.mxu0 %v3277_v17  ;;  %434 = vmatprep.subr.bf16.mxu1 %v3279_v18  ;;  %v3991_v47 = vld [vmem:[%s5285_s4 + $0x80] ss:$16 sps:$4 sm:$0xff]   ;;  %v4006_v50 = vld [vmem:[%s5285_s4 + $0x64] ss:$16 sps:$4 sm:$0xff]   ;;  %v4043_v56 = vld [vmem:[%s5284_s2 + $0x8] sm:$0xff]  }
  0x12   :  { %v4013_v51 = vld [vmem:[%s5285_s4 + $0x60] ss:$16 sps:$4 sm:$0xff]   ;;  %v4018_v52 = vld [vmem:[%s5285_s4 + $0x44] ss:$16 sps:$4 sm:$0xff]   ;;  %v4085_v63 = vld [vmem:[%s5285_s4 + $0xec] ss:$16 sps:$4 sm:$0xff]  }
  0x13   :  { %v4026_v53 = vld [vmem:[%s5284_s2 + $0x10] sm:$0xff]   ;;  %v754_v60 = vld [vmem:[%s5286_s1] sm:$0xff]  ;;  %v755_v2 = vld [vmem:[%s5286_s1 + $0x8] sm:$0xff] }
  0x14   :  { %322 = vmatpush1.bf16.msra.mxu0 %v3281_v19  ;;  %435 = vmatpush1.bf16.msra.mxu1 %v3282_v20  ;;  %v4034_v54 = vld [vmem:[%s5285_s4 + $0x40] ss:$16 sps:$4 sm:$0xff]   ;;  %v4049_v57 = vld [vmem:[%s5285_s4 + $0x24] ss:$16 sps:$4 sm:$0xff]   ;;  %v3317_v4 = vld [vmem:[%s5283_s0 + $0x28] sm:$0xff]  }
  0x15   :  { %323 = vmatprep.subr.bf16.mxu0 %v3283_v21  ;;  %436 = vmatprep.subr.bf16.mxu1 %v3285_v22  ;;  %5308 = vst [vmem:[#allocation5_spill] sm:$0xff] %v4049_v57  ;;  %v4056_v58 = vld [vmem:[%s5285_s4 + $0x20] ss:$16 sps:$4 sm:$0xff]   ;;  %v4061_v59 = vld [vmem:[%s5285_s4 + $0x4] ss:$16 sps:$4 sm:$0xff]   ;;  %v3333_v9 = vld [vmem:[%s5283_s0 + $0x38] sm:$0xff]  }
  0x16   :  { %5309 = vst [vmem:[#allocation6_spill] sm:$0xff] %v4056_v58  ;;  %5310 = vst [vmem:[#allocation7_spill] sm:$0xff] %v4061_v59  ;;  %v4073_v61 = vld [vmem:[%s5284_s2] sm:$0xff]   ;;  %758 = vperm.xlu0 %3251, %v754_v60   ;;  %v2882_v5 = vld [vmem:[%s5286_s1 + $0x30] sm:$0xff] }
  0x17   :  { %v4080_v62 = vld [vmem:[%s5285_s4] ss:$16 sps:$4 sm:$0xff]   ;;  %v4131_v10 = vld [vmem:[%s5285_s4 + $0xe8] ss:$16 sps:$4 sm:$0xff]   ;;  %v4136_v11 = vld [vmem:[%s5285_s4 + $0xcc] ss:$16 sps:$4 sm:$0xff]  }
  0x18   :  { %324 = vmatpush1.bf16.msra.mxu0 %v3287_v23  ;;  %437 = vmatpush1.bf16.msra.mxu1 %v3288_v24  ;;  %5311 = vst [vmem:[#allocation8_spill] sm:$0xff] %v4080_v62  ;;  %v3311_v0 = vld [vmem:[%s5283_s0 + $0x20] sm:$0xff]   ;;  %v3325_v7 = vld [vmem:[%s5283_s0 + $0x30] sm:$0xff]   ;;  %v4142_v13 = vld [vmem:[%s5285_s4 + $0xc8] ss:$16 sps:$4 sm:$0xff]  }
  0x19   :  { %325 = vmatprep.subr.bf16.mxu0 %v3289_v25  ;;  %438 = vmatprep.subr.bf16.mxu1 %v3291_v26  ;;  %v2868_v3 = vld [vmem:[%s5286_s1 + $0x20] sm:$0xff]  ;;  %v2910_v8 = vld [vmem:[%s5286_s1 + $0x50] sm:$0xff]  ;;  %v4149_v14 = vld [vmem:[%s5285_s4 + $0xac] ss:$16 sps:$4 sm:$0xff]  }
  0x1a   :  { %763 = vperm.xlu0 %3251, %v755_v2   ;;  %v2896_v6 = vld [vmem:[%s5286_s1 + $0x40] sm:$0xff]  ;;  %v4162_v16 = vld [vmem:[%s5285_s4 + $0xa8] ss:$16 sps:$4 sm:$0xff]   ;;  %v4168_v17 = vld [vmem:[%s5285_s4 + $0x8c] ss:$16 sps:$4 sm:$0xff]  }
  0x1b   :  { %v2924_v15 = vld [vmem:[%s5286_s1 + $0x60] sm:$0xff]  ;;  %v2938_v18 = vld [vmem:[%s5286_s1 + $0x70] sm:$0xff]  ;;  %v4179_v19 = vld [vmem:[%s5285_s4 + $0x88] ss:$16 sps:$4 sm:$0xff]  }
  0x1c   :  { %326 = vmatpush1.bf16.msra.mxu0 %v3293_v27  ;;  %439 = vmatpush1.bf16.msra.mxu1 %v3294_v28  ;;  %v4185_v20 = vld [vmem:[%s5285_s4 + $0x6c] ss:$16 sps:$4 sm:$0xff]   ;;  %v4193_v21 = vld [vmem:[%s5285_s4 + $0x68] ss:$16 sps:$4 sm:$0xff]   ;;  %v85_v28 = vlaneseq }
  0x1d   :  { %327 = vmatprep.subr.bf16.mxu0 %v3295_v29  ;;  %440 = vmatprep.subr.bf16.mxu1 %v3297_v30  ;;  %v4199_v22 = vld [vmem:[%s5285_s4 + $0x4c] ss:$16 sps:$4 sm:$0xff]   ;;  %v4207_v23 = vld [vmem:[%s5285_s4 + $0x48] ss:$16 sps:$4 sm:$0xff]  }
  0x1e   :  { %1389 = vperm.xlu0 %3251, %v2868_v3   ;;  %v4213_v24 = vld [vmem:[%s5285_s4 + $0x2c] ss:$16 sps:$4 sm:$0xff]   ;;  %v4221_v25 = vld [vmem:[%s5285_s4 + $0x28] ss:$16 sps:$4 sm:$0xff]   ;;  %v86_v29 = vshrl.u32 %v85_v28, 7 }
  0x1f   :  { %v4227_v26 = vld [vmem:[%s5285_s4 + $0xc] ss:$16 sps:$4 sm:$0xff]   ;;  %v4235_v27 = vld [vmem:[%s5285_s4 + $0x8] ss:$16 sps:$4 sm:$0xff]  }
  0x20   :  { %328 = vmatpush1.bf16.msra.mxu0 %v3299_v31  ;;  %441 = vmatpush1.bf16.msra.mxu1 %v3300_v32  ;;  %v99_v2 = vsub.s32 3, %v86_v29 }
  0x21   :  { %3087 = vmatprep.subr.bf16.mxu0 %v5290_v36  ;;  %942 = vmatprep.subr.bf16.mxu1 %v3913_v33 }
  0x22   :  { %1625 = vperm.xlu0 %3251, %v2882_v5  }
  0x23   :  { %346 = vmatmul.mubr.bf16.vlgmr.msra.gmra.mxu0 %v3301_v34  ;;  %459 = vmatmul.mubr.bf16.vlgmr.msra.gmra.mxu1 %v3301_v34  ;;  %v87_v34 = vsub.s32 0, %v86_v29 }
  0x24   :  { %3088 = vmatpush3.bf16.msra.mxu0 %v3921_v35  ;;  %355 = vmatprep.mubr.bf16.mxu0 %v5292_v1 }
  0x25   :  { %468 = vmatprep.mubr.bf16.mxu1 %v5292_v1  ;;  %3089 = vmatprep.subr.bf16.mxu0 %v5290_v36 }
  0x26   :  { %943 = vmatpush1.bf16.msra.mxu1 %v3928_v37  ;;  %1861 = vperm.xlu0 %3251, %v2896_v6  }
  0x27   :  { %944 = vmatprep.subr.bf16.mxu1 %v3933_v38 }
  0x28   :  { %3090 = vmatpush3.bf16.msra.mxu0 %v3940_v39 }
  0x29   :  { %3091 = vmatprep.subr.bf16.mxu0 %v5290_v36 }
  0x2a   :  { %945 = vmatpush1.bf16.msra.mxu1 %v3948_v40  ;;  %2097 = vperm.xlu0 %3251, %v2910_v8  }
  0x2b   :  { %356 = vmatmul.mubr.bf16.gmra.mxu0 %v3303_v41  ;;  %469 = vmatmul.mubr.bf16.gmra.mxu1 %v3303_v41  ;;  %v95_v41 = vsub.s32 2, %v86_v29 }
  0x2c   :  { %365 = vmatprep.mubr.bf16.mxu0 %v5292_v1  ;;  %478 = vmatprep.mubr.bf16.mxu1 %v5292_v1 }
  0x2d   :  { %3092 = vmatpush3.bf16.msra.mxu0 %v3959_v42  ;;  %946 = vmatprep.subr.bf16.mxu1 %v3964_v43 }
  0x2e   :  { %3093 = vmatprep.subr.bf16.mxu0 %v5290_v36  ;;  %947 = vmatpush1.bf16.msra.mxu1 %v3970_v44 }
  0x2f   :  { %948 = vmatprep.subr.bf16.mxu1 %v3975_v45  ;;  %2333 = vperm.xlu0 %3251, %v2924_v15  }
  0x31   :  { %3094 = vmatpush3.bf16.msra.mxu0 %v3983_v46 }
  0x32   :  { %3095 = vmatprep.subr.bf16.mxu0 %v5290_v36  ;;  %949 = vmatpush1.bf16.msra.mxu1 %v3991_v47 }
  0x33   :  { %366 = vmatmul.mubr.bf16.gmra.mxu0 %v3305_v48  ;;  %479 = vmatmul.mubr.bf16.gmra.mxu1 %v3305_v48  ;;  %v83_v48 = vld [vmem:[%s5287_s6] sm:$0xf] }
  0x34   :  { %375 = vmatprep.mubr.bf16.mxu0 %v5292_v1  ;;  %488 = vmatprep.mubr.bf16.mxu1 %v5292_v1  ;;  %v4280_v5 = vrot.slane %v83_v48, %v87_v34  ;;  %v4282_v6 = vrot.slane %v83_v48, %v95_v41 }
  0x35   :  { %3096 = vmatpush3.bf16.msra.mxu0 %v4000_v49  ;;  %950 = vmatprep.subr.bf16.mxu1 %v4006_v50 }
  0x36   :  { %3097 = vmatprep.subr.bf16.mxu0 %v5290_v36  ;;  %951 = vmatpush1.bf16.msra.mxu1 %v4013_v51 }
  0x37   :  { %952 = vmatprep.subr.bf16.mxu1 %v4018_v52  ;;  %2569 = vperm.xlu0 %3251, %v2938_v18  }
  0x39   :  { %3098 = vmatpush3.bf16.msra.mxu0 %v4026_v53 }
  0x3a   :  { %3099 = vmatprep.subr.bf16.mxu0 %v5290_v36  ;;  %953 = vmatpush1.bf16.msra.mxu1 %v4034_v54 }
  0x3b   :  { %376 = vmatmul.mubr.bf16.gmra.mxu0 %v3307_v55  ;;  %489 = vmatmul.mubr.bf16.gmra.mxu1 %v3307_v55 }
  0x3c   :  { %385 = vmatprep.mubr.bf16.mxu0 %v5292_v1  ;;  %498 = vmatprep.mubr.bf16.mxu1 %v5292_v1 }
  0x3d   :  { %3100 = vmatpush3.bf16.msra.mxu0 %v4043_v56  ;;  %954 = vmatprep.subr.bf16.mxu1 %v4049_v57 }
  0x3e   :  { %3101 = vmatprep.subr.bf16.mxu0 %v5290_v36  ;;  %955 = vmatpush1.bf16.msra.mxu1 %v4056_v58 }
  0x3f   :  { %956 = vmatprep.subr.bf16.mxu1 %v4061_v59 }
  0x41   :  { %3102 = vmatpush3.bf16.msra.mxu0 %v4073_v61 }
  0x42   :  { %957 = vmatpush1.bf16.msra.mxu1 %v4080_v62  ;;  %985 = vmatprep.subr.bf16.mxu0 %v4085_v63 }
  0x43   :  { %386 = vmatmul.mubr.bf16.gmra.mxu0 %v3311_v0  ;;  %499 = vmatmul.mubr.bf16.gmra.mxu1 %v3311_v0  ;;  %v91_v0 = vsub.s32 1, %v86_v29 }
  0x44   :  { %395 = vmatprep.mubr.bf16.mxu0 %v5292_v1  ;;  %508 = vmatprep.mubr.bf16.mxu1 %v5292_v1 }
  0x45   :  { %3107 = vmatprep.subr.bf16.mxu1 %v5290_v36 }
  0x4b   :  { %396 = vmatmul.mubr.bf16.gmra.mxu0 %v3317_v4  ;;  %509 = vmatmul.mubr.bf16.gmra.mxu1 %v3317_v4 }
  0x4c   :  { %405 = vmatprep.mubr.bf16.mxu0 %v5292_v1  ;;  %518 = vmatprep.mubr.bf16.mxu1 %v5292_v1 }
  0x53   :  { %406 = vmatmul.mubr.bf16.gmra.mxu0 %v3325_v7  ;;  %519 = vmatmul.mubr.bf16.gmra.mxu1 %v3325_v7 }
  0x54   :  { %415 = vmatprep.mubr.bf16.mxu0 %v5292_v1  ;;  %528 = vmatprep.mubr.bf16.mxu1 %v5292_v1 }
  0x5b   :  { %416 = vmatmul.mubr.bf16.gmra.mxu0 %v3333_v9  ;;  %529 = vmatmul.mubr.bf16.gmra.mxu1 %v3333_v9  ;;  %v4284_v9 = vrot.slane %v83_v48, %v91_v0 }
  0x5c   :  { %3103 = vmatprep.mubr.msk.bf16.mxu0 %vm3768_vm0, %v5290_v36  ;;  %974 = vmatprep.mubr.bf16.mxu1 %v5292_v1 }
  0x63   :  { %3104 = vmatmul.mubr.bf16.vlgmr.msra.gmra.mxu0 %v3769_v12  ;;  %975 = vmatmul.mubr.bf16.vlgmr.msra.gmra.mxu1 %v3769_v12 }
  0x64   :  { %986 = vmatpush1.bf16.msra.mxu0 %v4131_v10  ;;  %1017 = vmatprep.mubr.bf16.mxu0 %v5292_v1 }
  0x65   :  { %987 = vmatprep.subr.bf16.mxu0 %v4136_v11  ;;  %3108 = vmatpush3.bf16.msra.mxu1 %v3921_v35 }
  0x66   :  { %3109 = vmatprep.subr.bf16.mxu1 %v5290_v36  ;;  %3123 = vmatprep.mubr.msk.bf16.mxu1 %vm3768_vm0, %v5290_v36 }
  0x68   :  { %988 = vmatpush1.bf16.msra.mxu0 %v4142_v13 }
  0x69   :  { %989 = vmatprep.subr.bf16.mxu0 %v4149_v14  ;;  %3110 = vmatpush3.bf16.msra.mxu1 %v3940_v39 }
  0x6a   :  { %3111 = vmatprep.subr.bf16.mxu1 %v5290_v36 }
  0x6c   :  { %990 = vmatpush1.bf16.msra.mxu0 %v4162_v16 }
  0x6d   :  { %991 = vmatprep.subr.bf16.mxu0 %v4168_v17  ;;  %3112 = vmatpush3.bf16.msra.mxu1 %v3959_v42 }
  0x6e   :  { %3113 = vmatprep.subr.bf16.mxu1 %v5290_v36 }
  0x70   :  { %992 = vmatpush1.bf16.msra.mxu0 %v4179_v19 }
  0x71   :  { %993 = vmatprep.subr.bf16.mxu0 %v4185_v20  ;;  %3114 = vmatpush3.bf16.msra.mxu1 %v3983_v46 }
  0x72   :  { %3115 = vmatprep.subr.bf16.mxu1 %v5290_v36 }
  0x74   :  { %994 = vmatpush1.bf16.msra.mxu0 %v4193_v21 }
  0x75   :  { %995 = vmatprep.subr.bf16.mxu0 %v4199_v22  ;;  %3116 = vmatpush3.bf16.msra.mxu1 %v4000_v49 }
  0x76   :  { %3117 = vmatprep.subr.bf16.mxu1 %v5290_v36 }
  0x78   :  { %996 = vmatpush1.bf16.msra.mxu0 %v4207_v23 }
  0x79   :  { %997 = vmatprep.subr.bf16.mxu0 %v4213_v24  ;;  %3118 = vmatpush3.bf16.msra.mxu1 %v4026_v53 }
  0x7a   :  { %3119 = vmatprep.subr.bf16.mxu1 %v5290_v36 }
  0x7c   :  { %998 = vmatpush1.bf16.msra.mxu0 %v4221_v25 }
  0x7d   :  { %999 = vmatprep.subr.bf16.mxu0 %v4227_v26  ;;  %3120 = vmatpush3.bf16.msra.mxu1 %v4043_v56 }
  0x7e   :  { %3121 = vmatprep.subr.bf16.mxu1 %v5290_v36 }
  0x80   :  { %1000 = vmatpush1.bf16.msra.mxu0 %v4235_v27 }
  0x81   :  { %1177 = vmatprep.subr.bf16.mxu0 %v3913_v33  ;;  %3122 = vmatpush3.bf16.msra.mxu1 %v4073_v61 }
  0x82   :  { %1220 = vmatprep.subr.bf16.mxu1 %v4085_v63 }
  0x83   :  { %1018 = vmatmul.mubr.bf16.vlgmr.msra.gmra.mxu0 %v3769_v12  ;;  %v4286_v12 = vrot.slane %v83_v48, %v99_v2 }
  0x84   :  { %1178 = vmatpush1.bf16.msra.mxu0 %v3928_v37  ;;  %1209 = vmatprep.mubr.bf16.mxu0 %v5292_v1 }
  0x85   :  { %1179 = vmatprep.subr.bf16.mxu0 %v3933_v38 }
  0x88   :  { %1180 = vmatpush1.bf16.msra.mxu0 %v3948_v40 }
  0x89   :  { %1181 = vmatprep.subr.bf16.mxu0 %v3964_v43 }
  0x8c   :  { %1182 = vmatpush1.bf16.msra.mxu0 %v3970_v44 }
  0x8d   :  { %1183 = vmatprep.subr.bf16.mxu0 %v3975_v45 }
  0x90   :  { %1184 = vmatpush1.bf16.msra.mxu0 %v3991_v47 }
  0x91   :  { %1185 = vmatprep.subr.bf16.mxu0 %v4006_v50 }
  0x94   :  { %1186 = vmatpush1.bf16.msra.mxu0 %v4013_v51 }
  0x95   :  { %1187 = vmatprep.subr.bf16.mxu0 %v4018_v52 }
  0x98   :  { %1188 = vmatpush1.bf16.msra.mxu0 %v4034_v54 }
  0x99   :  { %1189 = vmatprep.subr.bf16.mxu0 %v4049_v57 }
  0x9c   :  { %1190 = vmatpush1.bf16.msra.mxu0 %v4056_v58 }
  0x9d   :  { %1191 = vmatprep.subr.bf16.mxu0 %v4061_v59 }
  0xa0   :  { %1192 = vmatpush1.bf16.msra.mxu0 %v4080_v62 }
  0xa1   :  { %3127 = vmatprep.subr.bf16.mxu0 %v5290_v36 }
  0xe3   :  { %v4261_v30 = vpop.f32.mrf.mxu0  ;;  %v4263_v31 = vpop.f32.mrf.mxu1 }
  0xe5   :  { %v4265_v32 = vpop.f32.mrf.mxu0  ;;  %v4267_v33 = vpop.f32.mrf.mxu1 }
  0xe7   :  { %v4272_v55 = vpop.f32.mrf.mxu0  ;;  %v4274_v60 = vpop.f32.mrf.mxu1 }
  0xe9   :  { %v4276_v3 = vpop.f32.mrf.mxu0  ;;  %v4278_v4 = vpop.f32.mrf.mxu1 }
  0xeb   :  { %v357_v7 = vpop.f32.mrf.mxu0  ;;  %v470_v8 = vpop.f32.mrf.mxu1 }
  0xec   :  { %v4289_v15 = vadd.f32 %v357_v7, %v4280_v5  ;;  %v4292_v18 = vadd.f32 %v470_v8, %v4282_v6 }
  0xed   :  { %v359_v28 = vpop.f32.mrf.mxu0  ;;  %v472_v29 = vpop.f32.mrf.mxu1 }
  0xee   :  { %5312 = vst [vmem:[#allocation9_spill] sm:$0xff] %v4289_v15  ;;  %5313 = vst [vmem:[#allocation10_spill] sm:$0xff] %v4292_v18  ;;  %v4295_v36 = vadd.f32 %v359_v28, %v4284_v9  ;;  %v4298_v34 = vadd.f32 %v472_v29, %v4286_v12  ;;  %v354_v15 = vadd.f32 %v4276_v3, %v4284_v9 }
  0xef   :  { %v361_v41 = vpop.f32.mrf.mxu0  ;;  %v474_v1 = vpop.f32.mrf.mxu1 }
  0xf0   :  { %5314 = vst [vmem:[#allocation11_spill] sm:$0xff] %v4295_v36  ;;  %5315 = vst [vmem:[#allocation12_spill] sm:$0xff] %v4298_v34  ;;  %v4301_v0 = vadd.f32 %v361_v41, %v4280_v5  ;;  %v4304_v48 = vadd.f32 %v474_v1, %v4282_v6 }
  0xf1   :  { %v363_v2 = vpop.f32.mrf.mxu0  ;;  %v476_v7 = vpop.f32.mrf.mxu1 }
  0xf2   :  { %5316 = vst [vmem:[#allocation13_spill] sm:$0xff] %v4301_v0  ;;  %5317 = vst [vmem:[#allocation14_spill] sm:$0xff] %v4304_v48  ;;  %v4307_v8 = vadd.f32 %v363_v2, %v4284_v9  ;;  %v4310_v18 = vadd.f32 %v476_v7, %v4286_v12 }
  0xf3   :  { %v367_v28 = vpop.f32.mrf.mxu0  ;;  %v480_v36 = vpop.f32.mrf.mxu1 }
  0xf4   :  { %5318 = vst [vmem:[#allocation15_spill] sm:$0xff] %v4307_v8  ;;  %5319 = vst [vmem:[#allocation16_spill] sm:$0xff] %v4310_v18  ;;  %v4313_v29 = vadd.f32 %v367_v28, %v4280_v5  ;;  %v4316_v34 = vadd.f32 %v480_v36, %v4282_v6 }
  0xf5   :  { %v369_v41 = vpop.f32.mrf.mxu0  ;;  %v482_v0 = vpop.f32.mrf.mxu1 }
  0xf6   :  { %5320 = vst [vmem:[#allocation17_spill] sm:$0xff] %v4313_v29  ;;  %5321 = vst [vmem:[#allocation18_spill] sm:$0xff] %v4316_v34  ;;  %v4319_v1 = vadd.f32 %v369_v41, %v4284_v9  ;;  %v4322_v48 = vadd.f32 %v482_v0, %v4286_v12 }
  0xf7   :  { %v371_v2 = vpop.f32.mrf.mxu0  ;;  %v484_v8 = vpop.f32.mrf.mxu1 }
  0xf8   :  { %5322 = vst [vmem:[#allocation19_spill] sm:$0xff] %v4319_v1  ;;  %5323 = vst [vmem:[#allocation20_spill] sm:$0xff] %v4322_v48  ;;  %v4325_v7 = vadd.f32 %v371_v2, %v4280_v5  ;;  %v4328_v18 = vadd.f32 %v484_v8, %v4282_v6 }
  0xf9   :  { %v373_v28 = vpop.f32.mrf.mxu0  ;;  %v486_v29 = vpop.f32.mrf.mxu1 }
  0xfa   :  { %5324 = vst [vmem:[#allocation21_spill] sm:$0xff] %v4325_v7  ;;  %5325 = vst [vmem:[#allocation22_spill] sm:$0xff] %v4328_v18  ;;  %v4331_v36 = vadd.f32 %v373_v28, %v4284_v9  ;;  %v4334_v34 = vadd.f32 %v486_v29, %v4286_v12 }
  0xfb   :  { %v377_v41 = vpop.f32.mrf.mxu0  ;;  %v490_v1 = vpop.f32.mrf.mxu1 }
  0xfc   :  { %5326 = vst [vmem:[#allocation23_spill] sm:$0xff] %v4331_v36  ;;  %5327 = vst [vmem:[#allocation24_spill] sm:$0xff] %v4334_v34  ;;  %v4337_v0 = vadd.f32 %v377_v41, %v4280_v5  ;;  %v4340_v48 = vadd.f32 %v490_v1, %v4282_v6 }
  0xfd   :  { %v379_v2 = vpop.f32.mrf.mxu0  ;;  %v492_v7 = vpop.f32.mrf.mxu1 }
  0xfe   :  { %5328 = vst [vmem:[#allocation25_spill] sm:$0xff] %v4337_v0  ;;  %5329 = vst [vmem:[#allocation26_spill] sm:$0xff] %v4340_v48  ;;  %v4343_v8 = vadd.f32 %v379_v2, %v4284_v9  ;;  %v4346_v18 = vadd.f32 %v492_v7, %v4286_v12 }
  0xff   :  { %v381_v28 = vpop.f32.mrf.mxu0  ;;  %v494_v36 = vpop.f32.mrf.mxu1 }
 0x100   :  { %5330 = vst [vmem:[#allocation27_spill] sm:$0xff] %v4343_v8  ;;  %5331 = vst [vmem:[#allocation28_spill] sm:$0xff] %v4346_v18  ;;  %v4349_v29 = vadd.f32 %v381_v28, %v4280_v5  ;;  %v4352_v34 = vadd.f32 %v494_v36, %v4282_v6 }
 0x101   :  { %v383_v41 = vpop.f32.mrf.mxu0  ;;  %v496_v0 = vpop.f32.mrf.mxu1 }
 0x102   :  { %5332 = vst [vmem:[#allocation29_spill] sm:$0xff] %v4349_v29  ;;  %5333 = vst [vmem:[#allocation30_spill] sm:$0xff] %v4352_v34  ;;  %v4355_v1 = vadd.f32 %v383_v41, %v4284_v9  ;;  %v4358_v48 = vadd.f32 %v496_v0, %v4286_v12 }
 0x103   :  { %v387_v2 = vpop.f32.mrf.mxu0  ;;  %v500_v8 = vpop.f32.mrf.mxu1 }
 0x104   :  { %5334 = vst [vmem:[#allocation31_spill] sm:$0xff] %v4355_v1  ;;  %5335 = vst [vmem:[#allocation32_spill] sm:$0xff] %v4358_v48  ;;  %v4361_v7 = vadd.f32 %v387_v2, %v4280_v5  ;;  %v4364_v18 = vadd.f32 %v500_v8, %v4282_v6 }
 0x105   :  { %v389_v28 = vpop.f32.mrf.mxu0  ;;  %v502_v29 = vpop.f32.mrf.mxu1 }
 0x106   :  { %5336 = vst [vmem:[#allocation33_spill] sm:$0xff] %v4361_v7  ;;  %5337 = vst [vmem:[#allocation34_spill] sm:$0xff] %v4364_v18  ;;  %v4367_v36 = vadd.f32 %v389_v28, %v4284_v9  ;;  %v4370_v34 = vadd.f32 %v502_v29, %v4286_v12 }
 0x107   :  { %v391_v41 = vpop.f32.mrf.mxu0  ;;  %v504_v1 = vpop.f32.mrf.mxu1 }
 0x108   :  { %5338 = vst [vmem:[#allocation35_spill] sm:$0xff] %v4367_v36  ;;  %5339 = vst [vmem:[#allocation36_spill] sm:$0xff] %v4370_v34  ;;  %v4373_v0 = vadd.f32 %v391_v41, %v4280_v5  ;;  %v4376_v48 = vadd.f32 %v504_v1, %v4282_v6 }
 0x109   :  { %v393_v2 = vpop.f32.mrf.mxu0  ;;  %v506_v7 = vpop.f32.mrf.mxu1 }
 0x10a   :  { %5340 = vst [vmem:[#allocation37_spill] sm:$0xff] %v4373_v0  ;;  %5341 = vst [vmem:[#allocation38_spill] sm:$0xff] %v4376_v48  ;;  %v4379_v8 = vadd.f32 %v393_v2, %v4284_v9  ;;  %v4382_v18 = vadd.f32 %v506_v7, %v4286_v12 }
 0x10b   :  { %v397_v28 = vpop.f32.mrf.mxu0  ;;  %v510_v36 = vpop.f32.mrf.mxu1 }
 0x10c   :  { %5342 = vst [vmem:[#allocation39_spill] sm:$0xff] %v4379_v8  ;;  %5343 = vst [vmem:[#allocation40_spill] sm:$0xff] %v4382_v18  ;;  %v4385_v29 = vadd.f32 %v397_v28, %v4280_v5  ;;  %v4388_v34 = vadd.f32 %v510_v36, %v4282_v6 }
 0x10d   :  { %v399_v41 = vpop.f32.mrf.mxu0  ;;  %v512_v0 = vpop.f32.mrf.mxu1 }
 0x10e   :  { %5344 = vst [vmem:[#allocation41_spill] sm:$0xff] %v4385_v29  ;;  %5345 = vst [vmem:[#allocation42_spill] sm:$0xff] %v4388_v34  ;;  %v4391_v1 = vadd.f32 %v399_v41, %v4284_v9  ;;  %v4394_v48 = vadd.f32 %v512_v0, %v4286_v12  ;;  %v2854_v0 = vld [vmem:[%s5286_s1 + $0x10] sm:$0xff] }
 0x10f   :  { %v401_v2 = vpop.f32.mrf.mxu0  ;;  %v514_v8 = vpop.f32.mrf.mxu1  ;;  %1153 = vperm.xlu1 %3252, %v2854_v0  }
 0x110   :  { %5346 = vst [vmem:[#allocation43_spill] sm:$0xff] %v4391_v1  ;;  %5347 = vst [vmem:[#allocation44_spill] sm:$0xff] %v4394_v48  ;;  %v4397_v7 = vadd.f32 %v401_v2, %v4280_v5  ;;  %v4400_v18 = vadd.f32 %v514_v8, %v4282_v6 }
 0x111   :  { %v403_v28 = vpop.f32.mrf.mxu0  ;;  %v516_v29 = vpop.f32.mrf.mxu1 }
 0x112   :  { %5348 = vst [vmem:[#allocation45_spill] sm:$0xff] %v4397_v7  ;;  %5349 = vst [vmem:[#allocation46_spill] sm:$0xff] %v4400_v18  ;;  %v4403_v36 = vadd.f32 %v403_v28, %v4284_v9  ;;  %v4406_v34 = vadd.f32 %v516_v29, %v4286_v12  ;;  %v2855_v28 = vld [vmem:[%s5286_s1 + $0x18] sm:$0xff] }
 0x113   :  { %v407_v41 = vpop.f32.mrf.mxu0  ;;  %v520_v48 = vpop.f32.mrf.mxu1  ;;  %1158 = vperm.xlu1 %3252, %v2855_v28  }
 0x114   :  { %5350 = vst [vmem:[#allocation47_spill] sm:$0xff] %v4403_v36  ;;  %5351 = vst [vmem:[#allocation48_spill] sm:$0xff] %v4406_v34  ;;  %v4412_v2 = vadd.f32 %v407_v41, %v4280_v5  ;;  %v4415_v8 = vadd.f32 %v520_v48, %v4282_v6 }
 0x115   :  { %v409_v18 = vpop.f32.mrf.mxu0  ;;  %v522_v29 = vpop.f32.mrf.mxu1 }
 0x116   :  { %5352 = vst [vmem:[#allocation49_spill] sm:$0xff] %v4412_v2  ;;  %5353 = vst [vmem:[#allocation50_spill] sm:$0xff] %v4415_v8  ;;  %v4421_v34 = vadd.f32 %v409_v18, %v4284_v9  ;;  %v4424_v36 = vadd.f32 %v522_v29, %v4286_v12  ;;  %v2869_v8 = vld [vmem:[%s5286_s1 + $0x28] sm:$0xff] }
 0x117   :  { %v411_v7 = vpop.f32.mrf.mxu0  ;;  %v524_v0 = vpop.f32.mrf.mxu1  ;;  %1394 = vperm.xlu1 %3252, %v2869_v8  }
 0x118   :  { %5354 = vst [vmem:[#allocation51_spill] sm:$0xff] %v4421_v34  ;;  %5355 = vst [vmem:[#allocation52_spill] sm:$0xff] %v4424_v36  ;;  %v4427_v41 = vadd.f32 %v411_v7, %v4280_v5  ;;  %v4430_v48 = vadd.f32 %v524_v0, %v4282_v6 }
 0x119   :  { %v413_v2 = vpop.f32.mrf.mxu0  ;;  %v526_v1 = vpop.f32.mrf.mxu1 }
 0x11a   :  { %5356 = vst [vmem:[#allocation53_spill] sm:$0xff] %v4427_v41  ;;  %5357 = vst [vmem:[#allocation54_spill] sm:$0xff] %v4430_v48  ;;  %v4436_v18 = vadd.f32 %v413_v2, %v4284_v9  ;;  %v4439_v29 = vadd.f32 %v526_v1, %v4286_v12  ;;  %v2883_v48 = vld [vmem:[%s5286_s1 + $0x38] sm:$0xff] }
 0x11b   :  { %v417_v36 = vpop.f32.mrf.mxu0  ;;  %v530_v28 = vpop.f32.mrf.mxu1  ;;  %1630 = vperm.xlu1 %3252, %v2883_v48   ;;  %v2911_v48 = vld [vmem:[%s5286_s1 + $0x58] sm:$0xff] }
 0x11c   :  { %5358 = vst [vmem:[#allocation55_spill] sm:$0xff] %v4436_v18  ;;  %5359 = vst [vmem:[#allocation56_spill] sm:$0xff] %v4439_v29  ;;  %v4442_v7 = vadd.f32 %v417_v36, %v4280_v5  ;;  %v4445_v0 = vadd.f32 %v530_v28, %v4282_v6 }
 0x11d   :  { %v419_v41 = vpop.f32.mrf.mxu0  ;;  %v532_v34 = vpop.f32.mrf.mxu1 }
 0x11e   :  { %5360 = vst [vmem:[#allocation57_spill] sm:$0xff] %v4442_v7  ;;  %5361 = vst [vmem:[#allocation58_spill] sm:$0xff] %v4445_v0  ;;  %v4451_v2 = vadd.f32 %v419_v41, %v4284_v9  ;;  %v4454_v1 = vadd.f32 %v532_v34, %v4286_v12  ;;  %v2897_v0 = vld [vmem:[%s5286_s1 + $0x48] sm:$0xff] }
 0x11f   :  { %v421_v29 = vpop.f32.mrf.mxu0  ;;  %v534_v8 = vpop.f32.mrf.mxu1  ;;  %1866 = vperm.xlu1 %3252, %v2897_v0  }
 0x120   :  { %5362 = vst [vmem:[#allocation59_spill] sm:$0xff] %v4451_v2  ;;  %5363 = vst [vmem:[#allocation60_spill] sm:$0xff] %v4454_v1  ;;  %v4457_v36 = vadd.f32 %v421_v29, %v4280_v5  ;;  %v4460_v28 = vadd.f32 %v534_v8, %v4282_v6 }
 0x121   :  { %v423_v7 = vpop.f32.mrf.mxu0  ;;  %v536_v18 = vpop.f32.mrf.mxu1 }
 0x122   :  { %5364 = vst [vmem:[#allocation61_spill] sm:$0xff] %v4457_v36  ;;  %5365 = vst [vmem:[#allocation62_spill] sm:$0xff] %v4460_v28  ;;  %v4466_v41 = vadd.f32 %v423_v7, %v4284_v9  ;;  %v4469_v34 = vadd.f32 %v536_v18, %v4286_v12  ;;  %v2925_v28 = vld [vmem:[%s5286_s1 + $0x68] sm:$0xff]  ;;  %v2939_v18 = vld [vmem:[%s5286_s1 + $0x78] sm:$0xff] }
 0x123   :  { %v745_v1 = vpop.f32.mrf.mxu0  ;;  %2102 = vperm.xlu1 %3252, %v2911_v48   ;;  %v976_v7 = vpop.f32.mrf.mxu1 }
 0x124   :  { %5366 = vst [vmem:[#allocation63_spill] sm:$0xff] %v4466_v41  ;;  %5367 = vst [vmem:[#allocation64_spill] sm:$0xff] %v4469_v34  ;;  %v348_v34 = vadd.f32 %v4261_v30, %v4280_v5  ;;  %v463_v30 = vadd.f32 %v4267_v33, %v4286_v12  ;;  %v4495_v33 = vld [vmem:[%s5288_s3] ss:$0 sm:$0xff] }
 0x125   :  { %v3105_v29 = vpop.f32.mrf.mxu0  ;;  %v978_v0 = vpop.f32.mrf.mxu1 }
 0x126   :  { %v350_v29 = vadd.f32 %v4265_v32, %v4284_v9  ;;  %v977_v41 = vadd.f32 %v976_v7, %v348_v34 }
 0x127   :  { %v748_v8 = vpop.f32.mrf.mxu0  ;;  %2338 = vperm.xlu1 %3252, %v2925_v28   ;;  %v980_v48 = vpop.f32.mrf.mxu1 }
 0x128   :  { %v979_v2 = vadd.f32 %v978_v0, %v350_v29  ;;  %v2844_v62 = vmul.f32 -1.442695, %v977_v41  ;;  %v749_v41 = vadd.f32 %v4495_v33, %v748_v8 }
 0x129   :  { %v3106_v36 = vpop.f32.mrf.mxu0  ;;  %v982_v28 = vpop.f32.mrf.mxu1 }
 0x12a   :  { %v352_v36 = vadd.f32 %v4272_v55, %v4280_v5  ;;  %v983_v58 = vadd.f32 %v982_v28, %v354_v15  ;;  %3365 = vpow2.f32 %v2844_v62  ;;  %v467_v55 = vadd.f32 %v4278_v4, %v4286_v12 }
 0x12b   :  { %2574 = vperm.xlu1 %3252, %v2939_v18   ;;  %v2845_v18 = vmul.f32 -1.442695, %v979_v2  ;;  %v465_v4 = vadd.f32 %v4274_v60, %v4282_v6  ;;  %v746_v12 = vadd.f32 %v4495_v33, %v745_v1  ;;  %v759_v1 = vpop.permute.xlu0 %758 }
 0x12c   :  { %v981_v59 = vadd.f32 %v980_v48, %v352_v36  ;;  %v2849_v34 = vmul.f32 -1.442695, %v983_v58  ;;  %v461_v58 = vadd.f32 %v4263_v31, %v4282_v6 }
 0x12d   :  { %3367 = vpow2.f32 %v2845_v18 }
 0x12e   :  { %v2848_v32 = vmul.f32 -1.442695, %v981_v59 }
 0x130   :  { %3369 = vpow2.f32 %v2848_v32 }
 0x131   :  { %3371 = vpow2.f32 %v2849_v34 }
 0x137   :  { %v3366_v59 = vpop.eup %3365 }
 0x138   :  { %v1052_v48 = vadd.f32 1.0, %v3366_v59 }
 0x13a   :  { %v3368_v15 = vpop.eup %3367 }
 0x13b   :  { %v1053_v28 = vadd.f32 1.0, %v3368_v15 }
 0x13d   :  { %v3370_v18 = vpop.eup %3369 }
 0x13e   :  { %v3372_v32 = vpop.eup %3371 }
 0x13f   :  { %v1057_v60 = vadd.f32 1.0, %v3372_v32 }
 0x143   :  { %v1019_v57 = vpop.f32.mrf.mxu0 }
 0x144   :  { %v1020_v2 = vadd.f32 %v1019_v57, %v461_v58  ;;  %v764_v58 = vpop.permute.xlu0 %763 }
 0x145   :  { %v1021_v7 = vpop.f32.mrf.mxu0 }
 0x146   :  { %v1022_v0 = vadd.f32 %v1021_v7, %v463_v30  ;;  %v2846_v30 = vmul.f32 -1.442695, %v1020_v2  ;;  %v1056_v7 = vadd.f32 1.0, %v3370_v18 }
 0x147   :  { %v1023_v29 = vpop.f32.mrf.mxu0 }
 0x148   :  { %v2847_v3 = vmul.f32 -1.442695, %v1022_v0  ;;  %v1024_v36 = vadd.f32 %v1023_v29, %v465_v4 }
 0x149   :  { %v1025_v5 = vpop.f32.mrf.mxu0 }
 0x14a   :  { %3373 = vpow2.f32 %v2847_v3  ;;  %v1026_v9 = vadd.f32 %v1025_v5, %v467_v55  ;;  %v2850_v31 = vmul.f32 -1.442695, %v1024_v36 }
 0x14c   :  { %v2851_v62 = vmul.f32 -1.442695, %v1026_v9 }
 0x14e   :  { %3375 = vpow2.f32 %v2851_v62 }
 0x14f   :  { %3377 = vtanh.f32 %v746_v12 }
 0x150   :  { %3379 = vtanh.f32 %v749_v41 }
 0x151   :  { %3381 = vrcp.f32 %v1052_v48 }
 0x152   :  { %3383 = vrcp.f32 %v1053_v28 }
 0x153   :  { %3385 = vpow2.f32 %v2846_v30 }
 0x157   :  { %v3374_v34 = vpop.eup %3373 }
 0x158   :  { %v1055_v0 = vadd.f32 1.0, %v3374_v34 }
 0x15a   :  { %3387 = vrcp.f32 %v1055_v0 }
 0x15b   :  { %v3376_v57 = vpop.eup %3375  ;;  %3389 = vpow2.f32 %v2850_v31 }
 0x15c   :  { %3391 = vrcp.f32 %v1056_v7  ;;  %v1059_v6 = vadd.f32 1.0, %v3376_v57  ;;  %v3378_v8 = vpop.eup %3377  ;;  %v5368_v7 = vmov 0  }
 0x15d   :  { %3393 = vrcp.f32 %v1057_v60  ;;  %v3380_v29 = vpop.eup %3379  ;;  %v766_v9 = vmul.f32 %v3378_v8, %v759_v1 }
 0x15e   :  { %3395 = vrcp.f32 %v1059_v6  ;;  %v3382_v55 = vpop.eup %3381  ;;  %v767_v48 = vmul.f32 %v3380_v29, %v764_v58 }
 0x15f   :  { %v3384_v3 = vpop.eup %3383  ;;  %v1076_v15 = vmul.f32 %v3382_v55, %v766_v9  ;;  %v5369_v55 = vmov 0.0  }
 0x160   :  { %v3386_v5 = vpop.eup %3385 }
 0x161   :  { %v1054_v2 = vadd.f32 1.0, %v3386_v5  ;;  %v5377_v5 = vld [vmem:[#allocation15_spill] sm:$0xff] }
 0x163   :  { %3397 = vrcp.f32 %v1054_v2 }
 0x167   :  { %v3388_v62 = vpop.eup %3387 }
 0x168   :  { %v3390_v59 = vpop.eup %3389  ;;  %v1078_v4 = vmul.f32 %v3388_v62, %v3384_v3 }
 0x169   :  { %v3392_v12 = vpop.eup %3391  ;;  %v1058_v18 = vadd.f32 1.0, %v3390_v59 }
 0x16a   :  { %v3394_v41 = vpop.eup %3393  ;;  %v4503_v36 = vadd.f32 %v1078_v4, %v1076_v15  ;;  %v1077_v30 = vmul.f32 %v3392_v12, %v767_v48  ;;  %v5378_v4 = vld [vmem:[#allocation12_spill] sm:$0xff] }
 0x16b   :  { %v3396_v28 = vpop.eup %3395 }
 0x16c   :  { %v1079_v32 = vmul.f32 %v3396_v28, %v3394_v41  ;;  %3399 = vtanh.f32 %v4503_v36  ;;  %v5379_v28 = vld [vmem:[#allocation16_spill] sm:$0xff] }
 0x16d   :  { %3401 = vrcp.f32 %v1058_v18 }
 0x16e   :  { %v4505_v34 = vadd.f32 %v1079_v32, %v1077_v30 }
 0x170   :  { %3403 = vtanh.f32 %v4505_v34  ;;  %v1104_v31 = vpack.c.bf16 %v4505_v34, %v4503_v36  ;;  %v3398_v0 = vpop.eup %3397 }
 0x172   :  { %3124 = vmatmul.mubr.bf16.vlgmr.msra.gmra.mxu1 %v1104_v31 }
 0x173   :  { %1221 = vmatpush1.bf16.msra.mxu1 %v4131_v10  ;;  %1252 = vmatprep.mubr.bf16.mxu1 %v5368_v7 }
 0x174   :  { %1222 = vmatprep.subr.bf16.mxu1 %v4136_v11 }
 0x177   :  { %1223 = vmatpush1.bf16.msra.mxu1 %v4142_v13 }
 0x178   :  { %1224 = vmatprep.subr.bf16.mxu1 %v4149_v14 }
 0x179   :  { %v3400_v60 = vpop.eup %3399 }
 0x17a   :  { %v3402_v57 = vpop.eup %3401  ;;  %v1084_v1 = vmul.f32 %v3400_v60, %v3398_v0  ;;  %v5380_v0 = vld [vmem:[#allocation10_spill] sm:$0xff] }
 0x17b   :  { %1225 = vmatpush1.bf16.msra.mxu1 %v4162_v16 }
 0x17c   :  { %1226 = vmatprep.subr.bf16.mxu1 %v4168_v17 }
 0x17d   :  { %v3404_v6 = vpop.eup %3403 }
 0x17e   :  { %v1085_v8 = vmul.f32 %v3404_v6, %v3402_v57 }
 0x17f   :  { %1227 = vmatpush1.bf16.msra.mxu1 %v4179_v19 }
 0x180   :  { %1228 = vmatprep.subr.bf16.mxu1 %v4185_v20  ;;  %v2971_v29 = vpack.c.bf16 %v1085_v8, %v1084_v1  ;;  %v5381_v8 = vld [vmem:[#allocation14_spill] sm:$0xff] }
 0x182   :  { %2972 = vst [vmem:[%s5289_s7] sm:$0xff] %v2971_v29   ;;  %1210 = vmatmul.mubr.bf16.vlgmr.msra.gmra.mxu0 %v2971_v29 }
 0x183   :  { %1229 = vmatpush1.bf16.msra.mxu1 %v4193_v21  ;;  %3128 = vmatpush3.bf16.msra.mxu0 %v3921_v35  ;;  %v4543_v35 = vld [vmem:[%s5285_s4 + $0xe4] ss:$16 sps:$4 sm:$0xff]  }
 0x184   :  { %1230 = vmatprep.subr.bf16.mxu1 %v4199_v22  ;;  %3129 = vmatprep.subr.bf16.mxu0 %v5369_v55 }
 0x185   :  { %3143 = vmatprep.mubr.msk.bf16.mxu0 %vm3768_vm0, %v5369_v55 }
 0x187   :  { %1231 = vmatpush1.bf16.msra.mxu1 %v4207_v23  ;;  %3130 = vmatpush3.bf16.msra.mxu0 %v3940_v39  ;;  %v5372_v39 = vld [vmem:[#allocation7_spill] sm:$0xff] }
 0x188   :  { %1232 = vmatprep.subr.bf16.mxu1 %v4213_v24  ;;  %3131 = vmatprep.subr.bf16.mxu0 %v5369_v55 }
 0x18b   :  { %1233 = vmatpush1.bf16.msra.mxu1 %v4221_v25  ;;  %3132 = vmatpush3.bf16.msra.mxu0 %v3959_v42 }
 0x18c   :  { %1234 = vmatprep.subr.bf16.mxu1 %v4227_v26  ;;  %3133 = vmatprep.subr.bf16.mxu0 %v5369_v55 }
 0x18f   :  { %1235 = vmatpush1.bf16.msra.mxu1 %v4235_v27  ;;  %3134 = vmatpush3.bf16.msra.mxu0 %v3983_v46 }
 0x190   :  { %3135 = vmatprep.subr.bf16.mxu0 %v5369_v55  ;;  %1413 = vmatprep.subr.bf16.mxu1 %v4543_v35 }
 0x192   :  { %1253 = vmatmul.mubr.bf16.vlgmr.msra.gmra.mxu1 %v2971_v29 }
 0x193   :  { %3136 = vmatpush3.bf16.msra.mxu0 %v4000_v49  ;;  %1414 = vmatpush1.bf16.msra.mxu1 %v3928_v37  ;;  %v5370_v37 = vld [vmem:[#allocation5_spill] sm:$0xff] }
 0x194   :  { %3137 = vmatprep.subr.bf16.mxu0 %v5369_v55  ;;  %1415 = vmatprep.subr.bf16.mxu1 %v3933_v38  ;;  %v5371_v38 = vld [vmem:[#allocation6_spill] sm:$0xff] }
 0x195   :  { %1445 = vmatprep.mubr.bf16.mxu1 %v5368_v7 }
 0x197   :  { %3138 = vmatpush3.bf16.msra.mxu0 %v4026_v53  ;;  %1416 = vmatpush1.bf16.msra.mxu1 %v3948_v40  ;;  %v5373_v40 = vld [vmem:[#allocation8_spill] sm:$0xff] }
 0x198   :  { %3139 = vmatprep.subr.bf16.mxu0 %v5369_v55  ;;  %1417 = vmatprep.subr.bf16.mxu1 %v3964_v43 }
 0x19b   :  { %3140 = vmatpush3.bf16.msra.mxu0 %v4043_v56  ;;  %1418 = vmatpush1.bf16.msra.mxu1 %v3970_v44 }
 0x19c   :  { %3141 = vmatprep.subr.bf16.mxu0 %v5369_v55  ;;  %1419 = vmatprep.subr.bf16.mxu1 %v3975_v45 }
 0x19f   :  { %3142 = vmatpush3.bf16.msra.mxu0 %v4073_v61  ;;  %1420 = vmatpush1.bf16.msra.mxu1 %v3991_v47  ;;  %v5376_v61 = vld [vmem:[#allocation13_spill] sm:$0xff] }
 0x1a0   :  { %1456 = vmatprep.subr.bf16.mxu0 %v4085_v63  ;;  %1421 = vmatprep.subr.bf16.mxu1 %v4006_v50  ;;  %v5374_v50 = vld [vmem:[#allocation9_spill] sm:$0xff] }
 0x1a3   :  { %1422 = vmatpush1.bf16.msra.mxu1 %v4013_v51 }
 0x1a4   :  { %1423 = vmatprep.subr.bf16.mxu1 %v4018_v52  ;;  %v5375_v52 = vld [vmem:[#allocation11_spill] sm:$0xff] }
 0x1a7   :  { %1424 = vmatpush1.bf16.msra.mxu1 %v4034_v54 }
 0x1a8   :  { %1425 = vmatprep.subr.bf16.mxu1 %v5370_v37 }
 0x1ab   :  { %1426 = vmatpush1.bf16.msra.mxu1 %v5371_v38 }
 0x1ac   :  { %1427 = vmatprep.subr.bf16.mxu1 %v5372_v39 }
 0x1af   :  { %1428 = vmatpush1.bf16.msra.mxu1 %v5373_v40 }
 0x1b0   :  { %3147 = vmatprep.subr.bf16.mxu1 %v5369_v55 }
 0x232   :  { %v1139_v42 = vpop.f32.mrf.mxu1 }
 0x233   :  { %v1140_v32 = vadd.f32 %v4495_v33, %v1139_v42 }
 0x234   :  { %v3125_v43 = vpop.f32.mrf.mxu1 }
 0x236   :  { %v1142_v44 = vpop.f32.mrf.mxu1 }
 0x237   :  { %v1143_v6 = vadd.f32 %v4495_v33, %v1142_v44 }
 0x238   :  { %v3126_v45 = vpop.f32.mrf.mxu1 }
 0x242   :  { %v1211_v46 = vpop.f32.mrf.mxu0 }
 0x243   :  { %v1212_v51 = vadd.f32 %v1211_v46, %v5374_v50  ;;  %v1154_v50 = vpop.permute.xlu1 %1153 }
 0x244   :  { %v1213_v47 = vpop.f32.mrf.mxu0 }
 0x245   :  { %v1214_v53 = vadd.f32 %v1213_v47, %v5375_v52  ;;  %v2856_v56 = vmul.f32 -1.442695, %v1212_v51 }
 0x246   :  { %v1215_v49 = vpop.f32.mrf.mxu0 }
 0x247   :  { %v1216_v63 = vadd.f32 %v1215_v49, %v5376_v61  ;;  %v2857_v3 = vmul.f32 -1.442695, %v1214_v53  ;;  %3405 = vpow2.f32 %v2856_v56 }
 0x248   :  { %v1217_v54 = vpop.f32.mrf.mxu0 }
 0x249   :  { %v1218_v9 = vadd.f32 %v1217_v54, %v5377_v5  ;;  %v2860_v58 = vmul.f32 -1.442695, %v1216_v63  ;;  %3407 = vpow2.f32 %v2857_v3  ;;  %v1159_v54 = vpop.permute.xlu1 %1158 }
 0x24b   :  { %v2861_v15 = vmul.f32 -1.442695, %v1218_v9  ;;  %3409 = vpow2.f32 %v2860_v58 }
 0x24d   :  { %3411 = vpow2.f32 %v2861_v15 }
 0x252   :  { %v1254_v62 = vpop.f32.mrf.mxu1 }
 0x253   :  { %v1255_v60 = vadd.f32 %v1254_v62, %v5380_v0 }
 0x254   :  { %v1256_v59 = vpop.f32.mrf.mxu1  ;;  %v3406_v31 = vpop.eup %3405 }
 0x255   :  { %v1257_v12 = vadd.f32 %v1256_v59, %v5378_v4  ;;  %v1287_v1 = vadd.f32 1.0, %v3406_v31  ;;  %v2858_v37 = vmul.f32 -1.442695, %v1255_v60 }
 0x256   :  { %v1258_v2 = vpop.f32.mrf.mxu1  ;;  %v3408_v57 = vpop.eup %3407 }
 0x257   :  { %v2859_v41 = vmul.f32 -1.442695, %v1257_v12  ;;  %v1259_v29 = vadd.f32 %v1258_v2, %v5381_v8  ;;  %v1288_v39 = vadd.f32 1.0, %v3408_v57  ;;  %v4714_v8 = vld [vmem:[%s5285_s4 + $0xec] ss:$16 sps:$4 sm:$0xff]  }
 0x258   :  { %v1260_v48 = vpop.f32.mrf.mxu1  ;;  %v3410_v38 = vpop.eup %3409 }
 0x259   :  { %v1261_v18 = vadd.f32 %v1260_v48, %v5379_v28  ;;  %3413 = vpow2.f32 %v2859_v41  ;;  %v2862_v45 = vmul.f32 -1.442695, %v1259_v29  ;;  %v1291_v42 = vadd.f32 1.0, %v3410_v38  ;;  %v4720_v29 = vld [vmem:[%s5285_s4 + $0x64] ss:$16 sps:$4 sm:$0xff]  }
 0x25a   :  { %v3412_v40 = vpop.eup %3411  ;;  %v4732_v38 = vld [vmem:[%s5285_s4 + $0x44] ss:$16 sps:$4 sm:$0xff]  }
 0x25b   :  { %v2863_v30 = vmul.f32 -1.442695, %v1261_v18  ;;  %v1292_v47 = vadd.f32 1.0, %v3412_v40  ;;  %v4744_v40 = vld [vmem:[%s5285_s4 + $0x24] ss:$16 sps:$4 sm:$0xff]  }
 0x25c   :  { %5383 = vst [vmem:[#allocation6_spill] sm:$0xff] %v4744_v40 }
 0x25d   :  { %3415 = vpow2.f32 %v2863_v30 }
 0x25e   :  { %3417 = vtanh.f32 %v1140_v32 }
 0x25f   :  { %3419 = vtanh.f32 %v1143_v6 }
 0x260   :  { %3421 = vrcp.f32 %v1287_v1  ;;  %v4708_v1 = vld [vmem:[%s5285_s4 + $0x80] ss:$16 sps:$4 sm:$0xff]  }
 0x261   :  { %3423 = vpow2.f32 %v2858_v37  ;;  %v4726_v37 = vld [vmem:[%s5285_s4 + $0x60] ss:$16 sps:$4 sm:$0xff]  }
 0x262   :  { %3425 = vrcp.f32 %v1288_v39  ;;  %v4738_v39 = vld [vmem:[%s5285_s4 + $0x40] ss:$16 sps:$4 sm:$0xff]  }
 0x263   :  { %5382 = vst [vmem:[#allocation5_spill] sm:$0xff] %v4738_v39 }
 0x266   :  { %v3414_v43 = vpop.eup %3413 }
 0x267   :  { %v1290_v46 = vadd.f32 1.0, %v3414_v43  ;;  %v4750_v43 = vld [vmem:[%s5285_s4 + $0x20] ss:$16 sps:$4 sm:$0xff]  }
 0x268   :  { %5384 = vst [vmem:[#allocation7_spill] sm:$0xff] %v4750_v43 }
 0x269   :  { %3427 = vrcp.f32 %v1290_v46 }
 0x26a   :  { %v3416_v49 = vpop.eup %3415  ;;  %3429 = vpow2.f32 %v2862_v45  ;;  %v4756_v45 = vld [vmem:[%s5285_s4 + $0x4] ss:$16 sps:$4 sm:$0xff]  }
 0x26b   :  { %3431 = vrcp.f32 %v1291_v42  ;;  %v1294_v44 = vadd.f32 1.0, %v3416_v49  ;;  %v3418_v51 = vpop.eup %3417  ;;  %5385 = vst [vmem:[#allocation8_spill] sm:$0xff] %v4756_v45  ;;  %v4762_v42 = vld [vmem:[%s5285_s4] ss:$16 sps:$4 sm:$0xff]  }
 0x26c   :  { %3433 = vrcp.f32 %v1292_v47  ;;  %v1161_v52 = vmul.f32 %v3418_v51, %v1154_v50  ;;  %v3420_v53 = vpop.eup %3419  ;;  %5386 = vst [vmem:[#allocation9_spill] sm:$0xff] %v4762_v42 }
 0x26d   :  { %3435 = vrcp.f32 %v1294_v44  ;;  %v3422_v56 = vpop.eup %3421  ;;  %v1162_v5 = vmul.f32 %v3420_v53, %v1159_v54  ;;  %v5387_v53 = vld [vmem:[#allocation17_spill] sm:$0xff] }
 0x26e   :  { %v3424_v61 = vpop.eup %3423  ;;  %v1163_v3 = vadd.f32 %v1161_v52, %v4503_v36 }
 0x26f   :  { %v3426_v63 = vpop.eup %3425  ;;  %v1289_v4 = vadd.f32 1.0, %v3424_v61  ;;  %v1164_v2 = vadd.f32 %v1162_v5, %v4505_v34  ;;  %v5389_v5 = vld [vmem:[#allocation21_spill] sm:$0xff] }
 0x270   :  { %v1311_v58 = vmul.f32 %v3422_v56, %v1163_v3  ;;  %v5388_v56 = vld [vmem:[#allocation19_spill] sm:$0xff] }
 0x271   :  { %3437 = vrcp.f32 %v1289_v4 }
 0x276   :  { %v3428_v9 = vpop.eup %3427 }
 0x277   :  { %v3430_v62 = vpop.eup %3429  ;;  %v1313_v59 = vmul.f32 %v3428_v9, %v3426_v63 }
 0x278   :  { %v3432_v15 = vpop.eup %3431  ;;  %v1293_v28 = vadd.f32 1.0, %v3430_v62 }
 0x279   :  { %v3434_v12 = vpop.eup %3433  ;;  %v4583_v41 = vadd.f32 %v1313_v59, %v1311_v58  ;;  %v1312_v18 = vmul.f32 %v3432_v15, %v1164_v2  ;;  %v5390_v58 = vld [vmem:[#allocation23_spill] sm:$0xff] }
 0x27a   :  { %v3436_v48 = vpop.eup %3435 }
 0x27b   :  { %v1314_v30 = vmul.f32 %v3436_v48, %v3434_v12  ;;  %3439 = vtanh.f32 %v4583_v41  ;;  %v5391_v48 = vld [vmem:[#allocation20_spill] sm:$0xff] }
 0x27c   :  { %3441 = vrcp.f32 %v1293_v28 }
 0x27d   :  { %v4585_v32 = vadd.f32 %v1314_v30, %v1312_v18 }
 0x27e   :  { %v3438_v34 = vpop.eup %3437 }
 0x27f   :  { %3443 = vtanh.f32 %v4585_v32  ;;  %v1340_v36 = vpack.c.bf16 %v4585_v32, %v4583_v41 }
 0x281   :  { %3144 = vmatmul.mubr.bf16.vlgmr.msra.gmra.mxu0 %v1340_v36 }
 0x282   :  { %1457 = vmatpush1.bf16.msra.mxu0 %v4131_v10  ;;  %1488 = vmatprep.mubr.bf16.mxu0 %v5368_v7 }
 0x283   :  { %1458 = vmatprep.subr.bf16.mxu0 %v4136_v11  ;;  %v4607_v11 = vld [vmem:[%s5284_s2 + $0x38] sm:$0xff]  }
 0x286   :  { %1459 = vmatpush1.bf16.msra.mxu0 %v4142_v13  ;;  %v4618_v13 = vld [vmem:[%s5284_s2 + $0x30] sm:$0xff]  }
 0x287   :  { %1460 = vmatprep.subr.bf16.mxu0 %v4149_v14  ;;  %v4627_v14 = vld [vmem:[%s5284_s2 + $0x28] sm:$0xff]  }
 0x288   :  { %v3440_v31 = vpop.eup %3439 }
 0x289   :  { %v3442_v0 = vpop.eup %3441  ;;  %v1319_v57 = vmul.f32 %v3440_v31, %v3438_v34  ;;  %v5392_v34 = vld [vmem:[#allocation24_spill] sm:$0xff] }
 0x28a   :  { %1461 = vmatpush1.bf16.msra.mxu0 %v4162_v16  ;;  %v4636_v16 = vld [vmem:[%s5284_s2 + $0x20] sm:$0xff]  }
 0x28b   :  { %1462 = vmatprep.subr.bf16.mxu0 %v4168_v17  ;;  %v4644_v17 = vld [vmem:[%s5284_s2 + $0x18] sm:$0xff]  }
 0x28c   :  { %v3444_v60 = vpop.eup %3443 }
 0x28d   :  { %v1320_v6 = vmul.f32 %v3444_v60, %v3442_v0 }
 0x28e   :  { %1463 = vmatpush1.bf16.msra.mxu0 %v4179_v19  ;;  %v4650_v19 = vld [vmem:[%s5285_s4 + $0xe0] ss:$16 sps:$4 sm:$0xff]  }
 0x28f   :  { %1464 = vmatprep.subr.bf16.mxu0 %v4185_v20  ;;  %v2976_v10 = vpack.c.bf16 %v1320_v6, %v1319_v57  ;;  %v4657_v20 = vld [vmem:[%s5285_s4 + $0xc4] ss:$16 sps:$4 sm:$0xff]   ;;  %v5393_v6 = vld [vmem:[#allocation18_spill] sm:$0xff] }
 0x291   :  { %3008 = vst [vmem:[%s5289_s7 + $0x8] sm:$0xff] %v2976_v10   ;;  %1446 = vmatmul.mubr.bf16.vlgmr.msra.gmra.mxu1 %v2976_v10 }
 0x292   :  { %1465 = vmatpush1.bf16.msra.mxu0 %v4193_v21  ;;  %3148 = vmatpush3.bf16.msra.mxu1 %v4607_v11  ;;  %v4664_v21 = vld [vmem:[%s5284_s2 + $0x10] sm:$0xff]  }
 0x293   :  { %1466 = vmatprep.subr.bf16.mxu0 %v4199_v22  ;;  %3149 = vmatprep.subr.bf16.mxu1 %v5369_v55  ;;  %v4670_v22 = vld [vmem:[%s5285_s4 + $0xc0] ss:$16 sps:$4 sm:$0xff]  }
 0x294   :  { %3163 = vmatprep.mubr.msk.bf16.mxu1 %vm3768_vm0, %v5369_v55 }
 0x296   :  { %1467 = vmatpush1.bf16.msra.mxu0 %v4207_v23  ;;  %3150 = vmatpush3.bf16.msra.mxu1 %v4618_v13  ;;  %v4677_v23 = vld [vmem:[%s5285_s4 + $0xa4] ss:$16 sps:$4 sm:$0xff]  }
 0x297   :  { %1468 = vmatprep.subr.bf16.mxu0 %v4213_v24  ;;  %3151 = vmatprep.subr.bf16.mxu1 %v5369_v55  ;;  %v4683_v24 = vld [vmem:[%s5284_s2 + $0x8] sm:$0xff]  }
 0x29a   :  { %1469 = vmatpush1.bf16.msra.mxu0 %v4221_v25  ;;  %3152 = vmatpush3.bf16.msra.mxu1 %v4627_v14  ;;  %v4689_v25 = vld [vmem:[%s5285_s4 + $0xa0] ss:$16 sps:$4 sm:$0xff]  }
 0x29b   :  { %1470 = vmatprep.subr.bf16.mxu0 %v4227_v26  ;;  %3153 = vmatprep.subr.bf16.mxu1 %v5369_v55  ;;  %v4696_v26 = vld [vmem:[%s5285_s4 + $0x84] ss:$16 sps:$4 sm:$0xff]  }
 0x29e   :  { %1471 = vmatpush1.bf16.msra.mxu0 %v4235_v27  ;;  %3154 = vmatpush3.bf16.msra.mxu1 %v4636_v16  ;;  %v4702_v27 = vld [vmem:[%s5284_s2] sm:$0xff]  }
 0x29f   :  { %3155 = vmatprep.subr.bf16.mxu1 %v5369_v55  ;;  %1649 = vmatprep.subr.bf16.mxu0 %v4543_v35 }
 0x2a1   :  { %1489 = vmatmul.mubr.bf16.vlgmr.msra.gmra.mxu0 %v2976_v10 }
 0x2a2   :  { %3156 = vmatpush3.bf16.msra.mxu1 %v4644_v17  ;;  %1650 = vmatpush1.bf16.msra.mxu0 %v4650_v19 }
 0x2a3   :  { %3157 = vmatprep.subr.bf16.mxu1 %v5369_v55  ;;  %1651 = vmatprep.subr.bf16.mxu0 %v4657_v20 }
 0x2a4   :  { %1681 = vmatprep.mubr.bf16.mxu0 %v5368_v7 }
 0x2a6   :  { %3158 = vmatpush3.bf16.msra.mxu1 %v4664_v21  ;;  %1652 = vmatpush1.bf16.msra.mxu0 %v4670_v22 }
 0x2a7   :  { %3159 = vmatprep.subr.bf16.mxu1 %v5369_v55  ;;  %1653 = vmatprep.subr.bf16.mxu0 %v4677_v23 }
 0x2aa   :  { %3160 = vmatpush3.bf16.msra.mxu1 %v4683_v24  ;;  %1654 = vmatpush1.bf16.msra.mxu0 %v4689_v25 }
 0x2ab   :  { %3161 = vmatprep.subr.bf16.mxu1 %v5369_v55  ;;  %1655 = vmatprep.subr.bf16.mxu0 %v4696_v26 }
 0x2ae   :  { %3162 = vmatpush3.bf16.msra.mxu1 %v4702_v27  ;;  %1656 = vmatpush1.bf16.msra.mxu0 %v4708_v1 }
 0x2af   :  { %1692 = vmatprep.subr.bf16.mxu1 %v4714_v8  ;;  %1657 = vmatprep.subr.bf16.mxu0 %v4720_v29 }
 0x2b2   :  { %1658 = vmatpush1.bf16.msra.mxu0 %v4726_v37 }
 0x2b3   :  { %1659 = vmatprep.subr.bf16.mxu0 %v4732_v38 }
 0x2b6   :  { %1660 = vmatpush1.bf16.msra.mxu0 %v4738_v39 }
 0x2b7   :  { %1661 = vmatprep.subr.bf16.mxu0 %v4744_v40 }
 0x2ba   :  { %1662 = vmatpush1.bf16.msra.mxu0 %v4750_v43 }
 0x2bb   :  { %1663 = vmatprep.subr.bf16.mxu0 %v4756_v45 }
 0x2be   :  { %1664 = vmatpush1.bf16.msra.mxu0 %v4762_v42 }
 0x2bf   :  { %3167 = vmatprep.subr.bf16.mxu0 %v5369_v55 }
 0x341   :  { %v1375_v46 = vpop.f32.mrf.mxu0 }
 0x342   :  { %v1376_v60 = vadd.f32 %v4495_v33, %v1375_v46 }
 0x343   :  { %v3145_v47 = vpop.f32.mrf.mxu0 }
 0x345   :  { %v1378_v49 = vpop.f32.mrf.mxu0 }
 0x347   :  { %v3146_v44 = vpop.f32.mrf.mxu0 }
 0x348   :  { %v1379_v44 = vadd.f32 %v4495_v33, %v1378_v49 }
 0x351   :  { %v1447_v50 = vpop.f32.mrf.mxu1 }
 0x352   :  { %v1448_v54 = vadd.f32 %v1447_v50, %v5387_v53 }
 0x353   :  { %v1449_v51 = vpop.f32.mrf.mxu1 }
 0x354   :  { %v1450_v61 = vadd.f32 %v1449_v51, %v5388_v56  ;;  %v2870_v3 = vmul.f32 -1.442695, %v1448_v54  ;;  %v5394_v51 = vld [vmem:[#allocation22_spill] sm:$0xff] }
 0x355   :  { %v1451_v52 = vpop.f32.mrf.mxu1 }
 0x356   :  { %v1452_v9 = vadd.f32 %v1451_v52, %v5389_v5  ;;  %v2871_v62 = vmul.f32 -1.442695, %v1450_v61  ;;  %3445 = vpow2.f32 %v2870_v3 }
 0x357   :  { %v1453_v63 = vpop.f32.mrf.mxu1 }
 0x358   :  { %v1454_v59 = vadd.f32 %v1453_v63, %v5390_v58  ;;  %v2874_v4 = vmul.f32 -1.442695, %v1452_v9  ;;  %3447 = vpow2.f32 %v2871_v62 }
 0x35a   :  { %v2875_v2 = vmul.f32 -1.442695, %v1454_v59  ;;  %3449 = vpow2.f32 %v2874_v4  ;;  %v1390_v59 = vpop.permute.xlu0 %1389 }
 0x35c   :  { %3451 = vpow2.f32 %v2875_v2 }
 0x361   :  { %v1490_v15 = vpop.f32.mrf.mxu0 }
 0x362   :  { %v1491_v10 = vadd.f32 %v1490_v15, %v5393_v6 }
 0x363   :  { %v1492_v12 = vpop.f32.mrf.mxu0  ;;  %v3446_v57 = vpop.eup %3445 }
 0x364   :  { %v1493_v28 = vadd.f32 %v1492_v12, %v5391_v48  ;;  %v1523_v50 = vadd.f32 1.0, %v3446_v57  ;;  %v2872_v53 = vmul.f32 -1.442695, %v1491_v10  ;;  %v1395_v48 = vpop.permute.xlu1 %1394 }
 0x365   :  { %v1494_v18 = vpop.f32.mrf.mxu0  ;;  %v3448_v47 = vpop.eup %3447 }
 0x366   :  { %v2873_v30 = vmul.f32 -1.442695, %v1493_v28  ;;  %v1495_v52 = vadd.f32 %v1494_v18, %v5394_v51  ;;  %v1524_v56 = vadd.f32 1.0, %v3448_v47 }
 0x367   :  { %v1496_v36 = vpop.f32.mrf.mxu0  ;;  %v3450_v54 = vpop.eup %3449 }
 0x368   :  { %v1497_v31 = vadd.f32 %v1496_v36, %v5392_v34  ;;  %3453 = vpow2.f32 %v2873_v30  ;;  %v2876_v3 = vmul.f32 -1.442695, %v1495_v52  ;;  %v1527_v46 = vadd.f32 1.0, %v3450_v54  ;;  %v4796_v54 = vld [vmem:[%s5285_s4 + $0xcc] ss:$16 sps:$4 sm:$0xff]  }
 0x369   :  { %v3452_v61 = vpop.eup %3451 }
 0x36a   :  { %v2877_v0 = vmul.f32 -1.442695, %v1497_v31  ;;  %v1528_v9 = vadd.f32 1.0, %v3452_v61  ;;  %v4808_v61 = vld [vmem:[%s5285_s4 + $0xac] ss:$16 sps:$4 sm:$0xff]  }
 0x36c   :  { %3455 = vpow2.f32 %v2877_v0 }
 0x36d   :  { %3457 = vtanh.f32 %v1376_v60 }
 0x36e   :  { %3459 = vtanh.f32 %v1379_v44 }
 0x36f   :  { %3461 = vrcp.f32 %v1523_v50 }
 0x370   :  { %3463 = vpow2.f32 %v2872_v53 }
 0x371   :  { %3465 = vrcp.f32 %v1524_v56  ;;  %v4802_v56 = vld [vmem:[%s5285_s4 + $0xc8] ss:$16 sps:$4 sm:$0xff]  }
 0x375   :  { %v3454_v63 = vpop.eup %3453 }
 0x376   :  { %v1526_v5 = vadd.f32 1.0, %v3454_v63 }
 0x378   :  { %3467 = vrcp.f32 %v1526_v5 }
 0x379   :  { %v3456_v62 = vpop.eup %3455  ;;  %3469 = vpow2.f32 %v2876_v3 }
 0x37a   :  { %3471 = vrcp.f32 %v1527_v46  ;;  %v1530_v49 = vadd.f32 1.0, %v3456_v62  ;;  %v3458_v58 = vpop.eup %3457  ;;  %v4814_v46 = vld [vmem:[%s5285_s4 + $0xa8] ss:$16 sps:$4 sm:$0xff]  }
 0x37b   :  { %3473 = vrcp.f32 %v1528_v9  ;;  %v1397_v15 = vmul.f32 %v3458_v58, %v1390_v59  ;;  %v3460_v4 = vpop.eup %3459  ;;  %v4820_v9 = vld [vmem:[%s5285_s4 + $0x8c] ss:$16 sps:$4 sm:$0xff]   ;;  %v4826_v59 = vld [vmem:[%s5285_s4 + $0x88] ss:$16 sps:$4 sm:$0xff]  }
 0x37c   :  { %3475 = vrcp.f32 %v1530_v49  ;;  %v3462_v12 = vpop.eup %3461  ;;  %v1398_v18 = vmul.f32 %v3460_v4, %v1395_v48  ;;  %v4857_v48 = vld [vmem:[%s5285_s4 + $0x48] ss:$16 sps:$4 sm:$0xff]  }
 0x37d   :  { %v3464_v2 = vpop.eup %3463  ;;  %v1399_v30 = vadd.f32 %v1397_v15, %v4583_v41  ;;  %v4832_v15 = vld [vmem:[%s5285_s4 + $0x6c] ss:$16 sps:$4 sm:$0xff]  }
 0x37e   :  { %v3466_v28 = vpop.eup %3465  ;;  %v1525_v57 = vadd.f32 1.0, %v3464_v2  ;;  %v1400_v10 = vadd.f32 %v1398_v18, %v4585_v32  ;;  %v4789_v32 = vld [vmem:[%s5285_s4 + $0xe8] ss:$16 sps:$4 sm:$0xff]   ;;  %v4848_v2 = vld [vmem:[%s5285_s4 + $0x4c] ss:$16 sps:$4 sm:$0xff]  }
 0x37f   :  { %v1547_v31 = vmul.f32 %v3462_v12, %v1399_v30  ;;  %v4841_v12 = vld [vmem:[%s5285_s4 + $0x68] ss:$16 sps:$4 sm:$0xff]   ;;  %v4878_v30 = vld [vmem:[%s5285_s4 + $0xc] ss:$16 sps:$4 sm:$0xff]  }
 0x380   :  { %3477 = vrcp.f32 %v1525_v57  ;;  %v4871_v18 = vld [vmem:[%s5285_s4 + $0x28] ss:$16 sps:$4 sm:$0xff]  }
 0x385   :  { %v3468_v36 = vpop.eup %3467 }
 0x386   :  { %v3470_v34 = vpop.eup %3469  ;;  %v1549_v0 = vmul.f32 %v3468_v36, %v3466_v28  ;;  %v4864_v28 = vld [vmem:[%s5285_s4 + $0x2c] ss:$16 sps:$4 sm:$0xff]   ;;  %v4885_v36 = vld [vmem:[%s5285_s4 + $0x8] ss:$16 sps:$4 sm:$0xff]  }
 0x387   :  { %v3472_v60 = vpop.eup %3471  ;;  %v1529_v50 = vadd.f32 1.0, %v3470_v34 }
 0x388   :  { %v3474_v6 = vpop.eup %3473  ;;  %v4778_v47 = vadd.f32 %v1549_v0, %v1547_v31  ;;  %v1548_v51 = vmul.f32 %v3472_v60, %v1400_v10 }
 0x389   :  { %v3476_v44 = vpop.eup %3475 }
 0x38a   :  { %v1550_v52 = vmul.f32 %v3476_v44, %v3474_v6  ;;  %3479 = vtanh.f32 %v4778_v47  ;;  %v5395_v44 = vld [vmem:[#allocation25_spill] sm:$0xff] }
 0x38b   :  { %3481 = vrcp.f32 %v1529_v50 }
 0x38c   :  { %v4780_v53 = vadd.f32 %v1550_v52, %v1548_v51  ;;  %v5396_v51 = vld [vmem:[#allocation27_spill] sm:$0xff] }
 0x38d   :  { %v3478_v63 = vpop.eup %3477 }
 0x38e   :  { %3483 = vtanh.f32 %v4780_v53  ;;  %v1576_v41 = vpack.c.bf16 %v4780_v53, %v4778_v47 }
 0x390   :  { %3164 = vmatmul.mubr.bf16.vlgmr.msra.gmra.mxu1 %v1576_v41 }
 0x391   :  { %1693 = vmatpush1.bf16.msra.mxu1 %v4789_v32  ;;  %1724 = vmatprep.mubr.bf16.mxu1 %v5368_v7 }
 0x392   :  { %1694 = vmatprep.subr.bf16.mxu1 %v4796_v54 }
 0x395   :  { %1695 = vmatpush1.bf16.msra.mxu1 %v4802_v56 }
 0x396   :  { %1696 = vmatprep.subr.bf16.mxu1 %v4808_v61 }
 0x397   :  { %v3480_v3 = vpop.eup %3479 }
 0x398   :  { %v3482_v5 = vpop.eup %3481  ;;  %v1555_v49 = vmul.f32 %v3480_v3, %v3478_v63  ;;  %v5397_v3 = vld [vmem:[#allocation29_spill] sm:$0xff] }
 0x399   :  { %1697 = vmatpush1.bf16.msra.mxu1 %v4814_v46 }
 0x39a   :  { %1698 = vmatprep.subr.bf16.mxu1 %v4820_v9 }
 0x39b   :  { %v3484_v62 = vpop.eup %3483 }
 0x39c   :  { %v1556_v58 = vmul.f32 %v3484_v62, %v3482_v5 }
 0x39d   :  { %1699 = vmatpush1.bf16.msra.mxu1 %v4826_v59 }
 0x39e   :  { %1700 = vmatprep.subr.bf16.mxu1 %v4832_v15  ;;  %v2981_v4 = vpack.c.bf16 %v1556_v58, %v1555_v49  ;;  %v5398_v49 = vld [vmem:[#allocation31_spill] sm:$0xff] }
 0x3a0   :  { %3009 = vst [vmem:[%s5289_s7 + $0x10] sm:$0xff] %v2981_v4   ;;  %1682 = vmatmul.mubr.bf16.vlgmr.msra.gmra.mxu0 %v2981_v4 }
 0x3a1   :  { %1701 = vmatpush1.bf16.msra.mxu1 %v4841_v12  ;;  %3168 = vmatpush3.bf16.msra.mxu0 %v4607_v11 }
 0x3a2   :  { %1702 = vmatprep.subr.bf16.mxu1 %v4848_v2  ;;  %3169 = vmatprep.subr.bf16.mxu0 %v5369_v55 }
 0x3a3   :  { %3183 = vmatprep.mubr.msk.bf16.mxu0 %vm3768_vm0, %v5369_v55 }
 0x3a5   :  { %1703 = vmatpush1.bf16.msra.mxu1 %v4857_v48  ;;  %3170 = vmatpush3.bf16.msra.mxu0 %v4618_v13 }
 0x3a6   :  { %1704 = vmatprep.subr.bf16.mxu1 %v4864_v28  ;;  %3171 = vmatprep.subr.bf16.mxu0 %v5369_v55 }
 0x3a9   :  { %1705 = vmatpush1.bf16.msra.mxu1 %v4871_v18  ;;  %3172 = vmatpush3.bf16.msra.mxu0 %v4627_v14 }
 0x3aa   :  { %1706 = vmatprep.subr.bf16.mxu1 %v4878_v30  ;;  %3173 = vmatprep.subr.bf16.mxu0 %v5369_v55 }
 0x3ad   :  { %1707 = vmatpush1.bf16.msra.mxu1 %v4885_v36  ;;  %3174 = vmatpush3.bf16.msra.mxu0 %v4636_v16 }
 0x3ae   :  { %3175 = vmatprep.subr.bf16.mxu0 %v5369_v55  ;;  %1885 = vmatprep.subr.bf16.mxu1 %v4543_v35 }
 0x3b0   :  { %1725 = vmatmul.mubr.bf16.vlgmr.msra.gmra.mxu1 %v2981_v4 }
 0x3b1   :  { %3176 = vmatpush3.bf16.msra.mxu0 %v4644_v17  ;;  %1886 = vmatpush1.bf16.msra.mxu1 %v4650_v19 }
 0x3b2   :  { %3177 = vmatprep.subr.bf16.mxu0 %v5369_v55  ;;  %1887 = vmatprep.subr.bf16.mxu1 %v4657_v20 }
 0x3b3   :  { %1917 = vmatprep.mubr.bf16.mxu1 %v5368_v7 }
 0x3b5   :  { %3178 = vmatpush3.bf16.msra.mxu0 %v4664_v21  ;;  %1888 = vmatpush1.bf16.msra.mxu1 %v4670_v22 }
 0x3b6   :  { %3179 = vmatprep.subr.bf16.mxu0 %v5369_v55  ;;  %1889 = vmatprep.subr.bf16.mxu1 %v4677_v23 }
 0x3b9   :  { %3180 = vmatpush3.bf16.msra.mxu0 %v4683_v24  ;;  %1890 = vmatpush1.bf16.msra.mxu1 %v4689_v25 }
 0x3ba   :  { %3181 = vmatprep.subr.bf16.mxu0 %v5369_v55  ;;  %1891 = vmatprep.subr.bf16.mxu1 %v4696_v26 }
 0x3bd   :  { %3182 = vmatpush3.bf16.msra.mxu0 %v4702_v27  ;;  %1892 = vmatpush1.bf16.msra.mxu1 %v4708_v1 }
 0x3be   :  { %1928 = vmatprep.subr.bf16.mxu0 %v4714_v8  ;;  %1893 = vmatprep.subr.bf16.mxu1 %v4720_v29 }
 0x3c1   :  { %1894 = vmatpush1.bf16.msra.mxu1 %v4726_v37 }
 0x3c2   :  { %1895 = vmatprep.subr.bf16.mxu1 %v4732_v38 }
 0x3c5   :  { %1896 = vmatpush1.bf16.msra.mxu1 %v4738_v39 }
 0x3c6   :  { %1897 = vmatprep.subr.bf16.mxu1 %v4744_v40 }
 0x3c9   :  { %1898 = vmatpush1.bf16.msra.mxu1 %v4750_v43 }
 0x3ca   :  { %1899 = vmatprep.subr.bf16.mxu1 %v4756_v45  ;;  %v5399_v45 = vld [vmem:[#allocation28_spill] sm:$0xff] }
 0x3cd   :  { %1900 = vmatpush1.bf16.msra.mxu1 %v4762_v42 }
 0x3ce   :  { %3187 = vmatprep.subr.bf16.mxu1 %v5369_v55 }
 0x450   :  { %v1611_v34 = vpop.f32.mrf.mxu1 }
 0x452   :  { %v3165_v31 = vpop.f32.mrf.mxu1 }
 0x454   :  { %v1614_v0 = vpop.f32.mrf.mxu1 }
 0x456   :  { %v3166_v60 = vpop.f32.mrf.mxu1 }
 0x460   :  { %v1683_v57 = vpop.f32.mrf.mxu0 }
 0x461   :  { %v1684_v50 = vadd.f32 %v1683_v57, %v5395_v44 }
 0x462   :  { %v1685_v6 = vpop.f32.mrf.mxu0 }
 0x463   :  { %v1686_v52 = vadd.f32 %v1685_v6, %v5396_v51  ;;  %v2884_v63 = vmul.f32 -1.442695, %v1684_v50  ;;  %v5400_v6 = vld [vmem:[#allocation32_spill] sm:$0xff]  ;;  %v1612_v50 = vadd.f32 %v4495_v33, %v1611_v34 }
 0x464   :  { %v1687_v10 = vpop.f32.mrf.mxu0 }
 0x465   :  { %v1688_v5 = vadd.f32 %v1687_v10, %v5397_v3  ;;  %v2885_v62 = vmul.f32 -1.442695, %v1686_v52  ;;  %3485 = vpow2.f32 %v2884_v63  ;;  %v5401_v52 = vld [vmem:[#allocation26_spill] sm:$0xff]  ;;  %v1615_v3 = vadd.f32 %v4495_v33, %v1614_v0  ;;  %v1626_v0 = vpop.permute.xlu0 %1625 }
 0x466   :  { %v1689_v41 = vpop.f32.mrf.mxu0 }
 0x467   :  { %v1690_v58 = vadd.f32 %v1689_v41, %v5398_v49  ;;  %v2888_v42 = vmul.f32 -1.442695, %v1688_v5  ;;  %3487 = vpow2.f32 %v2885_v62  ;;  %v5402_v5 = vld [vmem:[#allocation30_spill] sm:$0xff] }
 0x469   :  { %v2889_v60 = vmul.f32 -1.442695, %v1690_v58  ;;  %3489 = vpow2.f32 %v2888_v42 }
 0x46b   :  { %3491 = vpow2.f32 %v2889_v60 }
 0x470   :  { %v1726_v4 = vpop.f32.mrf.mxu1 }
 0x471   :  { %v1727_v41 = vadd.f32 %v1726_v4, %v5401_v52 }
 0x472   :  { %v1728_v31 = vpop.f32.mrf.mxu1  ;;  %v3486_v51 = vpop.eup %3485 }
 0x473   :  { %v1729_v43 = vadd.f32 %v1728_v31, %v5399_v45  ;;  %v1759_v45 = vadd.f32 1.0, %v3486_v51  ;;  %v2886_v42 = vmul.f32 -1.442695, %v1727_v41  ;;  %v1631_v51 = vpop.permute.xlu1 %1630 }
 0x474   :  { %v1730_v40 = vpop.f32.mrf.mxu1  ;;  %v3488_v63 = vpop.eup %3487 }
 0x475   :  { %v2887_v39 = vmul.f32 -1.442695, %v1729_v43  ;;  %v1731_v43 = vadd.f32 %v1730_v40, %v5402_v5  ;;  %v1760_v49 = vadd.f32 1.0, %v3488_v63 }
 0x476   :  { %v1732_v57 = vpop.f32.mrf.mxu1  ;;  %v3490_v62 = vpop.eup %3489 }
 0x477   :  { %v1733_v44 = vadd.f32 %v1732_v57, %v5400_v6  ;;  %3493 = vpow2.f32 %v2887_v39  ;;  %v2890_v31 = vmul.f32 -1.442695, %v1731_v43  ;;  %v1763_v34 = vadd.f32 1.0, %v3490_v62 }
 0x478   :  { %v3492_v58 = vpop.eup %3491 }
 0x479   :  { %v2891_v10 = vmul.f32 -1.442695, %v1733_v44  ;;  %v1764_v4 = vadd.f32 1.0, %v3492_v58 }
 0x47b   :  { %3495 = vpow2.f32 %v2891_v10 }
 0x47c   :  { %3497 = vtanh.f32 %v1612_v50 }
 0x47d   :  { %3499 = vtanh.f32 %v1615_v3 }
 0x47e   :  { %3501 = vrcp.f32 %v1759_v45 }
 0x47f   :  { %3503 = vpow2.f32 %v2886_v42 }
 0x480   :  { %3505 = vrcp.f32 %v1760_v49 }
 0x484   :  { %v3494_v39 = vpop.eup %3493 }
 0x485   :  { %v1762_v60 = vadd.f32 1.0, %v3494_v39 }
 0x487   :  { %3507 = vrcp.f32 %v1762_v60 }
 0x488   :  { %v3496_v57 = vpop.eup %3495  ;;  %3509 = vpow2.f32 %v2890_v31 }
 0x489   :  { %3511 = vrcp.f32 %v1763_v34  ;;  %v1766_v33 = vadd.f32 1.0, %v3496_v57  ;;  %v3498_v40 = vpop.eup %3497 }
 0x48a   :  { %3513 = vrcp.f32 %v1764_v4  ;;  %v1633_v6 = vmul.f32 %v3498_v40, %v1626_v0  ;;  %v3500_v44 = vpop.eup %3499 }
 0x48b   :  { %3515 = vrcp.f32 %v1766_v33  ;;  %v3502_v10 = vpop.eup %3501  ;;  %v1634_v41 = vmul.f32 %v3500_v44, %v1631_v51  ;;  %v5405_v51 = vld [vmem:[#allocation7_spill] sm:$0xff] }
 0x48c   :  { %v3504_v50 = vpop.eup %3503  ;;  %v1635_v63 = vadd.f32 %v1633_v6, %v4778_v47 }
 0x48d   :  { %v3506_v52 = vpop.eup %3505  ;;  %v1761_v62 = vadd.f32 1.0, %v3504_v50  ;;  %v1636_v58 = vadd.f32 %v1634_v41, %v4780_v53  ;;  %v5404_v50 = vld [vmem:[#allocation6_spill] sm:$0xff]  ;;  %v5407_v41 = vld [vmem:[#allocation9_spill] sm:$0xff] }
 0x48e   :  { %v1783_v5 = vmul.f32 %v3502_v10, %v1635_v63 }
 0x48f   :  { %3517 = vrcp.f32 %v1761_v62 }
 0x494   :  { %v3508_v3 = vpop.eup %3507 }
 0x495   :  { %v3510_v45 = vpop.eup %3509  ;;  %v1785_v43 = vmul.f32 %v3508_v3, %v3506_v52  ;;  %v5406_v52 = vld [vmem:[#allocation8_spill] sm:$0xff] }
 0x496   :  { %v3512_v42 = vpop.eup %3511  ;;  %v1765_v34 = vadd.f32 1.0, %v3510_v45 }
 0x497   :  { %v3514_v49 = vpop.eup %3513  ;;  %v4928_v39 = vadd.f32 %v1785_v43, %v1783_v5  ;;  %v1784_v60 = vmul.f32 %v3512_v42, %v1636_v58 }
 0x498   :  { %v3516_v31 = vpop.eup %3515 }
 0x499   :  { %v1786_v4 = vmul.f32 %v3516_v31, %v3514_v49  ;;  %3519 = vtanh.f32 %v4928_v39  ;;  %v5408_v49 = vld [vmem:[#allocation33_spill] sm:$0xff]  ;;  %v5409_v31 = vld [vmem:[#allocation35_spill] sm:$0xff] }
 0x49a   :  { %3521 = vrcp.f32 %v1765_v34 }
 0x49b   :  { %v4930_v57 = vadd.f32 %v1786_v4, %v1784_v60 }
 0x49c   :  { %v3518_v53 = vpop.eup %3517 }
 0x49d   :  { %3523 = vtanh.f32 %v4930_v57  ;;  %v1812_v47 = vpack.c.bf16 %v4930_v57, %v4928_v39 }
 0x49f   :  { %3184 = vmatmul.mubr.bf16.vlgmr.msra.gmra.mxu0 %v1812_v47  ;;  %v5410_v47 = vld [vmem:[#allocation37_spill] sm:$0xff] }
 0x4a0   :  { %1929 = vmatpush1.bf16.msra.mxu0 %v4789_v32  ;;  %1960 = vmatprep.mubr.bf16.mxu0 %v5368_v7 }
 0x4a1   :  { %1930 = vmatprep.subr.bf16.mxu0 %v4796_v54 }
 0x4a4   :  { %1931 = vmatpush1.bf16.msra.mxu0 %v4802_v56 }
 0x4a5   :  { %1932 = vmatprep.subr.bf16.mxu0 %v4808_v61 }
 0x4a6   :  { %v3520_v33 = vpop.eup %3519 }
 0x4a7   :  { %v3522_v40 = vpop.eup %3521  ;;  %v1791_v6 = vmul.f32 %v3520_v33, %v3518_v53 }
 0x4a8   :  { %1933 = vmatpush1.bf16.msra.mxu0 %v4814_v46 }
 0x4a9   :  { %1934 = vmatprep.subr.bf16.mxu0 %v4820_v9 }
 0x4aa   :  { %v3524_v0 = vpop.eup %3523 }
 0x4ab   :  { %v1792_v44 = vmul.f32 %v3524_v0, %v3522_v40  ;;  %v5411_v40 = vld [vmem:[#allocation39_spill] sm:$0xff] }
 0x4ac   :  { %1935 = vmatpush1.bf16.msra.mxu0 %v4826_v59 }
 0x4ad   :  { %1936 = vmatprep.subr.bf16.mxu0 %v4832_v15  ;;  %v2986_v10 = vpack.c.bf16 %v1792_v44, %v1791_v6 }
 0x4af   :  { %3010 = vst [vmem:[%s5289_s7 + $0x18] sm:$0xff] %v2986_v10   ;;  %1918 = vmatmul.mubr.bf16.vlgmr.msra.gmra.mxu1 %v2986_v10 }
 0x4b0   :  { %1937 = vmatpush1.bf16.msra.mxu0 %v4841_v12  ;;  %3188 = vmatpush3.bf16.msra.mxu1 %v4607_v11 }
 0x4b1   :  { %1938 = vmatprep.subr.bf16.mxu0 %v4848_v2  ;;  %3189 = vmatprep.subr.bf16.mxu1 %v5369_v55 }
 0x4b2   :  { %3203 = vmatprep.mubr.msk.bf16.mxu1 %vm3768_vm0, %v5369_v55 }
 0x4b4   :  { %1939 = vmatpush1.bf16.msra.mxu0 %v4857_v48  ;;  %3190 = vmatpush3.bf16.msra.mxu1 %v4618_v13 }
 0x4b5   :  { %1940 = vmatprep.subr.bf16.mxu0 %v4864_v28  ;;  %3191 = vmatprep.subr.bf16.mxu1 %v5369_v55 }
 0x4b8   :  { %1941 = vmatpush1.bf16.msra.mxu0 %v4871_v18  ;;  %3192 = vmatpush3.bf16.msra.mxu1 %v4627_v14 }
 0x4b9   :  { %1942 = vmatprep.subr.bf16.mxu0 %v4878_v30  ;;  %3193 = vmatprep.subr.bf16.mxu1 %v5369_v55 }
 0x4bc   :  { %1943 = vmatpush1.bf16.msra.mxu0 %v4885_v36  ;;  %3194 = vmatpush3.bf16.msra.mxu1 %v4636_v16 }
 0x4bd   :  { %3195 = vmatprep.subr.bf16.mxu1 %v5369_v55  ;;  %2121 = vmatprep.subr.bf16.mxu0 %v4543_v35  ;;  %v5403_v35 = vld [vmem:[#allocation5_spill] sm:$0xff] }
 0x4bf   :  { %1961 = vmatmul.mubr.bf16.vlgmr.msra.gmra.mxu0 %v2986_v10 }
 0x4c0   :  { %3196 = vmatpush3.bf16.msra.mxu1 %v4644_v17  ;;  %2122 = vmatpush1.bf16.msra.mxu0 %v4650_v19 }
 0x4c1   :  { %3197 = vmatprep.subr.bf16.mxu1 %v5369_v55  ;;  %2123 = vmatprep.subr.bf16.mxu0 %v4657_v20 }
 0x4c2   :  { %2153 = vmatprep.mubr.bf16.mxu0 %v5368_v7 }
 0x4c4   :  { %3198 = vmatpush3.bf16.msra.mxu1 %v4664_v21  ;;  %2124 = vmatpush1.bf16.msra.mxu0 %v4670_v22 }
 0x4c5   :  { %3199 = vmatprep.subr.bf16.mxu1 %v5369_v55  ;;  %2125 = vmatprep.subr.bf16.mxu0 %v4677_v23 }
 0x4c8   :  { %3200 = vmatpush3.bf16.msra.mxu1 %v4683_v24  ;;  %2126 = vmatpush1.bf16.msra.mxu0 %v4689_v25 }
 0x4c9   :  { %3201 = vmatprep.subr.bf16.mxu1 %v5369_v55  ;;  %2127 = vmatprep.subr.bf16.mxu0 %v4696_v26 }
 0x4cc   :  { %3202 = vmatpush3.bf16.msra.mxu1 %v4702_v27  ;;  %2128 = vmatpush1.bf16.msra.mxu0 %v4708_v1 }
 0x4cd   :  { %2164 = vmatprep.subr.bf16.mxu1 %v4714_v8  ;;  %2129 = vmatprep.subr.bf16.mxu0 %v4720_v29 }
 0x4d0   :  { %2130 = vmatpush1.bf16.msra.mxu0 %v4726_v37 }
 0x4d1   :  { %2131 = vmatprep.subr.bf16.mxu0 %v4732_v38 }
 0x4d4   :  { %2132 = vmatpush1.bf16.msra.mxu0 %v5403_v35 }
 0x4d5   :  { %2133 = vmatprep.subr.bf16.mxu0 %v5404_v50 }
 0x4d8   :  { %2134 = vmatpush1.bf16.msra.mxu0 %v5405_v51 }
 0x4d9   :  { %2135 = vmatprep.subr.bf16.mxu0 %v5406_v52 }
 0x4dc   :  { %2136 = vmatpush1.bf16.msra.mxu0 %v5407_v41 }
 0x4dd   :  { %3207 = vmatprep.subr.bf16.mxu0 %v5369_v55 }
 0x55f   :  { %v1847_v63 = vpop.f32.mrf.mxu0 }
 0x561   :  { %v3185_v3 = vpop.f32.mrf.mxu0 }
 0x563   :  { %v1850_v45 = vpop.f32.mrf.mxu0 }
 0x565   :  { %v3186_v5 = vpop.f32.mrf.mxu0 }
 0x566   :  { %v5412_v5 = vld [vmem:[#allocation36_spill] sm:$0xff] }
 0x56f   :  { %v1919_v43 = vpop.f32.mrf.mxu1 }
 0x570   :  { %v1920_v58 = vadd.f32 %v1919_v43, %v5408_v49 }
 0x571   :  { %v1921_v42 = vpop.f32.mrf.mxu1 }
 0x572   :  { %v1922_v34 = vadd.f32 %v1921_v42, %v5409_v31  ;;  %v2898_v4 = vmul.f32 -1.442695, %v1920_v58  ;;  %v5413_v42 = vld [vmem:[#allocation40_spill] sm:$0xff]  ;;  %v5000_v58 = vld [vmem:[%s5288_s3] ss:$0 sm:$0xff] }
 0x573   :  { %v1923_v62 = vpop.f32.mrf.mxu1  ;;  %v1848_v31 = vadd.f32 %v5000_v58, %v1847_v63 }
 0x574   :  { %v1924_v53 = vadd.f32 %v1923_v62, %v5410_v47  ;;  %v2899_v33 = vmul.f32 -1.442695, %v1922_v34  ;;  %3525 = vpow2.f32 %v2898_v4 }
 0x575   :  { %v1925_v60 = vpop.f32.mrf.mxu1 }
 0x576   :  { %v1926_v0 = vadd.f32 %v1925_v60, %v5411_v40  ;;  %v2902_v44 = vmul.f32 -1.442695, %v1924_v53  ;;  %3527 = vpow2.f32 %v2899_v33  ;;  %v5414_v60 = vld [vmem:[#allocation34_spill] sm:$0xff] }
 0x577   :  { %v5415_v33 = vld [vmem:[#allocation38_spill] sm:$0xff] }
 0x578   :  { %v2903_v3 = vmul.f32 -1.442695, %v1926_v0  ;;  %3529 = vpow2.f32 %v2902_v44 }
 0x57a   :  { %3531 = vpow2.f32 %v2903_v3 }
 0x57f   :  { %v1962_v6 = vpop.f32.mrf.mxu0 }
 0x580   :  { %v1963_v4 = vadd.f32 %v1962_v6, %v5414_v60 }
 0x581   :  { %v1964_v10 = vpop.f32.mrf.mxu0  ;;  %v3526_v34 = vpop.eup %3525 }
 0x582   :  { %v1965_v41 = vadd.f32 %v1964_v10, %v5412_v5  ;;  %v1995_v53 = vadd.f32 1.0, %v3526_v34 }
 0x583   :  { %v1966_v52 = vpop.f32.mrf.mxu0  ;;  %v3528_v47 = vpop.eup %3527 }
 0x584   :  { %v2901_v51 = vmul.f32 -1.442695, %v1965_v41  ;;  %v1851_v41 = vadd.f32 %v5000_v58, %v1850_v45  ;;  %v1967_v40 = vadd.f32 %v1966_v52, %v5415_v33  ;;  %v1996_v44 = vadd.f32 1.0, %v3528_v47 }
 0x585   :  { %v1968_v43 = vpop.f32.mrf.mxu0  ;;  %v3530_v0 = vpop.eup %3529 }
 0x586   :  { %v1969_v49 = vadd.f32 %v1968_v43, %v5413_v42  ;;  %3533 = vpow2.f32 %v2901_v51  ;;  %v2900_v51 = vmul.f32 -1.442695, %v1963_v4  ;;  %v2904_v5 = vmul.f32 -1.442695, %v1967_v40  ;;  %v1867_v4 = vpop.permute.xlu1 %1866 }
 0x587   :  { %v3532_v10 = vpop.eup %3531  ;;  %v1999_v63 = vadd.f32 1.0, %v3530_v0 }
 0x588   :  { %v2905_v62 = vmul.f32 -1.442695, %v1969_v49  ;;  %v2000_v6 = vadd.f32 1.0, %v3532_v10  ;;  %v1862_v49 = vpop.permute.xlu0 %1861 }
 0x58a   :  { %3535 = vpow2.f32 %v2905_v62 }
 0x58b   :  { %3537 = vtanh.f32 %v1848_v31 }
 0x58c   :  { %3539 = vtanh.f32 %v1851_v41 }
 0x58d   :  { %3541 = vrcp.f32 %v1995_v53 }
 0x58e   :  { %3543 = vpow2.f32 %v2900_v51 }
 0x58f   :  { %3545 = vrcp.f32 %v1996_v44 }
 0x593   :  { %v3534_v3 = vpop.eup %3533 }
 0x594   :  { %v1998_v43 = vadd.f32 1.0, %v3534_v3 }
 0x596   :  { %3547 = vrcp.f32 %v1998_v43 }
 0x597   :  { %v3536_v42 = vpop.eup %3535  ;;  %3549 = vpow2.f32 %v2904_v5 }
 0x598   :  { %3551 = vrcp.f32 %v1999_v63  ;;  %v2002_v45 = vadd.f32 1.0, %v3536_v42  ;;  %v3538_v52 = vpop.eup %3537 }
 0x599   :  { %3553 = vrcp.f32 %v2000_v6  ;;  %v1869_v62 = vmul.f32 %v3538_v52, %v1862_v49  ;;  %v3540_v31 = vpop.eup %3539 }
 0x59a   :  { %3555 = vrcp.f32 %v2002_v45  ;;  %v3542_v34 = vpop.eup %3541  ;;  %v1870_v41 = vmul.f32 %v3540_v31, %v1867_v4 }
 0x59b   :  { %v3544_v60 = vpop.eup %3543  ;;  %v1871_v53 = vadd.f32 %v1869_v62, %v4928_v39 }
 0x59c   :  { %v3546_v47 = vpop.eup %3545  ;;  %v1997_v10 = vadd.f32 1.0, %v3544_v60  ;;  %v1872_v5 = vadd.f32 %v1870_v41, %v4930_v57 }
 0x59d   :  { %v2019_v51 = vmul.f32 %v3542_v34, %v1871_v53 }
 0x59e   :  { %3557 = vrcp.f32 %v1997_v10 }
 0x5a3   :  { %v3548_v33 = vpop.eup %3547 }
 0x5a4   :  { %v3550_v40 = vpop.eup %3549  ;;  %v2021_v0 = vmul.f32 %v3548_v33, %v3546_v47 }
 0x5a5   :  { %v3552_v44 = vpop.eup %3551  ;;  %v2001_v6 = vadd.f32 1.0, %v3550_v40 }
 0x5a6   :  { %v3554_v3 = vpop.eup %3553  ;;  %v5008_v63 = vadd.f32 %v2021_v0, %v2019_v51  ;;  %v2020_v42 = vmul.f32 %v3552_v44, %v1872_v5  ;;  %v5423_v51 = vld [vmem:[#allocation44_spill] sm:$0xff] }
 0x5a7   :  { %v3556_v43 = vpop.eup %3555  ;;  %v5424_v5 = vld [vmem:[#allocation48_spill] sm:$0xff] }
 0x5a8   :  { %v2022_v45 = vmul.f32 %v3556_v43, %v3554_v3  ;;  %3559 = vtanh.f32 %v5008_v63 }
 0x5a9   :  { %3561 = vrcp.f32 %v2001_v6 }
 0x5aa   :  { %v5010_v52 = vadd.f32 %v2022_v45, %v2020_v42 }
 0x5ab   :  { %v3558_v57 = vpop.eup %3557 }
 0x5ac   :  { %3563 = vtanh.f32 %v5010_v52  ;;  %v2048_v39 = vpack.c.bf16 %v5010_v52, %v5008_v63 }
 0x5ae   :  { %3204 = vmatmul.mubr.bf16.vlgmr.msra.gmra.mxu1 %v2048_v39  ;;  %v5425_v39 = vld [vmem:[#allocation42_spill] sm:$0xff] }
 0x5af   :  { %2165 = vmatpush1.bf16.msra.mxu1 %v4789_v32  ;;  %2196 = vmatprep.mubr.bf16.mxu1 %v5368_v7 }
 0x5b0   :  { %2166 = vmatprep.subr.bf16.mxu1 %v4796_v54 }
 0x5b3   :  { %2167 = vmatpush1.bf16.msra.mxu1 %v4802_v56 }
 0x5b4   :  { %2168 = vmatprep.subr.bf16.mxu1 %v4808_v61 }
 0x5b5   :  { %v3560_v49 = vpop.eup %3559 }
 0x5b6   :  { %v3562_v62 = vpop.eup %3561  ;;  %v2027_v34 = vmul.f32 %v3560_v49, %v3558_v57 }
 0x5b7   :  { %2169 = vmatpush1.bf16.msra.mxu1 %v4814_v46 }
 0x5b8   :  { %2170 = vmatprep.subr.bf16.mxu1 %v4820_v9 }
 0x5b9   :  { %v3564_v31 = vpop.eup %3563 }
 0x5ba   :  { %v2028_v60 = vmul.f32 %v3564_v31, %v3562_v62 }
 0x5bb   :  { %2171 = vmatpush1.bf16.msra.mxu1 %v4826_v59 }
 0x5bc   :  { %2172 = vmatprep.subr.bf16.mxu1 %v4832_v15  ;;  %v2991_v4 = vpack.c.bf16 %v2028_v60, %v2027_v34  ;;  %v5426_v34 = vld [vmem:[#allocation46_spill] sm:$0xff] }
 0x5be   :  { %3011 = vst [vmem:[%s5289_s7 + $0x20] sm:$0xff] %v2991_v4   ;;  %2154 = vmatmul.mubr.bf16.vlgmr.msra.gmra.mxu0 %v2991_v4 }
 0x5bf   :  { %2173 = vmatpush1.bf16.msra.mxu1 %v4841_v12  ;;  %3208 = vmatpush3.bf16.msra.mxu0 %v4607_v11  ;;  %v5048_v11 = vld [vmem:[%s5285_s4 + $0xe4] ss:$16 sps:$4 sm:$0xff]  }
 0x5c0   :  { %2174 = vmatprep.subr.bf16.mxu1 %v4848_v2  ;;  %3209 = vmatprep.subr.bf16.mxu0 %v5369_v55 }
 0x5c1   :  { %3223 = vmatprep.mubr.msk.bf16.mxu0 %vm3768_vm0, %v5369_v55 }
 0x5c3   :  { %2175 = vmatpush1.bf16.msra.mxu1 %v4857_v48  ;;  %3210 = vmatpush3.bf16.msra.mxu0 %v4618_v13  ;;  %v5416_v13 = vld [vmem:[#allocation7_spill] sm:$0xff] }
 0x5c4   :  { %2176 = vmatprep.subr.bf16.mxu1 %v4864_v28  ;;  %3211 = vmatprep.subr.bf16.mxu0 %v5369_v55 }
 0x5c7   :  { %2177 = vmatpush1.bf16.msra.mxu1 %v4871_v18  ;;  %3212 = vmatpush3.bf16.msra.mxu0 %v4627_v14  ;;  %v5417_v14 = vld [vmem:[#allocation8_spill] sm:$0xff] }
 0x5c8   :  { %2178 = vmatprep.subr.bf16.mxu1 %v4878_v30  ;;  %3213 = vmatprep.subr.bf16.mxu0 %v5369_v55 }
 0x5cb   :  { %2179 = vmatpush1.bf16.msra.mxu1 %v4885_v36  ;;  %3214 = vmatpush3.bf16.msra.mxu0 %v4636_v16  ;;  %v5418_v16 = vld [vmem:[#allocation9_spill] sm:$0xff] }
 0x5cc   :  { %3215 = vmatprep.subr.bf16.mxu0 %v5369_v55  ;;  %2357 = vmatprep.subr.bf16.mxu1 %v5048_v11 }
 0x5ce   :  { %2197 = vmatmul.mubr.bf16.vlgmr.msra.gmra.mxu1 %v2991_v4 }
 0x5cf   :  { %3216 = vmatpush3.bf16.msra.mxu0 %v4644_v17  ;;  %2358 = vmatpush1.bf16.msra.mxu1 %v4650_v19 }
 0x5d0   :  { %3217 = vmatprep.subr.bf16.mxu0 %v5369_v55  ;;  %2359 = vmatprep.subr.bf16.mxu1 %v4657_v20 }
 0x5d1   :  { %2389 = vmatprep.mubr.bf16.mxu1 %v5368_v7 }
 0x5d3   :  { %3218 = vmatpush3.bf16.msra.mxu0 %v4664_v21  ;;  %2360 = vmatpush1.bf16.msra.mxu1 %v4670_v22 }
 0x5d4   :  { %3219 = vmatprep.subr.bf16.mxu0 %v5369_v55  ;;  %2361 = vmatprep.subr.bf16.mxu1 %v4677_v23 }
 0x5d7   :  { %3220 = vmatpush3.bf16.msra.mxu0 %v4683_v24  ;;  %2362 = vmatpush1.bf16.msra.mxu1 %v4689_v25  ;;  %v5419_v25 = vld [vmem:[#allocation41_spill] sm:$0xff] }
 0x5d8   :  { %3221 = vmatprep.subr.bf16.mxu0 %v5369_v55  ;;  %2363 = vmatprep.subr.bf16.mxu1 %v4696_v26 }
 0x5db   :  { %3222 = vmatpush3.bf16.msra.mxu0 %v4702_v27  ;;  %2364 = vmatpush1.bf16.msra.mxu1 %v4708_v1  ;;  %v5420_v27 = vld [vmem:[#allocation43_spill] sm:$0xff] }
 0x5dc   :  { %2400 = vmatprep.subr.bf16.mxu0 %v4714_v8  ;;  %2365 = vmatprep.subr.bf16.mxu1 %v4720_v29 }
 0x5df   :  { %2366 = vmatpush1.bf16.msra.mxu1 %v4726_v37  ;;  %v5421_v37 = vld [vmem:[#allocation45_spill] sm:$0xff] }
 0x5e0   :  { %2367 = vmatprep.subr.bf16.mxu1 %v4732_v38 }
 0x5e3   :  { %2368 = vmatpush1.bf16.msra.mxu1 %v5403_v35 }
 0x5e4   :  { %2369 = vmatprep.subr.bf16.mxu1 %v5404_v50  ;;  %v5422_v50 = vld [vmem:[#allocation47_spill] sm:$0xff] }
 0x5e7   :  { %2370 = vmatpush1.bf16.msra.mxu1 %v5416_v13 }
 0x5e8   :  { %2371 = vmatprep.subr.bf16.mxu1 %v5417_v14 }
 0x5eb   :  { %2372 = vmatpush1.bf16.msra.mxu1 %v5418_v16 }
 0x5ec   :  { %3227 = vmatprep.subr.bf16.mxu1 %v5369_v55 }
 0x66e   :  { %v2083_v17 = vpop.f32.mrf.mxu1 }
 0x66f   :  { %v2084_v42 = vadd.f32 %v5000_v58, %v2083_v17 }
 0x670   :  { %v3205_v19 = vpop.f32.mrf.mxu1 }
 0x672   :  { %v2086_v20 = vpop.f32.mrf.mxu1 }
 0x673   :  { %v2087_v62 = vadd.f32 %v5000_v58, %v2086_v20 }
 0x674   :  { %v3206_v21 = vpop.f32.mrf.mxu1 }
 0x67e   :  { %v2155_v22 = vpop.f32.mrf.mxu0 }
 0x67f   :  { %v2156_v26 = vadd.f32 %v2155_v22, %v5419_v25 }
 0x680   :  { %v2157_v23 = vpop.f32.mrf.mxu0 }
 0x681   :  { %v2158_v1 = vadd.f32 %v2157_v23, %v5420_v27  ;;  %v2912_v29 = vmul.f32 -1.442695, %v2156_v26  ;;  %v2098_v26 = vpop.permute.xlu0 %2097 }
 0x682   :  { %v2159_v24 = vpop.f32.mrf.mxu0 }
 0x683   :  { %v2160_v38 = vadd.f32 %v2159_v24, %v5421_v37  ;;  %v2913_v35 = vmul.f32 -1.442695, %v2158_v1  ;;  %3565 = vpow2.f32 %v2912_v29  ;;  %v2103_v37 = vpop.permute.xlu1 %2102 }
 0x684   :  { %v2161_v8 = vpop.f32.mrf.mxu0 }
 0x685   :  { %v2162_v47 = vadd.f32 %v2161_v8, %v5422_v50  ;;  %v2916_v53 = vmul.f32 -1.442695, %v2160_v38  ;;  %3567 = vpow2.f32 %v2913_v35 }
 0x687   :  { %v2917_v40 = vmul.f32 -1.442695, %v2162_v47  ;;  %3569 = vpow2.f32 %v2916_v53 }
 0x689   :  { %3571 = vpow2.f32 %v2917_v40 }
 0x68e   :  { %v2198_v41 = vpop.f32.mrf.mxu1 }
 0x68f   :  { %v2199_v57 = vadd.f32 %v2198_v41, %v5425_v39 }
 0x690   :  { %v2200_v33 = vpop.f32.mrf.mxu1  ;;  %v3566_v45 = vpop.eup %3565 }
 0x691   :  { %v2201_v0 = vadd.f32 %v2200_v33, %v5423_v51  ;;  %v2231_v31 = vadd.f32 1.0, %v3566_v45  ;;  %v2914_v4 = vmul.f32 -1.442695, %v2199_v57 }
 0x692   :  { %v2202_v44 = vpop.f32.mrf.mxu1  ;;  %v3568_v49 = vpop.eup %3567 }
 0x693   :  { %v2915_v10 = vmul.f32 -1.442695, %v2201_v0  ;;  %v2203_v60 = vadd.f32 %v2202_v44, %v5426_v34  ;;  %v2232_v14 = vadd.f32 1.0, %v3568_v49  ;;  %v3744_v34 = vld [vmem:[%s5285_s4 + $0x60] ss:$16 sps:$4 sm:$0xff]  }
 0x694   :  { %v2204_v3 = vpop.f32.mrf.mxu1  ;;  %v3570_v13 = vpop.eup %3569 }
 0x695   :  { %v2205_v43 = vadd.f32 %v2204_v3, %v5424_v5  ;;  %3573 = vpow2.f32 %v2915_v10  ;;  %v2918_v21 = vmul.f32 -1.442695, %v2203_v60  ;;  %v2235_v17 = vadd.f32 1.0, %v3570_v13  ;;  %v3745_v60 = vld [vmem:[%s5285_s4 + $0x44] ss:$16 sps:$4 sm:$0xff]  }
 0x696   :  { %v3572_v16 = vpop.eup %3571  ;;  %v3747_v13 = vld [vmem:[%s5285_s4 + $0x24] ss:$16 sps:$4 sm:$0xff]  }
 0x697   :  { %v2919_v6 = vmul.f32 -1.442695, %v2205_v43  ;;  %v2236_v23 = vadd.f32 1.0, %v3572_v16  ;;  %v3749_v16 = vld [vmem:[%s5285_s4 + $0x4] ss:$16 sps:$4 sm:$0xff]  }
 0x699   :  { %3575 = vpow2.f32 %v2919_v6 }
 0x69a   :  { %3577 = vtanh.f32 %v2084_v42 }
 0x69b   :  { %3579 = vtanh.f32 %v2087_v62 }
 0x69c   :  { %3581 = vrcp.f32 %v2231_v31  ;;  %v3742_v31 = vld [vmem:[%s5285_s4 + $0xec] ss:$16 sps:$4 sm:$0xff]  }
 0x69d   :  { %3583 = vpow2.f32 %v2914_v4  ;;  %v3746_v4 = vld [vmem:[%s5285_s4 + $0x40] ss:$16 sps:$4 sm:$0xff]  }
 0x69e   :  { %3585 = vrcp.f32 %v2232_v14  ;;  %v3748_v14 = vld [vmem:[%s5285_s4 + $0x20] ss:$16 sps:$4 sm:$0xff]  }
 0x6a2   :  { %v3574_v19 = vpop.eup %3573 }
 0x6a3   :  { %v2234_v22 = vadd.f32 1.0, %v3574_v19  ;;  %v3750_v19 = vld [vmem:[%s5285_s4] ss:$16 sps:$4 sm:$0xff]  }
 0x6a5   :  { %3587 = vrcp.f32 %v2234_v22 }
 0x6a6   :  { %v3576_v24 = vpop.eup %3575  ;;  %3589 = vpow2.f32 %v2918_v21 }
 0x6a7   :  { %3591 = vrcp.f32 %v2235_v17  ;;  %v2238_v20 = vadd.f32 1.0, %v3576_v24  ;;  %v3578_v25 = vpop.eup %3577 }
 0x6a8   :  { %3593 = vrcp.f32 %v2236_v23  ;;  %v2105_v27 = vmul.f32 %v3578_v25, %v2098_v26  ;;  %v3580_v1 = vpop.eup %3579  ;;  %v5427_v26 = vld [vmem:[#allocation49_spill] sm:$0xff] }
 0x6a9   :  { %3595 = vrcp.f32 %v2238_v20  ;;  %v3582_v8 = vpop.eup %3581  ;;  %v2106_v35 = vmul.f32 %v3580_v1, %v2103_v37  ;;  %v5428_v1 = vld [vmem:[#allocation51_spill] sm:$0xff] }
 0x6aa   :  { %v3584_v29 = vpop.eup %3583  ;;  %v2107_v50 = vadd.f32 %v2105_v27, %v5008_v63 }
 0x6ab   :  { %v3586_v38 = vpop.eup %3585  ;;  %v2233_v51 = vadd.f32 1.0, %v3584_v29  ;;  %v2108_v44 = vadd.f32 %v2106_v35, %v5010_v52 }
 0x6ac   :  { %v2255_v53 = vmul.f32 %v3582_v8, %v2107_v50 }
 0x6ad   :  { %3597 = vrcp.f32 %v2233_v51 }
 0x6b2   :  { %v3588_v47 = vpop.eup %3587 }
 0x6b3   :  { %v3590_v41 = vpop.eup %3589  ;;  %v2257_v33 = vmul.f32 %v3588_v47, %v3586_v38  ;;  %v5429_v38 = vld [vmem:[#allocation53_spill] sm:$0xff]  ;;  %v5430_v47 = vld [vmem:[#allocation55_spill] sm:$0xff] }
 0x6b4   :  { %v3592_v40 = vpop.eup %3591  ;;  %v2237_v5 = vadd.f32 1.0, %v3590_v41 }
 0x6b5   :  { %v3594_v0 = vpop.eup %3593  ;;  %v5088_v10 = vadd.f32 %v2257_v33, %v2255_v53  ;;  %v2256_v43 = vmul.f32 %v3592_v40, %v2108_v44 }
 0x6b6   :  { %v3596_v3 = vpop.eup %3595 }
 0x6b7   :  { %v2258_v6 = vmul.f32 %v3596_v3, %v3594_v0  ;;  %3599 = vtanh.f32 %v5088_v10  ;;  %v5431_v0 = vld [vmem:[#allocation52_spill] sm:$0xff] }
 0x6b8   :  { %3601 = vrcp.f32 %v2237_v5 }
 0x6b9   :  { %v5090_v42 = vadd.f32 %v2258_v6, %v2256_v43  ;;  %v5432_v6 = vld [vmem:[#allocation56_spill] sm:$0xff] }
 0x6ba   :  { %v3598_v52 = vpop.eup %3597 }
 0x6bb   :  { %3603 = vtanh.f32 %v5090_v42  ;;  %v2284_v63 = vpack.c.bf16 %v5090_v42, %v5088_v10 }
 0x6bd   :  { %3224 = vmatmul.mubr.bf16.vlgmr.msra.gmra.mxu0 %v2284_v63 }
 0x6be   :  { %2401 = vmatpush1.bf16.msra.mxu0 %v4789_v32  ;;  %2432 = vmatprep.mubr.bf16.mxu0 %v5368_v7 }
 0x6bf   :  { %2402 = vmatprep.subr.bf16.mxu0 %v4796_v54  ;;  %v3727_v54 = vld [vmem:[%s5284_s2 + $0x38] sm:$0xff]  }
 0x6c2   :  { %2403 = vmatpush1.bf16.msra.mxu0 %v4802_v56  ;;  %v3728_v56 = vld [vmem:[%s5284_s2 + $0x30] sm:$0xff]  }
 0x6c3   :  { %2404 = vmatprep.subr.bf16.mxu0 %v4808_v61  ;;  %v3729_v61 = vld [vmem:[%s5284_s2 + $0x28] sm:$0xff]  }
 0x6c4   :  { %v3600_v45 = vpop.eup %3599 }
 0x6c5   :  { %v3602_v39 = vpop.eup %3601  ;;  %v2263_v49 = vmul.f32 %v3600_v45, %v3598_v52 }
 0x6c6   :  { %2405 = vmatpush1.bf16.msra.mxu0 %v4814_v46  ;;  %v3730_v46 = vld [vmem:[%s5284_s2 + $0x20] sm:$0xff]  }
 0x6c7   :  { %2406 = vmatprep.subr.bf16.mxu0 %v4820_v9  ;;  %v3731_v9 = vld [vmem:[%s5284_s2 + $0x18] sm:$0xff]  }
 0x6c8   :  { %v3604_v57 = vpop.eup %3603 }
 0x6c9   :  { %v2264_v62 = vmul.f32 %v3604_v57, %v3602_v39  ;;  %v5433_v57 = vld [vmem:[#allocation50_spill] sm:$0xff] }
 0x6ca   :  { %2407 = vmatpush1.bf16.msra.mxu0 %v4826_v59  ;;  %v3732_v59 = vld [vmem:[%s5285_s4 + $0xe0] ss:$16 sps:$4 sm:$0xff]  }
 0x6cb   :  { %2408 = vmatprep.subr.bf16.mxu0 %v4832_v15  ;;  %v2996_v32 = vpack.c.bf16 %v2264_v62, %v2263_v49  ;;  %v3733_v15 = vld [vmem:[%s5285_s4 + $0xc4] ss:$16 sps:$4 sm:$0xff]  }
 0x6cd   :  { %3012 = vst [vmem:[%s5289_s7 + $0x28] sm:$0xff] %v2996_v32   ;;  %2390 = vmatmul.mubr.bf16.vlgmr.msra.gmra.mxu1 %v2996_v32 }
 0x6ce   :  { %2409 = vmatpush1.bf16.msra.mxu0 %v4841_v12  ;;  %3228 = vmatpush3.bf16.msra.mxu1 %v3727_v54  ;;  %v3734_v12 = vld [vmem:[%s5284_s2 + $0x10] sm:$0xff]  }
 0x6cf   :  { %2410 = vmatprep.subr.bf16.mxu0 %v4848_v2  ;;  %3229 = vmatprep.subr.bf16.mxu1 %v5369_v55  ;;  %v3735_v2 = vld [vmem:[%s5285_s4 + $0xc0] ss:$16 sps:$4 sm:$0xff]  }
 0x6d0   :  { %3243 = vmatprep.mubr.msk.bf16.mxu1 %vm3768_vm0, %v5369_v55 }
 0x6d2   :  { %2411 = vmatpush1.bf16.msra.mxu0 %v4857_v48  ;;  %3230 = vmatpush3.bf16.msra.mxu1 %v3728_v56  ;;  %v3736_v48 = vld [vmem:[%s5285_s4 + $0xa4] ss:$16 sps:$4 sm:$0xff]   ;;  %v5434_v56 = vld [vmem:[#allocation54_spill] sm:$0xff] }
 0x6d3   :  { %2412 = vmatprep.subr.bf16.mxu0 %v4864_v28  ;;  %3231 = vmatprep.subr.bf16.mxu1 %v5369_v55  ;;  %v3737_v28 = vld [vmem:[%s5284_s2 + $0x8] sm:$0xff]  }
 0x6d6   :  { %2413 = vmatpush1.bf16.msra.mxu0 %v4871_v18  ;;  %3232 = vmatpush3.bf16.msra.mxu1 %v3729_v61  ;;  %v3738_v18 = vld [vmem:[%s5285_s4 + $0xa0] ss:$16 sps:$4 sm:$0xff]  }
 0x6d7   :  { %2414 = vmatprep.subr.bf16.mxu0 %v4878_v30  ;;  %3233 = vmatprep.subr.bf16.mxu1 %v5369_v55  ;;  %v3739_v30 = vld [vmem:[%s5285_s4 + $0x84] ss:$16 sps:$4 sm:$0xff]  }
 0x6da   :  { %2415 = vmatpush1.bf16.msra.mxu0 %v4885_v36  ;;  %3234 = vmatpush3.bf16.msra.mxu1 %v3730_v46  ;;  %v3740_v36 = vld [vmem:[%s5284_s2] sm:$0xff]  }
 0x6db   :  { %3235 = vmatprep.subr.bf16.mxu1 %v5369_v55  ;;  %2593 = vmatprep.subr.bf16.mxu0 %v5048_v11  ;;  %v3741_v11 = vld [vmem:[%s5285_s4 + $0x80] ss:$16 sps:$4 sm:$0xff]  }
 0x6dd   :  { %2433 = vmatmul.mubr.bf16.vlgmr.msra.gmra.mxu0 %v2996_v32 }
 0x6de   :  { %3236 = vmatpush3.bf16.msra.mxu1 %v3731_v9  ;;  %2594 = vmatpush1.bf16.msra.mxu0 %v3732_v59 }
 0x6df   :  { %3237 = vmatprep.subr.bf16.mxu1 %v5369_v55  ;;  %2595 = vmatprep.subr.bf16.mxu0 %v3733_v15 }
 0x6e0   :  { %2625 = vmatprep.mubr.bf16.mxu0 %v5368_v7 }
 0x6e2   :  { %3238 = vmatpush3.bf16.msra.mxu1 %v3734_v12  ;;  %2596 = vmatpush1.bf16.msra.mxu0 %v3735_v2 }
 0x6e3   :  { %3239 = vmatprep.subr.bf16.mxu1 %v5369_v55  ;;  %2597 = vmatprep.subr.bf16.mxu0 %v3736_v48 }
 0x6e6   :  { %3240 = vmatpush3.bf16.msra.mxu1 %v3737_v28  ;;  %2598 = vmatpush1.bf16.msra.mxu0 %v3738_v18 }
 0x6e7   :  { %3241 = vmatprep.subr.bf16.mxu1 %v5369_v55  ;;  %2599 = vmatprep.subr.bf16.mxu0 %v3739_v30  ;;  %v3743_v55 = vld [vmem:[%s5285_s4 + $0x64] ss:$16 sps:$4 sm:$0xff]  }
 0x6ea   :  { %3242 = vmatpush3.bf16.msra.mxu1 %v3740_v36  ;;  %2600 = vmatpush1.bf16.msra.mxu0 %v3741_v11 }
 0x6eb   :  { %2636 = vmatprep.subr.bf16.mxu1 %v3742_v31  ;;  %2601 = vmatprep.subr.bf16.mxu0 %v3743_v55  ;;  %v2334_v31 = vpop.permute.xlu0 %2333 }
 0x6ee   :  { %2602 = vmatpush1.bf16.msra.mxu0 %v3744_v34 }
 0x6ef   :  { %2603 = vmatprep.subr.bf16.mxu0 %v3745_v60 }
 0x6f2   :  { %2604 = vmatpush1.bf16.msra.mxu0 %v3746_v4 }
 0x6f3   :  { %2605 = vmatprep.subr.bf16.mxu0 %v3747_v13  ;;  %v2339_v13 = vpop.permute.xlu1 %2338 }
 0x6f6   :  { %2606 = vmatpush1.bf16.msra.mxu0 %v3748_v14 }
 0x6f7   :  { %2607 = vmatprep.subr.bf16.mxu0 %v3749_v16 }
 0x6fa   :  { %2608 = vmatpush1.bf16.msra.mxu0 %v3750_v19 }
 0x77d   :  { %v2319_v21 = vpop.f32.mrf.mxu0 }
 0x77e   :  { %v2320_v45 = vadd.f32 %v5000_v58, %v2319_v21 }
 0x77f   :  { %v3225_v17 = vpop.f32.mrf.mxu0 }
 0x781   :  { %v2322_v22 = vpop.f32.mrf.mxu0 }
 0x782   :  { %v2323_v32 = vadd.f32 %v5000_v58, %v2322_v22 }
 0x783   :  { %v3226_v23 = vpop.f32.mrf.mxu0 }
 0x78d   :  { %v2391_v24 = vpop.f32.mrf.mxu1 }
 0x78e   :  { %v2392_v27 = vadd.f32 %v2391_v24, %v5427_v26 }
 0x78f   :  { %v2393_v20 = vpop.f32.mrf.mxu1 }
 0x790   :  { %v2394_v8 = vadd.f32 %v2393_v20, %v5428_v1  ;;  %v2926_v37 = vmul.f32 -1.442695, %v2392_v27 }
 0x791   :  { %v2395_v25 = vpop.f32.mrf.mxu1 }
 0x792   :  { %v2396_v35 = vadd.f32 %v2395_v25, %v5429_v38  ;;  %v2927_v50 = vmul.f32 -1.442695, %v2394_v8  ;;  %3605 = vpow2.f32 %v2926_v37 }
 0x793   :  { %v2397_v29 = vpop.f32.mrf.mxu1 }
 0x794   :  { %v2398_v41 = vadd.f32 %v2397_v29, %v5430_v47  ;;  %v2930_v33 = vmul.f32 -1.442695, %v2396_v35  ;;  %3607 = vpow2.f32 %v2927_v50  ;;  %v3752_v35 = vld [vmem:[%s5285_s4 + $0xcc] ss:$16 sps:$4 sm:$0xff]   ;;  %v3753_v50 = vld [vmem:[%s5285_s4 + $0xc8] ss:$16 sps:$4 sm:$0xff]  }
 0x795   :  { %v3754_v47 = vld [vmem:[%s5285_s4 + $0xac] ss:$16 sps:$4 sm:$0xff]  }
 0x796   :  { %v2931_v51 = vmul.f32 -1.442695, %v2398_v41  ;;  %3609 = vpow2.f32 %v2930_v33 }
 0x798   :  { %3611 = vpow2.f32 %v2931_v51 }
 0x79d   :  { %v2434_v53 = vpop.f32.mrf.mxu0 }
 0x79e   :  { %v2435_v49 = vadd.f32 %v2434_v53, %v5433_v57  ;;  %v3764_v57 = vld [vmem:[%s5285_s4 + $0xc] ss:$16 sps:$4 sm:$0xff]  }
 0x79f   :  { %v2436_v40 = vpop.f32.mrf.mxu0  ;;  %v3606_v39 = vpop.eup %3605 }
 0x7a0   :  { %v2437_v44 = vadd.f32 %v2436_v40, %v5431_v0  ;;  %v2467_v54 = vadd.f32 1.0, %v3606_v39  ;;  %v2928_v46 = vmul.f32 -1.442695, %v2435_v49  ;;  %v3756_v40 = vld [vmem:[%s5285_s4 + $0x8c] ss:$16 sps:$4 sm:$0xff]  }
 0x7a1   :  { %v2438_v3 = vpop.f32.mrf.mxu0  ;;  %v3608_v62 = vpop.eup %3607  ;;  %v3763_v39 = vld [vmem:[%s5285_s4 + $0x28] ss:$16 sps:$4 sm:$0xff]  }
 0x7a2   :  { %v2929_v5 = vmul.f32 -1.442695, %v2437_v44  ;;  %v2439_v61 = vadd.f32 %v2438_v3, %v5434_v56  ;;  %v2468_v59 = vadd.f32 1.0, %v3608_v62  ;;  %v3757_v3 = vld [vmem:[%s5285_s4 + $0x88] ss:$16 sps:$4 sm:$0xff]  }
 0x7a3   :  { %v2440_v43 = vpop.f32.mrf.mxu0  ;;  %v3610_v9 = vpop.eup %3609  ;;  %v3765_v49 = vld [vmem:[%s5285_s4 + $0x8] ss:$16 sps:$4 sm:$0xff]  }
 0x7a4   :  { %v2441_v63 = vadd.f32 %v2440_v43, %v5432_v6  ;;  %3613 = vpow2.f32 %v2929_v5  ;;  %v2932_v2 = vmul.f32 -1.442695, %v2439_v61  ;;  %v2471_v48 = vadd.f32 1.0, %v3610_v9  ;;  %v3758_v5 = vld [vmem:[%s5285_s4 + $0x6c] ss:$16 sps:$4 sm:$0xff]  }
 0x7a5   :  { %v3612_v15 = vpop.eup %3611  ;;  %v3759_v6 = vld [vmem:[%s5285_s4 + $0x68] ss:$16 sps:$4 sm:$0xff]  }
 0x7a6   :  { %v2933_v52 = vmul.f32 -1.442695, %v2441_v63  ;;  %v2472_v18 = vadd.f32 1.0, %v3612_v15  ;;  %v3760_v63 = vld [vmem:[%s5285_s4 + $0x4c] ss:$16 sps:$4 sm:$0xff]  }
 0x7a8   :  { %3615 = vpow2.f32 %v2933_v52  ;;  %v3761_v52 = vld [vmem:[%s5285_s4 + $0x48] ss:$16 sps:$4 sm:$0xff]  }
 0x7a9   :  { %3617 = vtanh.f32 %v2320_v45  ;;  %v3762_v45 = vld [vmem:[%s5285_s4 + $0x2c] ss:$16 sps:$4 sm:$0xff]  }
 0x7aa   :  { %3619 = vtanh.f32 %v2323_v32 }
 0x7ab   :  { %3621 = vrcp.f32 %v2467_v54 }
 0x7ac   :  { %3623 = vpow2.f32 %v2928_v46 }
 0x7ad   :  { %3625 = vrcp.f32 %v2468_v59  ;;  %v5435_v59 = vld [vmem:[#allocation57_spill] sm:$0xff] }
 0x7b1   :  { %v3614_v12 = vpop.eup %3613 }
 0x7b2   :  { %v2470_v28 = vadd.f32 1.0, %v3614_v12  ;;  %v5436_v12 = vld [vmem:[#allocation59_spill] sm:$0xff] }
 0x7b4   :  { %3627 = vrcp.f32 %v2470_v28 }
 0x7b5   :  { %v3616_v30 = vpop.eup %3615  ;;  %3629 = vpow2.f32 %v2932_v2 }
 0x7b6   :  { %3631 = vrcp.f32 %v2471_v48  ;;  %v2474_v36 = vadd.f32 1.0, %v3616_v30  ;;  %v3618_v11 = vpop.eup %3617 }
 0x7b7   :  { %3633 = vrcp.f32 %v2472_v18  ;;  %v2341_v55 = vmul.f32 %v3618_v11, %v2334_v31  ;;  %v3620_v34 = vpop.eup %3619  ;;  %v5437_v18 = vld [vmem:[#allocation61_spill] sm:$0xff]  ;;  %v5438_v11 = vld [vmem:[#allocation63_spill] sm:$0xff] }
 0x7b8   :  { %3635 = vrcp.f32 %v2474_v36  ;;  %v3622_v60 = vpop.eup %3621  ;;  %v2342_v16 = vmul.f32 %v3620_v34, %v2339_v13  ;;  %v5439_v13 = vld [vmem:[#allocation60_spill] sm:$0xff] }
 0x7b9   :  { %v3624_v4 = vpop.eup %3623  ;;  %v2343_v19 = vadd.f32 %v2341_v55, %v5088_v10 }
 0x7ba   :  { %v3626_v14 = vpop.eup %3625  ;;  %v2469_v20 = vadd.f32 1.0, %v3624_v4  ;;  %v2344_v26 = vadd.f32 %v2342_v16, %v5090_v42  ;;  %v3751_v42 = vld [vmem:[%s5285_s4 + $0xe8] ss:$16 sps:$4 sm:$0xff]  }
 0x7bb   :  { %v2491_v22 = vmul.f32 %v3622_v60, %v2343_v19 }
 0x7bc   :  { %3637 = vrcp.f32 %v2469_v20  ;;  %v5441_v20 = vld [vmem:[#allocation58_spill] sm:$0xff] }
 0x7c1   :  { %v3628_v21 = vpop.eup %3627 }
 0x7c2   :  { %v3630_v17 = vpop.eup %3629  ;;  %v2493_v23 = vmul.f32 %v3628_v21, %v3626_v14 }
 0x7c3   :  { %v3632_v24 = vpop.eup %3631  ;;  %v2473_v8 = vadd.f32 1.0, %v3630_v17  ;;  %v5440_v17 = vld [vmem:[#allocation64_spill] sm:$0xff] }
 0x7c4   :  { %v3634_v25 = vpop.eup %3633  ;;  %v5210_v27 = vadd.f32 %v2493_v23, %v2491_v22  ;;  %v2492_v29 = vmul.f32 %v3632_v24, %v2344_v26 }
 0x7c5   :  { %v3636_v1 = vpop.eup %3635 }
 0x7c6   :  { %v2494_v37 = vmul.f32 %v3636_v1, %v3634_v25  ;;  %3639 = vtanh.f32 %v5210_v27 }
 0x7c7   :  { %3641 = vrcp.f32 %v2473_v8 }
 0x7c8   :  { %v5212_v38 = vadd.f32 %v2494_v37, %v2492_v29  ;;  %v5442_v37 = vld [vmem:[#allocation62_spill] sm:$0xff] }
 0x7c9   :  { %v3638_v41 = vpop.eup %3637 }
 0x7ca   :  { %3643 = vtanh.f32 %v5212_v38  ;;  %v2520_v10 = vpack.c.bf16 %v5212_v38, %v5210_v27 }
 0x7cc   :  { %3244 = vmatmul.mubr.bf16.vlgmr.msra.gmra.mxu1 %v2520_v10 }
 0x7cd   :  { %2637 = vmatpush1.bf16.msra.mxu1 %v3751_v42  ;;  %2668 = vmatprep.mubr.bf16.mxu1 %v5368_v7  ;;  %v3755_v7 = vld [vmem:[%s5285_s4 + $0xa8] ss:$16 sps:$4 sm:$0xff]  }
 0x7ce   :  { %2638 = vmatprep.subr.bf16.mxu1 %v3752_v35 }
 0x7d1   :  { %2639 = vmatpush1.bf16.msra.mxu1 %v3753_v50 }
 0x7d2   :  { %2640 = vmatprep.subr.bf16.mxu1 %v3754_v47 }
 0x7d3   :  { %v3640_v53 = vpop.eup %3639 }
 0x7d4   :  { %v3642_v33 = vpop.eup %3641  ;;  %v2499_v0 = vmul.f32 %v3640_v53, %v3638_v41 }
 0x7d5   :  { %2641 = vmatpush1.bf16.msra.mxu1 %v3755_v7 }
 0x7d6   :  { %2642 = vmatprep.subr.bf16.mxu1 %v3756_v40 }
 0x7d7   :  { %v3644_v51 = vpop.eup %3643 }
 0x7d8   :  { %v2500_v44 = vmul.f32 %v3644_v51, %v3642_v33 }
 0x7d9   :  { %2643 = vmatpush1.bf16.msra.mxu1 %v3757_v3 }
 0x7da   :  { %2644 = vmatprep.subr.bf16.mxu1 %v3758_v5  ;;  %v3001_v43 = vpack.c.bf16 %v2500_v44, %v2499_v0  ;;  %v2570_v44 = vpop.permute.xlu0 %2569 }
 0x7dc   :  { %3013 = vst [vmem:[%s5289_s7 + $0x30] sm:$0xff] %v3001_v43   ;;  %2626 = vmatmul.mubr.bf16.vlgmr.msra.gmra.mxu0 %v3001_v43 }
 0x7dd   :  { %2645 = vmatpush1.bf16.msra.mxu1 %v3759_v6 }
 0x7de   :  { %2646 = vmatprep.subr.bf16.mxu1 %v3760_v63  ;;  %v2575_v63 = vpop.permute.xlu1 %2574 }
 0x7e1   :  { %2647 = vmatpush1.bf16.msra.mxu1 %v3761_v52 }
 0x7e2   :  { %2648 = vmatprep.subr.bf16.mxu1 %v3762_v45 }
 0x7e5   :  { %2649 = vmatpush1.bf16.msra.mxu1 %v3763_v39 }
 0x7e6   :  { %2650 = vmatprep.subr.bf16.mxu1 %v3764_v57 }
 0x7e9   :  { %2651 = vmatpush1.bf16.msra.mxu1 %v3765_v49 }
 0x7ec   :  { %2669 = vmatmul.mubr.bf16.vlgmr.msra.gmra.mxu1 %v3001_v43 }
 0x88c   :  { %v2555_v62 = vpop.f32.mrf.mxu1 }
 0x88d   :  { %v2556_v24 = vadd.f32 %v5000_v58, %v2555_v62 }
 0x88e   :  { %v3245_v32 = vpop.f32.mrf.mxu1 }
 0x890   :  { %v2558_v54 = vpop.f32.mrf.mxu1 }
 0x891   :  { %v2559_v8 = vadd.f32 %v5000_v58, %v2558_v54 }
 0x892   :  { %v3246_v56 = vpop.f32.mrf.mxu1 }
 0x89c   :  { %v2627_v61 = vpop.f32.mrf.mxu0 }
 0x89d   :  { %v2628_v15 = vadd.f32 %v2627_v61, %v5435_v59 }
 0x89e   :  { %v2629_v46 = vpop.f32.mrf.mxu0 }
 0x89f   :  { %v2630_v2 = vadd.f32 %v2629_v46, %v5436_v12  ;;  %v2940_v28 = vmul.f32 -1.442695, %v2628_v15 }
 0x8a0   :  { %v2631_v9 = vpop.f32.mrf.mxu0 }
 0x8a1   :  { %v2632_v30 = vadd.f32 %v2631_v9, %v5437_v18  ;;  %v2941_v36 = vmul.f32 -1.442695, %v2630_v2  ;;  %3645 = vpow2.f32 %v2940_v28 }
 0x8a2   :  { %v2633_v48 = vpop.f32.mrf.mxu0 }
 0x8a3   :  { %v2634_v31 = vadd.f32 %v2633_v48, %v5438_v11  ;;  %v2944_v34 = vmul.f32 -1.442695, %v2632_v30  ;;  %3647 = vpow2.f32 %v2941_v36 }
 0x8a5   :  { %v2945_v4 = vmul.f32 -1.442695, %v2634_v31  ;;  %3649 = vpow2.f32 %v2944_v34 }
 0x8a7   :  { %3651 = vpow2.f32 %v2945_v4 }
 0x8ac   :  { %v2670_v55 = vpop.f32.mrf.mxu1 }
 0x8ad   :  { %v2671_v25 = vadd.f32 %v2670_v55, %v5441_v20 }
 0x8ae   :  { %v2672_v60 = vpop.f32.mrf.mxu1  ;;  %v3646_v26 = vpop.eup %3645 }
 0x8af   :  { %v2673_v14 = vadd.f32 %v2672_v60, %v5439_v13  ;;  %v2942_v29 = vmul.f32 -1.442695, %v2671_v25  ;;  %v2703_v42 = vadd.f32 1.0, %v3646_v26 }
 0x8b0   :  { %v2674_v16 = vpop.f32.mrf.mxu1  ;;  %v3648_v1 = vpop.eup %3647 }
 0x8b1   :  { %v2943_v19 = vmul.f32 -1.442695, %v2673_v14  ;;  %v2675_v10 = vadd.f32 %v2674_v16, %v5442_v37  ;;  %v2704_v50 = vadd.f32 1.0, %v3648_v1 }
 0x8b2   :  { %v2676_v21 = vpop.f32.mrf.mxu1  ;;  %v3650_v35 = vpop.eup %3649 }
 0x8b3   :  { %v2677_v22 = vadd.f32 %v2676_v21, %v5440_v17  ;;  %3653 = vpow2.f32 %v2943_v19  ;;  %v2946_v53 = vmul.f32 -1.442695, %v2675_v10  ;;  %v2707_v7 = vadd.f32 1.0, %v3650_v35 }
 0x8b4   :  { %v3652_v47 = vpop.eup %3651 }
 0x8b5   :  { %v2947_v23 = vmul.f32 -1.442695, %v2677_v22  ;;  %v2708_v40 = vadd.f32 1.0, %v3652_v47 }
 0x8b7   :  { %3655 = vpow2.f32 %v2947_v23 }
 0x8b8   :  { %3657 = vtanh.f32 %v2556_v24 }
 0x8b9   :  { %3659 = vtanh.f32 %v2559_v8 }
 0x8ba   :  { %3661 = vpow2.f32 %v2942_v29 }
 0x8bb   :  { %3663 = vrcp.f32 %v2703_v42 }
 0x8bc   :  { %3665 = vrcp.f32 %v2704_v50 }
 0x8c0   :  { %v3654_v41 = vpop.eup %3653 }
 0x8c1   :  { %v2706_v33 = vadd.f32 1.0, %v3654_v41 }
 0x8c3   :  { %3667 = vrcp.f32 %v2706_v33 }
 0x8c4   :  { %v3656_v51 = vpop.eup %3655  ;;  %3669 = vpow2.f32 %v2946_v53 }
 0x8c5   :  { %3671 = vrcp.f32 %v2707_v7  ;;  %v2710_v58 = vadd.f32 1.0, %v3656_v51  ;;  %v3658_v0 = vpop.eup %3657 }
 0x8c6   :  { %3673 = vrcp.f32 %v2708_v40  ;;  %v2577_v3 = vmul.f32 %v3658_v0, %v2570_v44  ;;  %v3660_v5 = vpop.eup %3659 }
 0x8c7   :  { %3675 = vrcp.f32 %v2710_v58  ;;  %v3662_v43 = vpop.eup %3661  ;;  %v2578_v39 = vmul.f32 %v3660_v5, %v2575_v63 }
 0x8c8   :  { %v3664_v6 = vpop.eup %3663  ;;  %v2579_v45 = vadd.f32 %v2577_v3, %v5210_v27  ;;  %v2705_v49 = vadd.f32 1.0, %v3662_v43 }
 0x8c9   :  { %v3666_v52 = vpop.eup %3665  ;;  %v2580_v46 = vadd.f32 %v2578_v39, %v5212_v38 }
 0x8ca   :  { %v2727_v32 = vmul.f32 %v3664_v6, %v2579_v45  ;;  %3677 = vrcp.f32 %v2705_v49 }
 0x8d0   :  { %v3668_v57 = vpop.eup %3667 }
 0x8d1   :  { %v3670_v62 = vpop.eup %3669  ;;  %v2729_v54 = vmul.f32 %v3668_v57, %v3666_v52 }
 0x8d2   :  { %v3672_v56 = vpop.eup %3671  ;;  %v2709_v15 = vadd.f32 1.0, %v3670_v62 }
 0x8d3   :  { %v3674_v61 = vpop.eup %3673  ;;  %v2731_v9 = vadd.f32 %v2729_v54, %v2727_v32  ;;  %v2728_v12 = vmul.f32 %v3672_v56, %v2580_v46 }
 0x8d4   :  { %v3676_v59 = vpop.eup %3675 }
 0x8d5   :  { %3679 = vtanh.f32 %v2731_v9  ;;  %v2730_v2 = vmul.f32 %v3676_v59, %v3674_v61 }
 0x8d6   :  { %3681 = vrcp.f32 %v2709_v15 }
 0x8d7   :  { %v2732_v48 = vadd.f32 %v2730_v2, %v2728_v12  ;;  %v3678_v27 = vpop.eup %3677 }
 0x8d9   :  { %3683 = vtanh.f32 %v2732_v48 }
 0x8e2   :  { %v3680_v28 = vpop.eup %3679 }
 0x8e3   :  { %v2735_v18 = vmul.f32 %v3680_v28, %v3678_v27  ;;  %v3682_v30 = vpop.eup %3681 }
 0x8e6   :  { %v3684_v36 = vpop.eup %3683 }
 0x8e7   :  { %v2736_v11 = vmul.f32 %v3684_v36, %v3682_v30 }
 0x8e9   :  { %v3006_v31 = vpack.c.bf16 %v2736_v11, %v2735_v18 }
 0x8eb   :  { %3014 = vst [vmem:[%s5289_s7 + $0x38] sm:$0xff] %v3006_v31  }

</bundles_post_ra>
